<compile_context>
chip_gen: v6e
topology: v6e:2x2x1
jax: 0.10.0
libtpu: 0.0.40
codegen_flags: <defaults>
</compile_context>

<pallas_src>
import jax
import jax.numpy as jnp
from jax.experimental import pallas as pl
from jax.experimental.pallas import tpu as pltpu

LN_EPS = 1e-5  # torch.nn.LayerNorm default eps


def _gte_gru_ln_kernel(msg_ref, w_ih_ref, w_hh_ref, b_i_ref, b_hn_ref,
                       gamma_ref, beta_ref, out_ref, gi_ref):
    """One batch tile, batch-on-lanes layout.

    msg_ref  : (D, L, TB)  mailbox tile, batch on lanes (MXU operand dtype)
    w_ih_ref : (3D, D)     input->gate weights, gates [r|z|n] stacked on sublanes
    w_hh_ref : (3D, D)     hidden->gate weights, same stacking
    b_i_ref  : (3D, 1)     [b_ir+b_hr | b_iz+b_hz | b_in] (r/z biases pre-folded)
    b_hn_ref : (D, 1)      b_hn only (n gate needs r * (W_hn h + b_hn))
    gamma_ref, beta_ref : (D, 1) LayerNorm affine
    out_ref  : (D, TB)     f32 output tile (batch on lanes, lane-dense store)
    gi_ref   : (S, 3D, TB) VMEM scratch for hoisted input-side projections
    """
    D, L, TB = msg_ref.shape
    S = L - 1

    w_ih = w_ih_ref[...]
    w_hh = w_hh_ref[...]
    # Narrow bias columns; the per-use lane broadcast is a cheap VPU splat and
    # avoids keeping a (3D, TB) value live across the loops (vreg pressure).
    b_i = b_i_ref[...].astype(jnp.float32)       # (3D, 1)
    b_hn = b_hn_ref[...].astype(jnp.float32)     # (D, 1)

    # Input-side gate projections for ALL timesteps, staged into VMEM scratch:
    # off the serial recurrence and bounds vreg live ranges at large TB.
    # Static Python loop (S is small; static t keeps the middle-dim slice cheap).
    for t in range(S):
        x_t = msg_ref[:, t, :].astype(w_ih.dtype)               # (D, TB)
        gi_ref[t] = (jnp.dot(w_ih, x_t, preferred_element_type=jnp.float32)
                     + b_i)

    # Initial hidden state = last message (PyTorch: h_0 = msg[:, -1, :]).
    h0 = msg_ref[:, S, :].astype(jnp.float32)                   # (D, TB)

    # Serial GRU recurrence: only the W_hh @ h matmul is on the latency chain.
    # TODO(synk): on v7x, keep w_hh resident in MXU weight staging across the
    # loop (pltpu.matmul_push_rhs / matmul_acc_lhs) to avoid re-pushing the RHS
    # every timestep.
    def step(t, h):
        gi = gi_ref[t]                                          # (3D, TB) f32
        gh = jnp.dot(w_hh, h.astype(w_hh.dtype),
                     preferred_element_type=jnp.float32)        # (3D, TB) f32
        r = jax.nn.sigmoid(gi[:D] + gh[:D])                     # sublane slices
        z = jax.nn.sigmoid(gi[D:2 * D] + gh[D:2 * D])
        n = jnp.tanh(gi[2 * D:] + r * (gh[2 * D:] + b_hn))
        return (1.0 - z) * n + z * h

    h = jax.lax.fori_loop(0, S, step, h0, unroll=True)

    # Dropout(p=0.0) == identity; LayerNorm over D (sublane axis), all f32.
    mean = jnp.mean(h, axis=0, keepdims=True)                   # (1, TB)
    var = jnp.mean(jnp.square(h - mean), axis=0, keepdims=True)
    h_norm = (h - mean) * jax.lax.rsqrt(var + LN_EPS)
    out_ref[...] = (h_norm * gamma_ref[...].astype(jnp.float32)
                    + beta_ref[...].astype(jnp.float32)).astype(out_ref.dtype)


def _round_up(x, m):
    return (x + m - 1) // m * m


def _num_tensorcores():
    """Best-effort TensorCores-per-chip (2 on v7x, 1 on v5e/v6e)."""
    try:
        info = pltpu.get_tpu_info()
        for name in ("num_cores", "core_count", "tensorcores_per_chip",
                     "num_tensorcores"):
            v = getattr(info, name, None)
            if isinstance(v, int) and v in (1, 2):
                return v
    except Exception:
        pass
    return 1


def build_mailbox_dlb(node_feat, adj):
    """Gather fn.copy_u messages directly into the kernel layout (D, L, B).

    node_feat : (num_src, D) source-node features (embedding output)
    adj       : (B, L) int    source index per (dst node, in-edge)
    One gather pass over the mailbox -- no mailbox-sized transpose/pad passes.
    """
    return jnp.take(node_feat.T, adj.T, axis=1)                 # (D, L, B)


def gte_conv_reduce(msg, w_ih, w_hh, b_ih, b_hh, gamma, beta, *,
                    mxu_dtype=jnp.bfloat16, max_batch_tile=1024,
                    num_tensorcores=None):
    """Pallas implementation of GTEConv._gru_reducer + Dropout(0) + LayerNorm.

    msg   : (D, L, B) mailbox, batch-last (see build_mailbox_dlb). Gather it
            directly in this layout and in `mxu_dtype` to avoid extra HBM passes.
    w_ih  : (3, D, D) GRU input weights, PyTorch orientation (gate = W @ x),
            gate order [r, z, n] (torch weight_ih_l0 split in 3).
    w_hh  : (3, D, D) hidden weights, same convention.
    b_ih, b_hh : (3, D)
    gamma, beta: (D,) LayerNorm affine
    mxu_dtype  : matmul-operand / mailbox dtype. bf16 is the right default on
                 every generation (v5e's MXU is bf16-native; f32 operands are
                 multi-pass emulated); accumulation + elementwise math stay f32.
    Returns (B, D) float32.
    """
    D, L, B = msg.shape
    if L == 1:
        # PyTorch reducer short-circuit: return msg.squeeze(1);
        # no dropout / LayerNorm applied on this branch in the original module.
        return msg[:, 0, :].T.astype(jnp.float32)

    if msg.dtype != mxu_dtype:
        # Fallback cast (one extra HBM pass); prefer gathering in mxu_dtype.
        msg = msg.astype(mxu_dtype)

    # Gates stacked [r|z|n] along sublanes -> (3D, D); gate = W @ x-column.
    w_ih_s = w_ih.reshape(3 * D, D).astype(mxu_dtype)
    w_hh_s = w_hh.reshape(3 * D, D).astype(mxu_dtype)
    # r/z gates: b_ih + b_hh fold into one bias; the n gate keeps its hidden
    # bias separate because of r * (W_hn h + b_hn).
    b_i = jnp.concatenate([b_ih[0] + b_hh[0], b_ih[1] + b_hh[1], b_ih[2]],
                          axis=0).reshape(3 * D, 1).astype(jnp.float32)
    b_hn = b_hh[2].reshape(D, 1).astype(jnp.float32)
    gamma2 = gamma.reshape(D, 1).astype(jnp.float32)
    beta2 = beta.reshape(D, 1).astype(jnp.float32)

    # --- batch tiling --------------------------------------------------------
    # Balance tiles so ragged waste stays < 1 tile; only prefer >=2 grid steps
    # when the chip has >1 TensorCore (v7x). On v5e/v6e the grid is a serial
    # loop, so splitting only adds per-step overhead.
    n_tiles = pl.cdiv(B, max_batch_tile)
    if B >= 256:
        tc = num_tensorcores if num_tensorcores is not None else _num_tensorcores()
        if tc > 1:
            n_tiles = _round_up(max(n_tiles, tc), tc)
    if n_tiles <= 1:
        tb = B                                      # single block: lane dim == full dim
    else:
        tb = _round_up(pl.cdiv(B, n_tiles), 128)    # multi-block: lane dim 128-aligned
    grid = (pl.cdiv(B, tb),)
    # No explicit zero-padding: the ragged last tile's out-of-bounds lanes hold
    # stale garbage, but batch columns are independent (matmuls contract over D
    # only, LayerNorm reduces over D only) and OOB output lanes are discarded.

    out = pl.pallas_call(
        _gte_gru_ln_kernel,
        out_shape=jax.ShapeDtypeStruct((D, B), jnp.float32),
        grid_spec=pltpu.PrefetchScalarGridSpec(
            num_scalar_prefetch=0,
            grid=grid,
            in_specs=[
                pl.BlockSpec((D, L, tb), lambda i: (0, 0, i)),   # mailbox tile
                pl.BlockSpec((3 * D, D), lambda i: (0, 0)),      # W_ih [r|z|n]
                pl.BlockSpec((3 * D, D), lambda i: (0, 0)),      # W_hh [r|z|n]
                pl.BlockSpec((3 * D, 1), lambda i: (0, 0)),      # folded input bias
                pl.BlockSpec((D, 1), lambda i: (0, 0)),          # n-gate hidden bias
                pl.BlockSpec((D, 1), lambda i: (0, 0)),          # LayerNorm gamma
                pl.BlockSpec((D, 1), lambda i: (0, 0)),          # LayerNorm beta
            ],
            out_specs=pl.BlockSpec((D, tb), lambda i: (0, i)),   # lane-dense store
            scratch_shapes=[pltpu.VMEM((L - 1, 3 * D, tb), jnp.float32)],
        ),
        compiler_params=pltpu.CompilerParams(
            dimension_semantics=("parallel",)),
    )(msg, w_ih_s, w_hh_s, b_i, b_hn, gamma2, beta2)

    # (D, B) -> (B, D): the output is 1/L of the mailbox size, so this small
    # transpose is cheap next to the mailbox transpose/pad passes we removed.
    return out.T


def _reference_gru_ln(msg_bld, w_ih, w_hh, b_ih, b_hh, gamma, beta):
    """Pure-JAX reference of the same math (PyTorch nn.GRU + nn.LayerNorm)."""
    h = msg_bld[:, -1, :]
    for t in range(msg_bld.shape[1] - 1):
        x = msg_bld[:, t, :]
        r = jax.nn.sigmoid(x @ w_ih[0].T + b_ih[0] + h @ w_hh[0].T + b_hh[0])
        z = jax.nn.sigmoid(x @ w_ih[1].T + b_ih[1] + h @ w_hh[1].T + b_hh[1])
        n = jnp.tanh(x @ w_ih[2].T + b_ih[2] + r * (h @ w_hh[2].T + b_hh[2]))
        h = (1.0 - z) * n + z * h
    mean = jnp.mean(h, axis=-1, keepdims=True)
    var = jnp.mean(jnp.square(h - mean), axis=-1, keepdims=True)
    return (h - mean) * jax.lax.rsqrt(var + LN_EPS) * gamma + beta


if __name__ == "__main__":
    hidden_dim = 32     # D
    vocab_size = 64
    num_src = 16        # source nodes in the block
    num_dst = 8         # B : destination nodes
    in_deg = 8          # L : in-degree per dst node (GRU sequence length)

    key = jax.random.PRNGKey(0)
    k_emb, k_wih, k_whh, k_bih, k_bhh, k_tok, k_adj = jax.random.split(key, 7)

    # Deterministic parameter init mirroring the module's __init__:
    #   nn.init.kaiming_normal_(embeddings.weight)  (fan_in = hidden_dim)
    emb_table = jax.random.normal(
        k_emb, (vocab_size, hidden_dim), jnp.float32) * jnp.sqrt(2.0 / hidden_dim)
    #   nn.GRU.reset_parameters(): uniform(-1/sqrt(H), 1/sqrt(H));
    #   PyTorch orientation (gate = W @ x), gate order [r, z, n].
    bound = 1.0 / float(hidden_dim) ** 0.5
    w_ih = jax.random.uniform(k_wih, (3, hidden_dim, hidden_dim),
                              jnp.float32, -bound, bound)
    w_hh = jax.random.uniform(k_whh, (3, hidden_dim, hidden_dim),
                              jnp.float32, -bound, bound)
    b_ih = jax.random.uniform(k_bih, (3, hidden_dim), jnp.float32, -bound, bound)
    b_hh = jax.random.uniform(k_bhh, (3, hidden_dim), jnp.float32, -bound, bound)
    #   nn.LayerNorm default affine init
    gamma = jnp.ones((hidden_dim,), jnp.float32)
    beta = jnp.zeros((hidden_dim,), jnp.float32)

    # Synthetic single block: src token ids + fixed in-degree adjacency.
    token_ids = jax.random.randint(k_tok, (num_src,), 0, vocab_size)
    adj = jax.random.randint(k_adj, (num_dst, in_deg), 0, num_src)

    # Glue (plain JAX): embedding lookup == self.embeddings(token_id).squeeze(1),
    # mailbox gather == fn.copy_u('node_feat', 'e') message collection.
    node_feat = jnp.take(emb_table, token_ids, axis=0)          # (num_src, D)

    msg_bld = jnp.take(node_feat, adj, axis=0)                  # (B, L, D) for reference
    msg_dlb = build_mailbox_dlb(node_feat, adj)                 # (D, L, B) kernel layout, f32
    msg_dlb_bf16 = build_mailbox_dlb(node_feat.astype(jnp.bfloat16), adj)  # gathered as bf16

    ref = _reference_gru_ln(msg_bld, w_ih, w_hh, b_ih, b_hh, gamma, beta)

    # f32 MXU-operand path -- matches the reference to fp tolerance.
    out = gte_conv_reduce(msg_dlb, w_ih, w_hh, b_ih, b_hh, gamma, beta,
                          mxu_dtype=jnp.float32)
    out = jax.block_until_ready(out)
    assert out.shape == (num_dst, hidden_dim)
    assert jnp.allclose(out, ref, atol=1e-4, rtol=1e-4), "f32 mismatch vs reference"

    # Default path: bf16 MXU operands + bf16 mailbox DMA (elementwise math stays f32).
    out_bf16 = jax.block_until_ready(
        gte_conv_reduce(msg_dlb_bf16, w_ih, w_hh, b_ih, b_hh, gamma, beta))
    assert out_bf16.shape == (num_dst, hidden_dim)
    assert jnp.allclose(out_bf16, ref, atol=1e-1), "bf16 mismatch vs reference"

    # Non-multiple-of-(8,128) batch exercises the arbitrary-lane-count tile path.
    out6 = jax.block_until_ready(
        gte_conv_reduce(msg_dlb[:, :, :6], w_ih, w_hh, b_ih, b_hh, gamma, beta,
                        mxu_dtype=jnp.float32))
    ref6 = _reference_gru_ln(msg_bld[:6], w_ih, w_hh, b_ih, b_hh, gamma, beta)
    assert out6.shape == (6, hidden_dim)
    assert jnp.allclose(out6, ref6, atol=1e-4, rtol=1e-4), "small-batch mismatch"

    # L == 1 short-circuit (PyTorch: return msg.squeeze(1), no dropout / LN).
    out_l1 = jax.block_until_ready(
        gte_conv_reduce(msg_dlb[:, :1, :], w_ih, w_hh, b_ih, b_hh, gamma, beta,
                        mxu_dtype=jnp.float32))
    assert jnp.allclose(out_l1, msg_bld[:, 0, :], atol=1e-6), "L==1 path mismatch"

    print("KERNEL_OK")
</pallas_src>

<mosaic_0001>
module attributes {stable_mosaic.version = 11 : i64} {
  func.func @_gte_gru_ln_kernel(%arg0: i32, %arg1: memref<32x8x8xf32, #tpu.memory_space<vmem>>, %arg2: memref<96x32xf32, #tpu.memory_space<vmem>>, %arg3: memref<96x32xf32, #tpu.memory_space<vmem>>, %arg4: memref<96x1xf32, #tpu.memory_space<vmem>>, %arg5: memref<32x1xf32, #tpu.memory_space<vmem>>, %arg6: memref<32x1xf32, #tpu.memory_space<vmem>>, %arg7: memref<32x1xf32, #tpu.memory_space<vmem>>, %arg8: memref<32x8xf32, #tpu.memory_space<vmem>>, %arg9: memref<7x96x8xf32, #tpu.memory_space<vmem>>) attributes {dimension_semantics = [#tpu.dimension_semantics<parallel>], iteration_bounds = array<i64: 1>, scalar_prefetch = 0 : i64, scratch_operands = 1 : i64, tpu.core_type = #tpu.core_type<tc>, window_params = [{transform_indices = @transform_0, window_bounds = array<i64: 32, 8, 8>}, {pipeline_mode = #tpu.pipeline_mode<synchronous>, transform_indices = @transform_1, window_bounds = array<i64: 96, 32>}, {pipeline_mode = #tpu.pipeline_mode<synchronous>, transform_indices = @transform_2, window_bounds = array<i64: 96, 32>}, {pipeline_mode = #tpu.pipeline_mode<synchronous>, transform_indices = @transform_3, window_bounds = array<i64: 96, 1>}, {pipeline_mode = #tpu.pipeline_mode<synchronous>, transform_indices = @transform_4, window_bounds = array<i64: 32, 1>}, {pipeline_mode = #tpu.pipeline_mode<synchronous>, transform_indices = @transform_5, window_bounds = array<i64: 32, 1>}, {pipeline_mode = #tpu.pipeline_mode<synchronous>, transform_indices = @transform_6, window_bounds = array<i64: 32, 1>}, {transform_indices = @transform_7, window_bounds = array<i64: 32, 8>}]} {
    %c0 = arith.constant 0 : index
    %c0_0 = arith.constant 0 : index
    %0 = vector.load %arg2[%c0, %c0_0] : memref<96x32xf32, #tpu.memory_space<vmem>>, vector<96x32xf32>
    %c0_1 = arith.constant 0 : index
    %c0_2 = arith.constant 0 : index
    %1 = vector.load %arg3[%c0_1, %c0_2] : memref<96x32xf32, #tpu.memory_space<vmem>>, vector<96x32xf32>
    %c0_3 = arith.constant 0 : index
    %c0_4 = arith.constant 0 : index
    %2 = vector.load %arg4[%c0_3, %c0_4] : memref<96x1xf32, #tpu.memory_space<vmem>>, vector<96x1xf32>
    %c0_5 = arith.constant 0 : index
    %c0_6 = arith.constant 0 : index
    %3 = vector.load %arg5[%c0_5, %c0_6] : memref<32x1xf32, #tpu.memory_space<vmem>>, vector<32x1xf32>
    %c0_7 = arith.constant 0 : index
    %c0_8 = arith.constant 0 : index
    %c0_9 = arith.constant 0 : index
    %4 = vector.load %arg1[%c0_7, %c0_8, %c0_9] : memref<32x8x8xf32, #tpu.memory_space<vmem>>, vector<32x1x8xf32>
    %5 = vector.shape_cast %4 : vector<32x1x8xf32> to vector<32x8xf32>
    %cst = arith.constant dense<0.000000e+00> : vector<96x8xf32>
    %6 = tpu.matmul %0, %5, %cst {dimension_numbers = #tpu.dot_dimension_numbers<[1], [0], [0], [1], [0, 0, 1, 1], [], []>} : vector<96x32xf32>, vector<32x8xf32>, vector<96x8xf32> -> vector<96x8xf32>
    %7 = vector.broadcast %2 : vector<96x1xf32> to vector<96x8xf32>
    %8 = arith.addf %6, %7 : vector<96x8xf32>
    %c0_10 = arith.constant 0 : index
    %c0_11 = arith.constant 0 : index
    %c0_12 = arith.constant 0 : index
    %9 = vector.load %arg9[%c0_10, %c0_11, %c0_12] : memref<7x96x8xf32, #tpu.memory_space<vmem>>, vector<1x96x8xf32>
    %10 = vector.shape_cast %9 : vector<1x96x8xf32> to vector<96x8xf32>
    %11 = vector.shape_cast %8 : vector<96x8xf32> to vector<1x96x8xf32>
    tpu.vector_store %arg9[%c0_10, %c0_11, %c0_12], %11 {strides = array<i32>} : memref<7x96x8xf32, #tpu.memory_space<vmem>>, vector<1x96x8xf32>,
    %c0_13 = arith.constant 0 : index
    %c1 = arith.constant 1 : index
    %c0_14 = arith.constant 0 : index
    %12 = vector.load %arg1[%c0_13, %c1, %c0_14] : memref<32x8x8xf32, #tpu.memory_space<vmem>>, vector<32x1x8xf32>
    %13 = vector.shape_cast %12 : vector<32x1x8xf32> to vector<32x8xf32>
    %cst_15 = arith.constant dense<0.000000e+00> : vector<96x8xf32>
    %14 = tpu.matmul %0, %13, %cst_15 {dimension_numbers = #tpu.dot_dimension_numbers<[1], [0], [0], [1], [0, 0, 1, 1], [], []>} : vector<96x32xf32>, vector<32x8xf32>, vector<96x8xf32> -> vector<96x8xf32>
    %15 = vector.broadcast %2 : vector<96x1xf32> to vector<96x8xf32>
    %16 = arith.addf %14, %15 : vector<96x8xf32>
    %c1_16 = arith.constant 1 : index
    %c0_17 = arith.constant 0 : index
    %c0_18 = arith.constant 0 : index
    %17 = vector.load %arg9[%c1_16, %c0_17, %c0_18] : memref<7x96x8xf32, #tpu.memory_space<vmem>>, vector<1x96x8xf32>
    %18 = vector.shape_cast %17 : vector<1x96x8xf32> to vector<96x8xf32>
    %19 = vector.shape_cast %16 : vector<96x8xf32> to vector<1x96x8xf32>
    tpu.vector_store %arg9[%c1_16, %c0_17, %c0_18], %19 {strides = array<i32>} : memref<7x96x8xf32, #tpu.memory_space<vmem>>, vector<1x96x8xf32>,
    %c0_19 = arith.constant 0 : index
    %c2 = arith.constant 2 : index
    %c0_20 = arith.constant 0 : index
    %20 = vector.load %arg1[%c0_19, %c2, %c0_20] : memref<32x8x8xf32, #tpu.memory_space<vmem>>, vector<32x1x8xf32>
    %21 = vector.shape_cast %20 : vector<32x1x8xf32> to vector<32x8xf32>
    %cst_21 = arith.constant dense<0.000000e+00> : vector<96x8xf32>
    %22 = tpu.matmul %0, %21, %cst_21 {dimension_numbers = #tpu.dot_dimension_numbers<[1], [0], [0], [1], [0, 0, 1, 1], [], []>} : vector<96x32xf32>, vector<32x8xf32>, vector<96x8xf32> -> vector<96x8xf32>
    %23 = vector.broadcast %2 : vector<96x1xf32> to vector<96x8xf32>
    %24 = arith.addf %22, %23 : vector<96x8xf32>
    %c2_22 = arith.constant 2 : index
    %c0_23 = arith.constant 0 : index
    %c0_24 = arith.constant 0 : index
    %25 = vector.load %arg9[%c2_22, %c0_23, %c0_24] : memref<7x96x8xf32, #tpu.memory_space<vmem>>, vector<1x96x8xf32>
    %26 = vector.shape_cast %25 : vector<1x96x8xf32> to vector<96x8xf32>
    %27 = vector.shape_cast %24 : vector<96x8xf32> to vector<1x96x8xf32>
    tpu.vector_store %arg9[%c2_22, %c0_23, %c0_24], %27 {strides = array<i32>} : memref<7x96x8xf32, #tpu.memory_space<vmem>>, vector<1x96x8xf32>,
    %c0_25 = arith.constant 0 : index
    %c3 = arith.constant 3 : index
    %c0_26 = arith.constant 0 : index
    %28 = vector.load %arg1[%c0_25, %c3, %c0_26] : memref<32x8x8xf32, #tpu.memory_space<vmem>>, vector<32x1x8xf32>
    %29 = vector.shape_cast %28 : vector<32x1x8xf32> to vector<32x8xf32>
    %cst_27 = arith.constant dense<0.000000e+00> : vector<96x8xf32>
    %30 = tpu.matmul %0, %29, %cst_27 {dimension_numbers = #tpu.dot_dimension_numbers<[1], [0], [0], [1], [0, 0, 1, 1], [], []>} : vector<96x32xf32>, vector<32x8xf32>, vector<96x8xf32> -> vector<96x8xf32>
    %31 = vector.broadcast %2 : vector<96x1xf32> to vector<96x8xf32>
    %32 = arith.addf %30, %31 : vector<96x8xf32>
    %c3_28 = arith.constant 3 : index
    %c0_29 = arith.constant 0 : index
    %c0_30 = arith.constant 0 : index
    %33 = vector.load %arg9[%c3_28, %c0_29, %c0_30] : memref<7x96x8xf32, #tpu.memory_space<vmem>>, vector<1x96x8xf32>
    %34 = vector.shape_cast %33 : vector<1x96x8xf32> to vector<96x8xf32>
    %35 = vector.shape_cast %32 : vector<96x8xf32> to vector<1x96x8xf32>
    tpu.vector_store %arg9[%c3_28, %c0_29, %c0_30], %35 {strides = array<i32>} : memref<7x96x8xf32, #tpu.memory_space<vmem>>, vector<1x96x8xf32>,
    %c0_31 = arith.constant 0 : index
    %c4 = arith.constant 4 : index
    %c0_32 = arith.constant 0 : index
    %36 = vector.load %arg1[%c0_31, %c4, %c0_32] : memref<32x8x8xf32, #tpu.memory_space<vmem>>, vector<32x1x8xf32>
    %37 = vector.shape_cast %36 : vector<32x1x8xf32> to vector<32x8xf32>
    %cst_33 = arith.constant dense<0.000000e+00> : vector<96x8xf32>
    %38 = tpu.matmul %0, %37, %cst_33 {dimension_numbers = #tpu.dot_dimension_numbers<[1], [0], [0], [1], [0, 0, 1, 1], [], []>} : vector<96x32xf32>, vector<32x8xf32>, vector<96x8xf32> -> vector<96x8xf32>
    %39 = vector.broadcast %2 : vector<96x1xf32> to vector<96x8xf32>
    %40 = arith.addf %38, %39 : vector<96x8xf32>
    %c4_34 = arith.constant 4 : index
    %c0_35 = arith.constant 0 : index
    %c0_36 = arith.constant 0 : index
    %41 = vector.load %arg9[%c4_34, %c0_35, %c0_36] : memref<7x96x8xf32, #tpu.memory_space<vmem>>, vector<1x96x8xf32>
    %42 = vector.shape_cast %41 : vector<1x96x8xf32> to vector<96x8xf32>
    %43 = vector.shape_cast %40 : vector<96x8xf32> to vector<1x96x8xf32>
    tpu.vector_store %arg9[%c4_34, %c0_35, %c0_36], %43 {strides = array<i32>} : memref<7x96x8xf32, #tpu.memory_space<vmem>>, vector<1x96x8xf32>,
    %c0_37 = arith.constant 0 : index
    %c5 = arith.constant 5 : index
    %c0_38 = arith.constant 0 : index
    %44 = vector.load %arg1[%c0_37, %c5, %c0_38] : memref<32x8x8xf32, #tpu.memory_space<vmem>>, vector<32x1x8xf32>
    %45 = vector.shape_cast %44 : vector<32x1x8xf32> to vector<32x8xf32>
    %cst_39 = arith.constant dense<0.000000e+00> : vector<96x8xf32>
    %46 = tpu.matmul %0, %45, %cst_39 {dimension_numbers = #tpu.dot_dimension_numbers<[1], [0], [0], [1], [0, 0, 1, 1], [], []>} : vector<96x32xf32>, vector<32x8xf32>, vector<96x8xf32> -> vector<96x8xf32>
    %47 = vector.broadcast %2 : vector<96x1xf32> to vector<96x8xf32>
    %48 = arith.addf %46, %47 : vector<96x8xf32>
    %c5_40 = arith.constant 5 : index
    %c0_41 = arith.constant 0 : index
    %c0_42 = arith.constant 0 : index
    %49 = vector.load %arg9[%c5_40, %c0_41, %c0_42] : memref<7x96x8xf32, #tpu.memory_space<vmem>>, vector<1x96x8xf32>
    %50 = vector.shape_cast %49 : vector<1x96x8xf32> to vector<96x8xf32>
    %51 = vector.shape_cast %48 : vector<96x8xf32> to vector<1x96x8xf32>
    tpu.vector_store %arg9[%c5_40, %c0_41, %c0_42], %51 {strides = array<i32>} : memref<7x96x8xf32, #tpu.memory_space<vmem>>, vector<1x96x8xf32>,
    %c0_43 = arith.constant 0 : index
    %c6 = arith.constant 6 : index
    %c0_44 = arith.constant 0 : index
    %52 = vector.load %arg1[%c0_43, %c6, %c0_44] : memref<32x8x8xf32, #tpu.memory_space<vmem>>, vector<32x1x8xf32>
    %53 = vector.shape_cast %52 : vector<32x1x8xf32> to vector<32x8xf32>
    %cst_45 = arith.constant dense<0.000000e+00> : vector<96x8xf32>
    %54 = tpu.matmul %0, %53, %cst_45 {dimension_numbers = #tpu.dot_dimension_numbers<[1], [0], [0], [1], [0, 0, 1, 1], [], []>} : vector<96x32xf32>, vector<32x8xf32>, vector<96x8xf32> -> vector<96x8xf32>
    %55 = vector.broadcast %2 : vector<96x1xf32> to vector<96x8xf32>
    %56 = arith.addf %54, %55 : vector<96x8xf32>
    %c6_46 = arith.constant 6 : index
    %c0_47 = arith.constant 0 : index
    %c0_48 = arith.constant 0 : index
    %57 = vector.load %arg9[%c6_46, %c0_47, %c0_48] : memref<7x96x8xf32, #tpu.memory_space<vmem>>, vector<1x96x8xf32>
    %58 = vector.shape_cast %57 : vector<1x96x8xf32> to vector<96x8xf32>
    %59 = vector.shape_cast %56 : vector<96x8xf32> to vector<1x96x8xf32>
    tpu.vector_store %arg9[%c6_46, %c0_47, %c0_48], %59 {strides = array<i32>} : memref<7x96x8xf32, #tpu.memory_space<vmem>>, vector<1x96x8xf32>,
    %c0_49 = arith.constant 0 : index
    %c7 = arith.constant 7 : index
    %c0_50 = arith.constant 0 : index
    %60 = vector.load %arg1[%c0_49, %c7, %c0_50] : memref<32x8x8xf32, #tpu.memory_space<vmem>>, vector<32x1x8xf32>
    %61 = vector.shape_cast %60 : vector<32x1x8xf32> to vector<32x8xf32>
    %c0_i32 = arith.constant 0 : i32
    %62 = arith.index_cast %c0_i32 : i32 to index
    %c0_51 = arith.constant 0 : index
    %c0_52 = arith.constant 0 : index
    %63 = vector.load %arg9[%62, %c0_51, %c0_52] : memref<7x96x8xf32, #tpu.memory_space<vmem>>, vector<1x96x8xf32>
    %64 = vector.shape_cast %63 : vector<1x96x8xf32> to vector<96x8xf32>
    %cst_53 = arith.constant dense<0.000000e+00> : vector<96x8xf32>
    %65 = tpu.matmul %1, %61, %cst_53 {dimension_numbers = #tpu.dot_dimension_numbers<[1], [0], [0], [1], [0, 0, 1, 1], [], []>} : vector<96x32xf32>, vector<32x8xf32>, vector<96x8xf32> -> vector<96x8xf32>
    %66 = vector.extract_strided_slice %64 {offsets = [0, 0], sizes = [32, 8], strides = [1, 1]} : vector<96x8xf32> to vector<32x8xf32>
    %67 = vector.extract_strided_slice %65 {offsets = [0, 0], sizes = [32, 8], strides = [1, 1]} : vector<96x8xf32> to vector<32x8xf32>
    %68 = arith.addf %66, %67 : vector<32x8xf32>
    %69 = arith.negf %68 : vector<32x8xf32>
    %70 = math.exp %69 : vector<32x8xf32>
    %cst_54 = arith.constant 1.000000e+00 : f32
    %71 = vector.broadcast %cst_54 : f32 to vector<32x8xf32>
    %72 = arith.addf %71, %70 : vector<32x8xf32>
    %73 = arith.divf %71, %72 : vector<32x8xf32>
    %74 = vector.extract_strided_slice %64 {offsets = [32, 0], sizes = [32, 8], strides = [1, 1]} : vector<96x8xf32> to vector<32x8xf32>
    %75 = vector.extract_strided_slice %65 {offsets = [32, 0], sizes = [32, 8], strides = [1, 1]} : vector<96x8xf32> to vector<32x8xf32>
    %76 = arith.addf %74, %75 : vector<32x8xf32>
    %77 = arith.negf %76 : vector<32x8xf32>
    %78 = math.exp %77 : vector<32x8xf32>
    %cst_55 = arith.constant 1.000000e+00 : f32
    %79 = vector.broadcast %cst_55 : f32 to vector<32x8xf32>
    %80 = arith.addf %79, %78 : vector<32x8xf32>
    %81 = arith.divf %79, %80 : vector<32x8xf32>
    %82 = vector.extract_strided_slice %64 {offsets = [64, 0], sizes = [32, 8], strides = [1, 1]} : vector<96x8xf32> to vector<32x8xf32>
    %83 = vector.extract_strided_slice %65 {offsets = [64, 0], sizes = [32, 8], strides = [1, 1]} : vector<96x8xf32> to vector<32x8xf32>
    %84 = vector.broadcast %3 : vector<32x1xf32> to vector<32x8xf32>
    %85 = arith.addf %83, %84 : vector<32x8xf32>
    %86 = arith.mulf %73, %85 : vector<32x8xf32>
    %87 = arith.addf %82, %86 : vector<32x8xf32>
    %88 = math.tanh %87 : vector<32x8xf32>
    %cst_56 = arith.constant 1.000000e+00 : f32
    %89 = vector.broadcast %cst_56 : f32 to vector<32x8xf32>
    %90 = arith.subf %89, %81 : vector<32x8xf32>
    %91 = arith.mulf %90, %88 : vector<32x8xf32>
    %92 = arith.mulf %81, %61 : vector<32x8xf32>
    %93 = arith.addf %91, %92 : vector<32x8xf32>
    %c1_i32 = arith.constant 1 : i32
    %94 = arith.index_cast %c1_i32 : i32 to index
    %c0_57 = arith.constant 0 : index
    %c0_58 = arith.constant 0 : index
    %95 = vector.load %arg9[%94, %c0_57, %c0_58] : memref<7x96x8xf32, #tpu.memory_space<vmem>>, vector<1x96x8xf32>
    %96 = vector.shape_cast %95 : vector<1x96x8xf32> to vector<96x8xf32>
    %cst_59 = arith.constant dense<0.000000e+00> : vector<96x8xf32>
    %97 = tpu.matmul %1, %93, %cst_59 {dimension_numbers = #tpu.dot_dimension_numbers<[1], [0], [0], [1], [0, 0, 1, 1], [], []>} : vector<96x32xf32>, vector<32x8xf32>, vector<96x8xf32> -> vector<96x8xf32>
    %98 = vector.extract_strided_slice %96 {offsets = [0, 0], sizes = [32, 8], strides = [1, 1]} : vector<96x8xf32> to vector<32x8xf32>
    %99 = vector.extract_strided_slice %97 {offsets = [0, 0], sizes = [32, 8], strides = [1, 1]} : vector<96x8xf32> to vector<32x8xf32>
    %100 = arith.addf %98, %99 : vector<32x8xf32>
    %101 = arith.negf %100 : vector<32x8xf32>
    %102 = math.exp %101 : vector<32x8xf32>
    %cst_60 = arith.constant 1.000000e+00 : f32
    %103 = vector.broadcast %cst_60 : f32 to vector<32x8xf32>
    %104 = arith.addf %103, %102 : vector<32x8xf32>
    %105 = arith.divf %103, %104 : vector<32x8xf32>
    %106 = vector.extract_strided_slice %96 {offsets = [32, 0], sizes = [32, 8], strides = [1, 1]} : vector<96x8xf32> to vector<32x8xf32>
    %107 = vector.extract_strided_slice %97 {offsets = [32, 0], sizes = [32, 8], strides = [1, 1]} : vector<96x8xf32> to vector<32x8xf32>
    %108 = arith.addf %106, %107 : vector<32x8xf32>
    %109 = arith.negf %108 : vector<32x8xf32>
    %110 = math.exp %109 : vector<32x8xf32>
    %cst_61 = arith.constant 1.000000e+00 : f32
    %111 = vector.broadcast %cst_61 : f32 to vector<32x8xf32>
    %112 = arith.addf %111, %110 : vector<32x8xf32>
    %113 = arith.divf %111, %112 : vector<32x8xf32>
    %114 = vector.extract_strided_slice %96 {offsets = [64, 0], sizes = [32, 8], strides = [1, 1]} : vector<96x8xf32> to vector<32x8xf32>
    %115 = vector.extract_strided_slice %97 {offsets = [64, 0], sizes = [32, 8], strides = [1, 1]} : vector<96x8xf32> to vector<32x8xf32>
    %116 = vector.broadcast %3 : vector<32x1xf32> to vector<32x8xf32>
    %117 = arith.addf %115, %116 : vector<32x8xf32>
    %118 = arith.mulf %105, %117 : vector<32x8xf32>
    %119 = arith.addf %114, %118 : vector<32x8xf32>
    %120 = math.tanh %119 : vector<32x8xf32>
    %cst_62 = arith.constant 1.000000e+00 : f32
    %121 = vector.broadcast %cst_62 : f32 to vector<32x8xf32>
    %122 = arith.subf %121, %113 : vector<32x8xf32>
    %123 = arith.mulf %122, %120 : vector<32x8xf32>
    %124 = arith.mulf %113, %93 : vector<32x8xf32>
    %125 = arith.addf %123, %124 : vector<32x8xf32>
    %c2_i32 = arith.constant 2 : i32
    %126 = arith.index_cast %c2_i32 : i32 to index
    %c0_63 = arith.constant 0 : index
    %c0_64 = arith.constant 0 : index
    %127 = vector.load %arg9[%126, %c0_63, %c0_64] : memref<7x96x8xf32, #tpu.memory_space<vmem>>, vector<1x96x8xf32>
    %128 = vector.shape_cast %127 : vector<1x96x8xf32> to vector<96x8xf32>
    %cst_65 = arith.constant dense<0.000000e+00> : vector<96x8xf32>
    %129 = tpu.matmul %1, %125, %cst_65 {dimension_numbers = #tpu.dot_dimension_numbers<[1], [0], [0], [1], [0, 0, 1, 1], [], []>} : vector<96x32xf32>, vector<32x8xf32>, vector<96x8xf32> -> vector<96x8xf32>
    %130 = vector.extract_strided_slice %128 {offsets = [0, 0], sizes = [32, 8], strides = [1, 1]} : vector<96x8xf32> to vector<32x8xf32>
    %131 = vector.extract_strided_slice %129 {offsets = [0, 0], sizes = [32, 8], strides = [1, 1]} : vector<96x8xf32> to vector<32x8xf32>
    %132 = arith.addf %130, %131 : vector<32x8xf32>
    %133 = arith.negf %132 : vector<32x8xf32>
    %134 = math.exp %133 : vector<32x8xf32>
    %cst_66 = arith.constant 1.000000e+00 : f32
    %135 = vector.broadcast %cst_66 : f32 to vector<32x8xf32>
    %136 = arith.addf %135, %134 : vector<32x8xf32>
    %137 = arith.divf %135, %136 : vector<32x8xf32>
    %138 = vector.extract_strided_slice %128 {offsets = [32, 0], sizes = [32, 8], strides = [1, 1]} : vector<96x8xf32> to vector<32x8xf32>
    %139 = vector.extract_strided_slice %129 {offsets = [32, 0], sizes = [32, 8], strides = [1, 1]} : vector<96x8xf32> to vector<32x8xf32>
    %140 = arith.addf %138, %139 : vector<32x8xf32>
    %141 = arith.negf %140 : vector<32x8xf32>
    %142 = math.exp %141 : vector<32x8xf32>
    %cst_67 = arith.constant 1.000000e+00 : f32
    %143 = vector.broadcast %cst_67 : f32 to vector<32x8xf32>
    %144 = arith.addf %143, %142 : vector<32x8xf32>
    %145 = arith.divf %143, %144 : vector<32x8xf32>
    %146 = vector.extract_strided_slice %128 {offsets = [64, 0], sizes = [32, 8], strides = [1, 1]} : vector<96x8xf32> to vector<32x8xf32>
    %147 = vector.extract_strided_slice %129 {offsets = [64, 0], sizes = [32, 8], strides = [1, 1]} : vector<96x8xf32> to vector<32x8xf32>
    %148 = vector.broadcast %3 : vector<32x1xf32> to vector<32x8xf32>
    %149 = arith.addf %147, %148 : vector<32x8xf32>
    %150 = arith.mulf %137, %149 : vector<32x8xf32>
    %151 = arith.addf %146, %150 : vector<32x8xf32>
    %152 = math.tanh %151 : vector<32x8xf32>
    %cst_68 = arith.constant 1.000000e+00 : f32
    %153 = vector.broadcast %cst_68 : f32 to vector<32x8xf32>
    %154 = arith.subf %153, %145 : vector<32x8xf32>
    %155 = arith.mulf %154, %152 : vector<32x8xf32>
    %156 = arith.mulf %145, %125 : vector<32x8xf32>
    %157 = arith.addf %155, %156 : vector<32x8xf32>
    %c3_i32 = arith.constant 3 : i32
    %158 = arith.index_cast %c3_i32 : i32 to index
    %c0_69 = arith.constant 0 : index
    %c0_70 = arith.constant 0 : index
    %159 = vector.load %arg9[%158, %c0_69, %c0_70] : memref<7x96x8xf32, #tpu.memory_space<vmem>>, vector<1x96x8xf32>
    %160 = vector.shape_cast %159 : vector<1x96x8xf32> to vector<96x8xf32>
    %cst_71 = arith.constant dense<0.000000e+00> : vector<96x8xf32>
    %161 = tpu.matmul %1, %157, %cst_71 {dimension_numbers = #tpu.dot_dimension_numbers<[1], [0], [0], [1], [0, 0, 1, 1], [], []>} : vector<96x32xf32>, vector<32x8xf32>, vector<96x8xf32> -> vector<96x8xf32>
    %162 = vector.extract_strided_slice %160 {offsets = [0, 0], sizes = [32, 8], strides = [1, 1]} : vector<96x8xf32> to vector<32x8xf32>
    %163 = vector.extract_strided_slice %161 {offsets = [0, 0], sizes = [32, 8], strides = [1, 1]} : vector<96x8xf32> to vector<32x8xf32>
    %164 = arith.addf %162, %163 : vector<32x8xf32>
    %165 = arith.negf %164 : vector<32x8xf32>
    %166 = math.exp %165 : vector<32x8xf32>
    %cst_72 = arith.constant 1.000000e+00 : f32
    %167 = vector.broadcast %cst_72 : f32 to vector<32x8xf32>
    %168 = arith.addf %167, %166 : vector<32x8xf32>
    %169 = arith.divf %167, %168 : vector<32x8xf32>
    %170 = vector.extract_strided_slice %160 {offsets = [32, 0], sizes = [32, 8], strides = [1, 1]} : vector<96x8xf32> to vector<32x8xf32>
    %171 = vector.extract_strided_slice %161 {offsets = [32, 0], sizes = [32, 8], strides = [1, 1]} : vector<96x8xf32> to vector<32x8xf32>
    %172 = arith.addf %170, %171 : vector<32x8xf32>
    %173 = arith.negf %172 : vector<32x8xf32>
    %174 = math.exp %173 : vector<32x8xf32>
    %cst_73 = arith.constant 1.000000e+00 : f32
    %175 = vector.broadcast %cst_73 : f32 to vector<32x8xf32>
    %176 = arith.addf %175, %174 : vector<32x8xf32>
    %177 = arith.divf %175, %176 : vector<32x8xf32>
    %178 = vector.extract_strided_slice %160 {offsets = [64, 0], sizes = [32, 8], strides = [1, 1]} : vector<96x8xf32> to vector<32x8xf32>
    %179 = vector.extract_strided_slice %161 {offsets = [64, 0], sizes = [32, 8], strides = [1, 1]} : vector<96x8xf32> to vector<32x8xf32>
    %180 = vector.broadcast %3 : vector<32x1xf32> to vector<32x8xf32>
    %181 = arith.addf %179, %180 : vector<32x8xf32>
    %182 = arith.mulf %169, %181 : vector<32x8xf32>
    %183 = arith.addf %178, %182 : vector<32x8xf32>
    %184 = math.tanh %183 : vector<32x8xf32>
    %cst_74 = arith.constant 1.000000e+00 : f32
    %185 = vector.broadcast %cst_74 : f32 to vector<32x8xf32>
    %186 = arith.subf %185, %177 : vector<32x8xf32>
    %187 = arith.mulf %186, %184 : vector<32x8xf32>
    %188 = arith.mulf %177, %157 : vector<32x8xf32>
    %189 = arith.addf %187, %188 : vector<32x8xf32>
    %c4_i32 = arith.constant 4 : i32
    %190 = arith.index_cast %c4_i32 : i32 to index
    %c0_75 = arith.constant 0 : index
    %c0_76 = arith.constant 0 : index
    %191 = vector.load %arg9[%190, %c0_75, %c0_76] : memref<7x96x8xf32, #tpu.memory_space<vmem>>, vector<1x96x8xf32>
    %192 = vector.shape_cast %191 : vector<1x96x8xf32> to vector<96x8xf32>
    %cst_77 = arith.constant dense<0.000000e+00> : vector<96x8xf32>
    %193 = tpu.matmul %1, %189, %cst_77 {dimension_numbers = #tpu.dot_dimension_numbers<[1], [0], [0], [1], [0, 0, 1, 1], [], []>} : vector<96x32xf32>, vector<32x8xf32>, vector<96x8xf32> -> vector<96x8xf32>
    %194 = vector.extract_strided_slice %192 {offsets = [0, 0], sizes = [32, 8], strides = [1, 1]} : vector<96x8xf32> to vector<32x8xf32>
    %195 = vector.extract_strided_slice %193 {offsets = [0, 0], sizes = [32, 8], strides = [1, 1]} : vector<96x8xf32> to vector<32x8xf32>
    %196 = arith.addf %194, %195 : vector<32x8xf32>
    %197 = arith.negf %196 : vector<32x8xf32>
    %198 = math.exp %197 : vector<32x8xf32>
    %cst_78 = arith.constant 1.000000e+00 : f32
    %199 = vector.broadcast %cst_78 : f32 to vector<32x8xf32>
    %200 = arith.addf %199, %198 : vector<32x8xf32>
    %201 = arith.divf %199, %200 : vector<32x8xf32>
    %202 = vector.extract_strided_slice %192 {offsets = [32, 0], sizes = [32, 8], strides = [1, 1]} : vector<96x8xf32> to vector<32x8xf32>
    %203 = vector.extract_strided_slice %193 {offsets = [32, 0], sizes = [32, 8], strides = [1, 1]} : vector<96x8xf32> to vector<32x8xf32>
    %204 = arith.addf %202, %203 : vector<32x8xf32>
    %205 = arith.negf %204 : vector<32x8xf32>
    %206 = math.exp %205 : vector<32x8xf32>
    %cst_79 = arith.constant 1.000000e+00 : f32
    %207 = vector.broadcast %cst_79 : f32 to vector<32x8xf32>
    %208 = arith.addf %207, %206 : vector<32x8xf32>
    %209 = arith.divf %207, %208 : vector<32x8xf32>
    %210 = vector.extract_strided_slice %192 {offsets = [64, 0], sizes = [32, 8], strides = [1, 1]} : vector<96x8xf32> to vector<32x8xf32>
    %211 = vector.extract_strided_slice %193 {offsets = [64, 0], sizes = [32, 8], strides = [1, 1]} : vector<96x8xf32> to vector<32x8xf32>
    %212 = vector.broadcast %3 : vector<32x1xf32> to vector<32x8xf32>
    %213 = arith.addf %211, %212 : vector<32x8xf32>
    %214 = arith.mulf %201, %213 : vector<32x8xf32>
    %215 = arith.addf %210, %214 : vector<32x8xf32>
    %216 = math.tanh %215 : vector<32x8xf32>
    %cst_80 = arith.constant 1.000000e+00 : f32
    %217 = vector.broadcast %cst_80 : f32 to vector<32x8xf32>
    %218 = arith.subf %217, %209 : vector<32x8xf32>
    %219 = arith.mulf %218, %216 : vector<32x8xf32>
    %220 = arith.mulf %209, %189 : vector<32x8xf32>
    %221 = arith.addf %219, %220 : vector<32x8xf32>
    %c5_i32 = arith.constant 5 : i32
    %222 = arith.index_cast %c5_i32 : i32 to index
    %c0_81 = arith.constant 0 : index
    %c0_82 = arith.constant 0 : index
    %223 = vector.load %arg9[%222, %c0_81, %c0_82] : memref<7x96x8xf32, #tpu.memory_space<vmem>>, vector<1x96x8xf32>
    %224 = vector.shape_cast %223 : vector<1x96x8xf32> to vector<96x8xf32>
    %cst_83 = arith.constant dense<0.000000e+00> : vector<96x8xf32>
    %225 = tpu.matmul %1, %221, %cst_83 {dimension_numbers = #tpu.dot_dimension_numbers<[1], [0], [0], [1], [0, 0, 1, 1], [], []>} : vector<96x32xf32>, vector<32x8xf32>, vector<96x8xf32> -> vector<96x8xf32>
    %226 = vector.extract_strided_slice %224 {offsets = [0, 0], sizes = [32, 8], strides = [1, 1]} : vector<96x8xf32> to vector<32x8xf32>
    %227 = vector.extract_strided_slice %225 {offsets = [0, 0], sizes = [32, 8], strides = [1, 1]} : vector<96x8xf32> to vector<32x8xf32>
    %228 = arith.addf %226, %227 : vector<32x8xf32>
    %229 = arith.negf %228 : vector<32x8xf32>
    %230 = math.exp %229 : vector<32x8xf32>
    %cst_84 = arith.constant 1.000000e+00 : f32
    %231 = vector.broadcast %cst_84 : f32 to vector<32x8xf32>
    %232 = arith.addf %231, %230 : vector<32x8xf32>
    %233 = arith.divf %231, %232 : vector<32x8xf32>
    %234 = vector.extract_strided_slice %224 {offsets = [32, 0], sizes = [32, 8], strides = [1, 1]} : vector<96x8xf32> to vector<32x8xf32>
    %235 = vector.extract_strided_slice %225 {offsets = [32, 0], sizes = [32, 8], strides = [1, 1]} : vector<96x8xf32> to vector<32x8xf32>
    %236 = arith.addf %234, %235 : vector<32x8xf32>
    %237 = arith.negf %236 : vector<32x8xf32>
    %238 = math.exp %237 : vector<32x8xf32>
    %cst_85 = arith.constant 1.000000e+00 : f32
    %239 = vector.broadcast %cst_85 : f32 to vector<32x8xf32>
    %240 = arith.addf %239, %238 : vector<32x8xf32>
    %241 = arith.divf %239, %240 : vector<32x8xf32>
    %242 = vector.extract_strided_slice %224 {offsets = [64, 0], sizes = [32, 8], strides = [1, 1]} : vector<96x8xf32> to vector<32x8xf32>
    %243 = vector.extract_strided_slice %225 {offsets = [64, 0], sizes = [32, 8], strides = [1, 1]} : vector<96x8xf32> to vector<32x8xf32>
    %244 = vector.broadcast %3 : vector<32x1xf32> to vector<32x8xf32>
    %245 = arith.addf %243, %244 : vector<32x8xf32>
    %246 = arith.mulf %233, %245 : vector<32x8xf32>
    %247 = arith.addf %242, %246 : vector<32x8xf32>
    %248 = math.tanh %247 : vector<32x8xf32>
    %cst_86 = arith.constant 1.000000e+00 : f32
    %249 = vector.broadcast %cst_86 : f32 to vector<32x8xf32>
    %250 = arith.subf %249, %241 : vector<32x8xf32>
    %251 = arith.mulf %250, %248 : vector<32x8xf32>
    %252 = arith.mulf %241, %221 : vector<32x8xf32>
    %253 = arith.addf %251, %252 : vector<32x8xf32>
    %c6_i32 = arith.constant 6 : i32
    %254 = arith.index_cast %c6_i32 : i32 to index
    %c0_87 = arith.constant 0 : index
    %c0_88 = arith.constant 0 : index
    %255 = vector.load %arg9[%254, %c0_87, %c0_88] : memref<7x96x8xf32, #tpu.memory_space<vmem>>, vector<1x96x8xf32>
    %256 = vector.shape_cast %255 : vector<1x96x8xf32> to vector<96x8xf32>
    %cst_89 = arith.constant dense<0.000000e+00> : vector<96x8xf32>
    %257 = tpu.matmul %1, %253, %cst_89 {dimension_numbers = #tpu.dot_dimension_numbers<[1], [0], [0], [1], [0, 0, 1, 1], [], []>} : vector<96x32xf32>, vector<32x8xf32>, vector<96x8xf32> -> vector<96x8xf32>
    %258 = vector.extract_strided_slice %256 {offsets = [0, 0], sizes = [32, 8], strides = [1, 1]} : vector<96x8xf32> to vector<32x8xf32>
    %259 = vector.extract_strided_slice %257 {offsets = [0, 0], sizes = [32, 8], strides = [1, 1]} : vector<96x8xf32> to vector<32x8xf32>
    %260 = arith.addf %258, %259 : vector<32x8xf32>
    %261 = arith.negf %260 : vector<32x8xf32>
    %262 = math.exp %261 : vector<32x8xf32>
    %cst_90 = arith.constant 1.000000e+00 : f32
    %263 = vector.broadcast %cst_90 : f32 to vector<32x8xf32>
    %264 = arith.addf %263, %262 : vector<32x8xf32>
    %265 = arith.divf %263, %264 : vector<32x8xf32>
    %266 = vector.extract_strided_slice %256 {offsets = [32, 0], sizes = [32, 8], strides = [1, 1]} : vector<96x8xf32> to vector<32x8xf32>
    %267 = vector.extract_strided_slice %257 {offsets = [32, 0], sizes = [32, 8], strides = [1, 1]} : vector<96x8xf32> to vector<32x8xf32>
    %268 = arith.addf %266, %267 : vector<32x8xf32>
    %269 = arith.negf %268 : vector<32x8xf32>
    %270 = math.exp %269 : vector<32x8xf32>
    %cst_91 = arith.constant 1.000000e+00 : f32
    %271 = vector.broadcast %cst_91 : f32 to vector<32x8xf32>
    %272 = arith.addf %271, %270 : vector<32x8xf32>
    %273 = arith.divf %271, %272 : vector<32x8xf32>
    %274 = vector.extract_strided_slice %256 {offsets = [64, 0], sizes = [32, 8], strides = [1, 1]} : vector<96x8xf32> to vector<32x8xf32>
    %275 = vector.extract_strided_slice %257 {offsets = [64, 0], sizes = [32, 8], strides = [1, 1]} : vector<96x8xf32> to vector<32x8xf32>
    %276 = vector.broadcast %3 : vector<32x1xf32> to vector<32x8xf32>
    %277 = arith.addf %275, %276 : vector<32x8xf32>
    %278 = arith.mulf %265, %277 : vector<32x8xf32>
    %279 = arith.addf %274, %278 : vector<32x8xf32>
    %280 = math.tanh %279 : vector<32x8xf32>
    %cst_92 = arith.constant 1.000000e+00 : f32
    %281 = vector.broadcast %cst_92 : f32 to vector<32x8xf32>
    %282 = arith.subf %281, %273 : vector<32x8xf32>
    %283 = arith.mulf %282, %280 : vector<32x8xf32>
    %284 = arith.mulf %273, %253 : vector<32x8xf32>
    %285 = arith.addf %283, %284 : vector<32x8xf32>
    %c7_i32 = arith.constant 7 : i32
    %cst_93 = arith.constant dense<0.000000e+00> : vector<8xf32>
    %286 = vector.multi_reduction <add>, %285, %cst_93 [0] : vector<32x8xf32> to vector<8xf32>
    %287 = vector.shape_cast %286 : vector<8xf32> to vector<1x8xf32>
    %cst_94 = arith.constant 3.200000e+01 : f32
    %288 = vector.broadcast %cst_94 : f32 to vector<1x8xf32>
    %289 = arith.divf %287, %288 : vector<1x8xf32>
    %290 = vector.broadcast %289 : vector<1x8xf32> to vector<32x8xf32>
    %291 = arith.subf %285, %290 : vector<32x8xf32>
    %292 = arith.mulf %291, %291 : vector<32x8xf32>
    %cst_95 = arith.constant dense<0.000000e+00> : vector<8xf32>
    %293 = vector.multi_reduction <add>, %292, %cst_95 [0] : vector<32x8xf32> to vector<8xf32>
    %294 = vector.shape_cast %293 : vector<8xf32> to vector<1x8xf32>
    %cst_96 = arith.constant 3.200000e+01 : f32
    %295 = vector.broadcast %cst_96 : f32 to vector<1x8xf32>
    %296 = arith.divf %294, %295 : vector<1x8xf32>
    %297 = vector.broadcast %289 : vector<1x8xf32> to vector<32x8xf32>
    %298 = arith.subf %285, %297 : vector<32x8xf32>
    %cst_97 = arith.constant 9.99999974E-6 : f32
    %299 = vector.broadcast %cst_97 : f32 to vector<1x8xf32>
    %300 = arith.addf %296, %299 : vector<1x8xf32>
    %301 = math.rsqrt %300 : vector<1x8xf32>
    %302 = vector.broadcast %301 : vector<1x8xf32> to vector<32x8xf32>
    %303 = arith.mulf %298, %302 : vector<32x8xf32>
    %c0_98 = arith.constant 0 : index
    %c0_99 = arith.constant 0 : index
    %304 = vector.load %arg6[%c0_98, %c0_99] : memref<32x1xf32, #tpu.memory_space<vmem>>, vector<32x1xf32>
    %305 = vector.broadcast %304 : vector<32x1xf32> to vector<32x8xf32>
    %306 = arith.mulf %303, %305 : vector<32x8xf32>
    %c0_100 = arith.constant 0 : index
    %c0_101 = arith.constant 0 : index
    %307 = vector.load %arg7[%c0_100, %c0_101] : memref<32x1xf32, #tpu.memory_space<vmem>>, vector<32x1xf32>
    %308 = vector.broadcast %307 : vector<32x1xf32> to vector<32x8xf32>
    %309 = arith.addf %306, %308 : vector<32x8xf32>
    %c0_102 = arith.constant 0 : index
    %c0_103 = arith.constant 0 : index
    %310 = vector.load %arg8[%c0_102, %c0_103] : memref<32x8xf32, #tpu.memory_space<vmem>>, vector<32x8xf32>
    tpu.vector_store %arg8[%c0_102, %c0_103], %309 {strides = array<i32>} : memref<32x8xf32, #tpu.memory_space<vmem>>, vector<32x8xf32>,
    return
  }
  func.func @transform_0(%arg0: i32) -> (i32, i32, i32) {
    %c0_i32 = arith.constant 0 : i32
    %c0_i32_0 = arith.constant 0 : i32
    %c0_i32_1 = arith.constant 0 : i32
    return %c0_i32, %c0_i32_0, %arg0 : i32, i32, i32
  }
  func.func @transform_1(%arg0: i32) -> (i32, i32) {
    %c0_i32 = arith.constant 0 : i32
    %c0_i32_0 = arith.constant 0 : i32
    %c0_i32_1 = arith.constant 0 : i32
    return %c0_i32, %c0_i32_0 : i32, i32
  }
  func.func @transform_2(%arg0: i32) -> (i32, i32) {
    %c0_i32 = arith.constant 0 : i32
    %c0_i32_0 = arith.constant 0 : i32
    %c0_i32_1 = arith.constant 0 : i32
    return %c0_i32, %c0_i32_0 : i32, i32
  }
  func.func @transform_3(%arg0: i32) -> (i32, i32) {
    %c0_i32 = arith.constant 0 : i32
    %c0_i32_0 = arith.constant 0 : i32
    %c0_i32_1 = arith.constant 0 : i32
    return %c0_i32, %c0_i32_0 : i32, i32
  }
  func.func @transform_4(%arg0: i32) -> (i32, i32) {
    %c0_i32 = arith.constant 0 : i32
    %c0_i32_0 = arith.constant 0 : i32
    %c0_i32_1 = arith.constant 0 : i32
    return %c0_i32, %c0_i32_0 : i32, i32
  }
  func.func @transform_5(%arg0: i32) -> (i32, i32) {
    %c0_i32 = arith.constant 0 : i32
    %c0_i32_0 = arith.constant 0 : i32
    %c0_i32_1 = arith.constant 0 : i32
    return %c0_i32, %c0_i32_0 : i32, i32
  }
  func.func @transform_6(%arg0: i32) -> (i32, i32) {
    %c0_i32 = arith.constant 0 : i32
    %c0_i32_0 = arith.constant 0 : i32
    %c0_i32_1 = arith.constant 0 : i32
    return %c0_i32, %c0_i32_0 : i32, i32
  }
  func.func @transform_7(%arg0: i32) -> (i32, i32) {
    %c0_i32 = arith.constant 0 : i32
    %c0_i32_0 = arith.constant 0 : i32
    return %c0_i32, %arg0 : i32, i32
  }
}

</mosaic_0001>

<bundles_post_ra>
// kernel: tpu_custom_call.1
= control target key start
LH: loop header
LB: loop body
LE: loop exit
PB: predicated region body
PF: predicated region fallthrough
CT: control target
= control target key end

     0   :  { %vm191_vm0 = vcmask 1041409   ;;  %vm194_vm1 = vcmask 1042434   ;;  %vm197_vm2 = vcmask 1043459   ;;  %vm200_vm3 = vcmask 1044484   ;;  %s7081_s0 = inlined_call_operand.vmem [shape: f32[32,8,8], index: 0, kind: input, shape index: {}]   ;;  %s7082_s1 = inlined_call_operand.vmem [shape: f32[96,32], index: 1, kind: input, shape index: {}]   ;;  %s7083_s3 = inlined_call_operand.vmem [shape: f32[96,1], index: 3, kind: input, shape index: {}]   ;;  %s7084_s2 = inlined_call_operand.vmem [shape: f32[96,32], index: 2, kind: input, shape index: {}]   ;;  %s7085_s4 = inlined_call_operand.vmem [shape: f32[32,1], index: 4, kind: input, shape index: {}]   ;;  %s7086_s5 = inlined_call_operand.vmem [shape: f32[32,1], index: 5, kind: input, shape index: {}]   ;;  %s7087_s6 = inlined_call_operand.vmem [shape: f32[32,1], index: 6, kind: input, shape index: {}]   ;;  %s7088_s7 = inlined_call_operand.vmem [shape: f32[32,8], index: 7, kind: output, shape index: {}]  }
   0x1   :  { %v90_v0 = vld [vmem:[%s7081_s0 + $0xc0] sm:$0x1]  ;;  %v91_v1 = vld [vmem:[%s7081_s0 + $0xc8] sm:$0x1]  ;;  %v92_v2 = vld [vmem:[%s7081_s0 + $0xd0] sm:$0x1] }
   0x2   :  { %v93_v3 = vld [vmem:[%s7081_s0 + $0xd8] sm:$0x1]  ;;  %v94_v4 = vld [vmem:[%s7081_s0 + $0xe0] sm:$0x1]  ;;  %v95_v5 = vld [vmem:[%s7081_s0 + $0xe8] sm:$0x1] }
   0x3   :  { %v96_v6 = vld [vmem:[%s7081_s0 + $0xf0] sm:$0x1]  ;;  %v97_v7 = vld [vmem:[%s7081_s0 + $0xf8] sm:$0x1]  ;;  %vm203_vm4 = vcmask 1045509   ;;  %vm206_vm5 = vcmask 1046534  }
   0x4   :  { %vm209_vm6 = vcmask 1047559   ;;  %v239_v8 = vrot.slane %v91_v1, 7  ;;  %v241_v9 = vrot.slane %v92_v2, 6  ;;  %v243_v10 = vrot.slane %v93_v3, 5  ;;  %v456_v15 = vld [vmem:[%s7081_s0 + $0xc1] sm:$0x1] }
   0x5   :  { %v245_v11 = vrot.slane %v94_v4, 4  ;;  %v247_v12 = vrot.slane %v95_v5, 3  ;;  %v249_v13 = vrot.slane %v96_v6, 2  ;;  %v251_v14 = vrot.slane %v97_v7, 1  ;;  %v457_v16 = vld [vmem:[%s7081_s0 + $0xc9] sm:$0x1] }
   0x6   :  { %v240_v17 = vsel %vm191_vm0, %v239_v8, %v90_v0  ;;  %v458_v18 = vld [vmem:[%s7081_s0 + $0xd1] sm:$0x1]  ;;  %v459_v19 = vld [vmem:[%s7081_s0 + $0xd9] sm:$0x1]  ;;  %v460_v20 = vld [vmem:[%s7081_s0 + $0xe1] sm:$0x1] }
   0x7   :  { %v242_v21 = vsel %vm194_vm1, %v241_v9, %v240_v17  ;;  %v461_v22 = vld [vmem:[%s7081_s0 + $0xe9] sm:$0x1]  ;;  %v462_v23 = vld [vmem:[%s7081_s0 + $0xf1] sm:$0x1]  ;;  %v463_v24 = vld [vmem:[%s7081_s0 + $0xf9] sm:$0x1] }
   0x8   :  { %v244_v25 = vsel %vm197_vm2, %v243_v10, %v242_v21  ;;  %v538_v26 = vrot.slane %v457_v16, 7  ;;  %v540_v27 = vrot.slane %v458_v18, 6  ;;  %v542_v28 = vrot.slane %v459_v19, 5  ;;  %v82_v29 = vld [vmem:[%s7081_s0 + $0x80] sm:$0x1] }
   0x9   :  { %v246_v30 = vsel %vm200_vm3, %v245_v11, %v244_v25  ;;  %v544_v31 = vrot.slane %v460_v20, 4  ;;  %v546_v32 = vrot.slane %v461_v22, 3  ;;  %v548_v33 = vrot.slane %v462_v23, 2  ;;  %v83_v34 = vld [vmem:[%s7081_s0 + $0x88] sm:$0x1] }
   0xa   :  { %v248_v35 = vsel %vm203_vm4, %v247_v12, %v246_v30  ;;  %v539_v36 = vsel %vm191_vm0, %v538_v26, %v456_v15  ;;  %v550_v37 = vrot.slane %v463_v24, 1  ;;  %v84_v38 = vld [vmem:[%s7081_s0 + $0x90] sm:$0x1]  ;;  %v85_v39 = vld [vmem:[%s7081_s0 + $0x98] sm:$0x1]  ;;  %v225_v40 = vrot.slane %v83_v34, 7 }
   0xb   :  { %v250_v41 = vsel %vm206_vm5, %v249_v13, %v248_v35  ;;  %v541_v42 = vsel %vm194_vm1, %v540_v27, %v539_v36  ;;  %v86_v43 = vld [vmem:[%s7081_s0 + $0xa0] sm:$0x1]  ;;  %v87_v44 = vld [vmem:[%s7081_s0 + $0xa8] sm:$0x1]  ;;  %v88_v45 = vld [vmem:[%s7081_s0 + $0xb0] sm:$0x1] }
   0xc   :  { %v252_v46 = vsel %vm209_vm6, %v251_v14, %v250_v41  ;;  %v543_v47 = vsel %vm197_vm2, %v542_v28, %v541_v42  ;;  %v89_v48 = vld [vmem:[%s7081_s0 + $0xb8] sm:$0x1]  ;;  %v226_v49 = vsel %vm191_vm0, %v225_v40, %v82_v29  ;;  %v227_v50 = vrot.slane %v84_v38, 6  ;;  %v448_v55 = vld [vmem:[%s7081_s0 + $0x81] sm:$0x1] }
   0xd   :  { %4314 = vmatprep.subr.mxu0 %v252_v46  ;;  %v545_v51 = vsel %vm200_vm3, %v544_v31, %v543_v47  ;;  %v229_v52 = vrot.slane %v85_v39, 5  ;;  %v231_v53 = vrot.slane %v86_v43, 4  ;;  %v233_v54 = vrot.slane %v87_v44, 3  ;;  %v449_v56 = vld [vmem:[%s7081_s0 + $0x89] sm:$0x1]  ;;  %v5186_v31 = vld [vmem:[%s7082_s1] sm:$0xff] }
   0xe   :  { %v547_v57 = vsel %vm203_vm4, %v546_v32, %v545_v51  ;;  %4315 = vmatpush3.msra.mxu0 %v252_v46  ;;  %v228_v58 = vsel %vm194_vm1, %v227_v50, %v226_v49  ;;  %v235_v59 = vrot.slane %v88_v45, 2  ;;  %v237_v60 = vrot.slane %v89_v48, 1  ;;  %v450_v61 = vld [vmem:[%s7081_s0 + $0x91] sm:$0x1]  ;;  %v451_v62 = vld [vmem:[%s7081_s0 + $0x99] sm:$0x1] }
   0xf   :  { %v549_v63 = vsel %vm206_vm5, %v548_v33, %v547_v57  ;;  %v230_v0 = vsel %vm197_vm2, %v229_v52, %v228_v58  ;;  %v452_v1 = vld [vmem:[%s7081_s0 + $0xa1] sm:$0x1]  ;;  %v453_v2 = vld [vmem:[%s7081_s0 + $0xa9] sm:$0x1]  ;;  %v454_v3 = vld [vmem:[%s7081_s0 + $0xb1] sm:$0x1] }
  0x10   :  { %v551_v4 = vsel %vm209_vm6, %v550_v37, %v549_v63  ;;  %v232_v5 = vsel %vm200_vm3, %v231_v53, %v230_v0  ;;  %v455_v6 = vld [vmem:[%s7081_s0 + $0xb9] sm:$0x1]  ;;  %v524_v7 = vrot.slane %v449_v56, 7  ;;  %v526_v8 = vrot.slane %v450_v61, 6  ;;  %v74_v13 = vld [vmem:[%s7081_s0 + $0x40] sm:$0x1] }
  0x11   :  { %4340 = vmatprep.subr.mxu1 %v551_v4  ;;  %v234_v9 = vsel %vm203_vm4, %v233_v54, %v232_v5  ;;  %v528_v10 = vrot.slane %v451_v62, 5  ;;  %v530_v11 = vrot.slane %v452_v1, 4  ;;  %v532_v12 = vrot.slane %v453_v2, 3  ;;  %v75_v14 = vld [vmem:[%s7081_s0 + $0x48] sm:$0x1] }
  0x12   :  { %4341 = vmatpush3.msra.mxu1 %v551_v4  ;;  %v236_v15 = vsel %vm206_vm5, %v235_v59, %v234_v9  ;;  %v525_v16 = vsel %vm191_vm0, %v524_v7, %v448_v55  ;;  %v534_v17 = vrot.slane %v454_v3, 2  ;;  %v536_v18 = vrot.slane %v455_v6, 1  ;;  %v76_v19 = vld [vmem:[%s7081_s0 + $0x50] sm:$0x1]  ;;  %v77_v20 = vld [vmem:[%s7081_s0 + $0x58] sm:$0x1] }
  0x13   :  { %v238_v21 = vsel %vm209_vm6, %v237_v60, %v236_v15  ;;  %v527_v22 = vsel %vm194_vm1, %v526_v8, %v525_v16  ;;  %v78_v23 = vld [vmem:[%s7081_s0 + $0x60] sm:$0x1]  ;;  %v79_v24 = vld [vmem:[%s7081_s0 + $0x68] sm:$0x1]  ;;  %v80_v25 = vld [vmem:[%s7081_s0 + $0x70] sm:$0x1] }
  0x14   :  { %4316 = vmatprep.subr.mxu0 %v238_v21  ;;  %v529_v26 = vsel %vm197_vm2, %v528_v10, %v527_v22  ;;  %v81_v27 = vld [vmem:[%s7081_s0 + $0x78] sm:$0x1]  ;;  %v211_v28 = vrot.slane %v75_v14, 7  ;;  %v213_v29 = vrot.slane %v76_v19, 6  ;;  %v215_v30 = vrot.slane %v77_v20, 5 }
  0x15   :  { %v531_v32 = vsel %vm200_vm3, %v530_v11, %v529_v26  ;;  %4317 = vmatpush3.msra.mxu0 %v238_v21  ;;  %v217_v33 = vrot.slane %v78_v23, 4  ;;  %v219_v34 = vrot.slane %v79_v24, 3  ;;  %v221_v35 = vrot.slane %v80_v25, 2  ;;  %v440_v36 = vld [vmem:[%s7081_s0 + $0x41] sm:$0x1] }
  0x16   :  { %v533_v37 = vsel %vm203_vm4, %v532_v12, %v531_v32  ;;  %v212_v38 = vsel %vm191_vm0, %v211_v28, %v74_v13  ;;  %v223_v39 = vrot.slane %v81_v27, 1  ;;  %v441_v40 = vld [vmem:[%s7081_s0 + $0x49] sm:$0x1]  ;;  %v442_v41 = vld [vmem:[%s7081_s0 + $0x51] sm:$0x1]  ;;  %vm257_vm7 = vcmask 261120  }
  0x17   :  { %v535_v42 = vsel %vm206_vm5, %v534_v17, %v533_v37  ;;  %v214_v43 = vsel %vm194_vm1, %v213_v29, %v212_v38  ;;  %v443_v44 = vld [vmem:[%s7081_s0 + $0x59] sm:$0x1]  ;;  %v444_v45 = vld [vmem:[%s7081_s0 + $0x61] sm:$0x1]  ;;  %v445_v46 = vld [vmem:[%s7081_s0 + $0x69] sm:$0x1]  ;;  %4322 = vmatprep.mubr.msk.f32.mxu0 %vm257_vm7, %v5186_v31  ;;  %4348 = vmatprep.mubr.msk.f32.mxu1 %vm257_vm7, %v5186_v31 }
  0x18   :  { %v537_v47 = vsel %vm209_vm6, %v536_v18, %v535_v42  ;;  %v216_v48 = vsel %vm197_vm2, %v215_v30, %v214_v43  ;;  %v446_v49 = vld [vmem:[%s7081_s0 + $0x71] sm:$0x1]  ;;  %v447_v50 = vld [vmem:[%s7081_s0 + $0x79] sm:$0x1]  ;;  %v510_v51 = vrot.slane %v441_v40, 7  ;;  %v512_v52 = vrot.slane %v442_v41, 6 }
  0x19   :  { %4342 = vmatprep.subr.mxu1 %v537_v47  ;;  %v218_v53 = vsel %vm200_vm3, %v217_v33, %v216_v48  ;;  %v514_v54 = vrot.slane %v443_v44, 5  ;;  %v516_v55 = vrot.slane %v444_v45, 4  ;;  %v518_v56 = vrot.slane %v445_v46, 3  ;;  %v66_v57 = vld [vmem:[%s7081_s0] sm:$0x1]  ;;  %v5294_v43 = vld [vmem:[%s7082_s1 + $0x8] sm:$0xff] }
  0x1a   :  { %4343 = vmatpush3.msra.mxu1 %v537_v47  ;;  %v220_v58 = vsel %vm203_vm4, %v219_v34, %v218_v53  ;;  %v511_v59 = vsel %vm191_vm0, %v510_v51, %v440_v36  ;;  %v520_v60 = vrot.slane %v446_v49, 2  ;;  %v522_v61 = vrot.slane %v447_v50, 1  ;;  %v67_v62 = vld [vmem:[%s7081_s0 + $0x8] sm:$0x1]  ;;  %v68_v63 = vld [vmem:[%s7081_s0 + $0x10] sm:$0x1] }
  0x1b   :  { %v222_v0 = vsel %vm206_vm5, %v221_v35, %v220_v58  ;;  %v513_v1 = vsel %vm194_vm1, %v512_v52, %v511_v59  ;;  %v69_v2 = vld [vmem:[%s7081_s0 + $0x18] sm:$0x1]  ;;  %v70_v3 = vld [vmem:[%s7081_s0 + $0x20] sm:$0x1]  ;;  %v71_v4 = vld [vmem:[%s7081_s0 + $0x28] sm:$0x1] }
  0x1c   :  { %v224_v5 = vsel %vm209_vm6, %v223_v39, %v222_v0  ;;  %v515_v6 = vsel %vm197_vm2, %v514_v54, %v513_v1  ;;  %v72_v7 = vld [vmem:[%s7081_s0 + $0x30] sm:$0x1]  ;;  %v73_v8 = vld [vmem:[%s7081_s0 + $0x38] sm:$0x1]  ;;  %v190_v9 = vrot.slane %v67_v62, 7  ;;  %v193_v10 = vrot.slane %v68_v63, 6 }
  0x1d   :  { %4318 = vmatprep.subr.mxu0 %v224_v5  ;;  %v517_v11 = vsel %vm200_vm3, %v516_v55, %v515_v6  ;;  %v196_v12 = vrot.slane %v69_v2, 5  ;;  %v199_v13 = vrot.slane %v70_v3, 4  ;;  %v202_v14 = vrot.slane %v71_v4, 3  ;;  %v432_v15 = vld [vmem:[%s7081_s0 + $0x1] sm:$0x1]  ;;  %v5325_v58 = vld [vmem:[%s7082_s1 + $0x10] sm:$0xff] }
  0x1e   :  { %v519_v16 = vsel %vm203_vm4, %v518_v56, %v517_v11  ;;  %4319 = vmatpush3.msra.mxu0 %v224_v5  ;;  %v192_v17 = vsel %vm191_vm0, %v190_v9, %v66_v57  ;;  %v205_v18 = vrot.slane %v72_v7, 2  ;;  %v208_v19 = vrot.slane %v73_v8, 1  ;;  %v433_v20 = vld [vmem:[%s7081_s0 + $0x9] sm:$0x1]  ;;  %v434_v21 = vld [vmem:[%s7081_s0 + $0x11] sm:$0x1] }
  0x1f   :  { %v521_v22 = vsel %vm206_vm5, %v520_v60, %v519_v16  ;;  %v195_v23 = vsel %vm194_vm1, %v193_v10, %v192_v17  ;;  %v435_v24 = vld [vmem:[%s7081_s0 + $0x19] sm:$0x1]  ;;  %v436_v25 = vld [vmem:[%s7081_s0 + $0x21] sm:$0x1]  ;;  %v437_v26 = vld [vmem:[%s7081_s0 + $0x29] sm:$0x1] }
  0x20   :  { %v523_v27 = vsel %vm209_vm6, %v522_v61, %v521_v22  ;;  %v198_v28 = vsel %vm197_vm2, %v196_v12, %v195_v23  ;;  %v438_v29 = vld [vmem:[%s7081_s0 + $0x31] sm:$0x1]  ;;  %v439_v30 = vld [vmem:[%s7081_s0 + $0x39] sm:$0x1]  ;;  %v496_v32 = vrot.slane %v433_v20, 7  ;;  %v498_v33 = vrot.slane %v434_v21, 6 }
  0x21   :  { %4344 = vmatprep.subr.mxu1 %v523_v27  ;;  %v201_v34 = vsel %vm200_vm3, %v199_v13, %v198_v28  ;;  %v500_v35 = vrot.slane %v435_v24, 5  ;;  %v502_v36 = vrot.slane %v436_v25, 4  ;;  %v504_v37 = vrot.slane %v437_v26, 3  ;;  %v718_v38 = vld [vmem:[%s7081_s0 + $0xc2] sm:$0x1]  ;;  %v5334_v0 = vld [vmem:[%s7082_s1 + $0x18] sm:$0xff] }
  0x22   :  { %4345 = vmatpush3.msra.mxu1 %v523_v27  ;;  %v204_v39 = vsel %vm203_vm4, %v202_v14, %v201_v34  ;;  %v497_v40 = vsel %vm191_vm0, %v496_v32, %v432_v15  ;;  %v506_v41 = vrot.slane %v438_v29, 2  ;;  %v508_v42 = vrot.slane %v439_v30, 1  ;;  %v719_v44 = vld [vmem:[%s7081_s0 + $0xca] sm:$0x1]  ;;  %v720_v45 = vld [vmem:[%s7081_s0 + $0xd2] sm:$0x1] }
  0x23   :  { %v207_v46 = vsel %vm206_vm5, %v205_v18, %v204_v39  ;;  %v499_v47 = vsel %vm194_vm1, %v498_v33, %v497_v40  ;;  %v721_v48 = vld [vmem:[%s7081_s0 + $0xda] sm:$0x1]  ;;  %v722_v49 = vld [vmem:[%s7081_s0 + $0xe2] sm:$0x1]  ;;  %v723_v50 = vld [vmem:[%s7081_s0 + $0xea] sm:$0x1] }
  0x24   :  { %v210_v51 = vsel %vm209_vm6, %v208_v19, %v207_v46  ;;  %v501_v52 = vsel %vm197_vm2, %v500_v35, %v499_v47  ;;  %v724_v53 = vld [vmem:[%s7081_s0 + $0xf2] sm:$0x1]  ;;  %v725_v54 = vld [vmem:[%s7081_s0 + $0xfa] sm:$0x1]  ;;  %v800_v55 = vrot.slane %v719_v44, 7  ;;  %v802_v56 = vrot.slane %v720_v45, 6 }
  0x25   :  { %4320 = vmatprep.subr.mxu0 %v210_v51  ;;  %v503_v57 = vsel %vm200_vm3, %v502_v36, %v501_v52  ;;  %v804_v59 = vrot.slane %v721_v48, 5  ;;  %v806_v60 = vrot.slane %v722_v49, 4  ;;  %v808_v61 = vrot.slane %v723_v50, 3  ;;  %v980_v62 = vld [vmem:[%s7081_s0 + $0xc3] sm:$0x1]  ;;  %v5378_v23 = vld [vmem:[%s7082_s1 + $0x28] sm:$0xff] }
  0x26   :  { %v505_v63 = vsel %vm203_vm4, %v504_v37, %v503_v57  ;;  %4321 = vmatpush3.msra.mxu0 %v210_v51  ;;  %v801_v1 = vsel %vm191_vm0, %v800_v55, %v718_v38  ;;  %v810_v2 = vrot.slane %v724_v53, 2  ;;  %v812_v3 = vrot.slane %v725_v54, 1  ;;  %v981_v4 = vld [vmem:[%s7081_s0 + $0xcb] sm:$0x1]  ;;  %v982_v5 = vld [vmem:[%s7081_s0 + $0xd3] sm:$0x1] }
  0x27   :  { %v507_v6 = vsel %vm206_vm5, %v506_v41, %v505_v63  ;;  %4323 = vmatmul.mubr.msk.f32.vlgmr.msra.gmra.mxu0 %vm257_vm7, %v5294_v43  ;;  %v803_v7 = vsel %vm194_vm1, %v802_v56, %v801_v1  ;;  %v983_v8 = vld [vmem:[%s7081_s0 + $0xdb] sm:$0x1]  ;;  %v984_v9 = vld [vmem:[%s7081_s0 + $0xe3] sm:$0x1]  ;;  %v985_v10 = vld [vmem:[%s7081_s0 + $0xeb] sm:$0x1] }
  0x28   :  { %v509_v11 = vsel %vm209_vm6, %v508_v42, %v507_v6  ;;  %4325 = vmatprep.mubr.msk.f32.mxu0 %vm257_vm7, %v5325_v58  ;;  %v805_v12 = vsel %vm197_vm2, %v804_v59, %v803_v7  ;;  %v986_v13 = vld [vmem:[%s7081_s0 + $0xf3] sm:$0x1]  ;;  %v987_v14 = vld [vmem:[%s7081_s0 + $0xfb] sm:$0x1]  ;;  %v1062_v15 = vrot.slane %v981_v4, 7  ;;  %v1064_v16 = vrot.slane %v982_v5, 6 }
  0x29   :  { %4346 = vmatprep.subr.mxu1 %v509_v11  ;;  %v5369_v17 = vld [vmem:[%s7082_s1 + $0x20] sm:$0xff]  ;;  %v807_v18 = vsel %vm200_vm3, %v806_v60, %v805_v12  ;;  %v1066_v19 = vrot.slane %v983_v8, 5  ;;  %v1068_v20 = vrot.slane %v984_v9, 4  ;;  %v1070_v21 = vrot.slane %v985_v10, 3  ;;  %v711_v28 = vld [vmem:[%s7081_s0 + $0x8a] sm:$0x1] }
  0x2a   :  { %v710_v22 = vld [vmem:[%s7081_s0 + $0x82] sm:$0x1]  ;;  %4347 = vmatpush3.msra.mxu1 %v509_v11  ;;  %v809_v24 = vsel %vm203_vm4, %v808_v61, %v807_v18  ;;  %v1063_v25 = vsel %vm191_vm0, %v1062_v15, %v980_v62  ;;  %v1072_v26 = vrot.slane %v986_v13, 2  ;;  %v1074_v27 = vrot.slane %v987_v14, 1  ;;  %v712_v29 = vld [vmem:[%s7081_s0 + $0x92] sm:$0x1] }
  0x2b   :  { %4349 = vmatmul.mubr.msk.f32.vlgmr.msra.gmra.mxu1 %vm257_vm7, %v5294_v43  ;;  %4326 = vmatmul.mubr.msk.f32.gmra.mxu0 %vm257_vm7, %v5334_v0  ;;  %v811_v30 = vsel %vm206_vm5, %v810_v2, %v809_v24  ;;  %v1065_v32 = vsel %vm194_vm1, %v1064_v16, %v1063_v25  ;;  %v713_v33 = vld [vmem:[%s7081_s0 + $0x9a] sm:$0x1]  ;;  %v714_v34 = vld [vmem:[%s7081_s0 + $0xa2] sm:$0x1]  ;;  %v715_v35 = vld [vmem:[%s7081_s0 + $0xaa] sm:$0x1] }
  0x2c   :  { %4351 = vmatprep.mubr.msk.f32.mxu1 %vm257_vm7, %v5325_v58  ;;  %4328 = vmatprep.mubr.msk.f32.mxu0 %vm257_vm7, %v5369_v17  ;;  %v813_v36 = vsel %vm209_vm6, %v812_v3, %v811_v30  ;;  %v1067_v37 = vsel %vm197_vm2, %v1066_v19, %v1065_v32  ;;  %v716_v38 = vld [vmem:[%s7081_s0 + $0xb2] sm:$0x1]  ;;  %v717_v39 = vld [vmem:[%s7081_s0 + $0xba] sm:$0x1]  ;;  %v786_v40 = vrot.slane %v711_v28, 7  ;;  %v788_v41 = vrot.slane %v712_v29, 6 }
  0x2d   :  { %v5418_v42 = vld [vmem:[%s7082_s1 + $0x30] sm:$0xff]  ;;  %4366 = vmatprep.subr.mxu0 %v813_v36  ;;  %v1069_v44 = vsel %vm200_vm3, %v1068_v20, %v1067_v37  ;;  %v790_v45 = vrot.slane %v713_v33, 5  ;;  %v792_v46 = vrot.slane %v714_v34, 4  ;;  %v794_v47 = vrot.slane %v715_v35, 3  ;;  %v972_v48 = vld [vmem:[%s7081_s0 + $0x83] sm:$0x1] }
  0x2e   :  { %v5427_v49 = vld [vmem:[%s7082_s1 + $0x38] sm:$0xff]  ;;  %v1071_v50 = vsel %vm203_vm4, %v1070_v21, %v1069_v44  ;;  %4367 = vmatpush3.msra.mxu0 %v813_v36  ;;  %v787_v51 = vsel %vm191_vm0, %v786_v40, %v710_v22  ;;  %v796_v52 = vrot.slane %v716_v38, 2  ;;  %v798_v53 = vrot.slane %v717_v39, 1  ;;  %v973_v54 = vld [vmem:[%s7081_s0 + $0x8b] sm:$0x1]  ;;  %v5467_v5 = vld [vmem:[%s7082_s1 + $0x40] sm:$0xff] }
  0x2f   :  { %v974_v55 = vld [vmem:[%s7081_s0 + $0x93] sm:$0x1]  ;;  %4352 = vmatmul.mubr.msk.f32.gmra.mxu1 %vm257_vm7, %v5334_v0  ;;  %4329 = vmatmul.mubr.msk.f32.gmra.mxu0 %vm257_vm7, %v5378_v23  ;;  %v1073_v56 = vsel %vm206_vm5, %v1072_v26, %v1071_v50  ;;  %v789_v57 = vsel %vm194_vm1, %v788_v41, %v787_v51  ;;  %v975_v59 = vld [vmem:[%s7081_s0 + $0x9b] sm:$0x1]  ;;  %v976_v60 = vld [vmem:[%s7081_s0 + $0xa3] sm:$0x1] }
  0x30   :  { %v977_v61 = vld [vmem:[%s7081_s0 + $0xab] sm:$0x1]  ;;  %4354 = vmatprep.mubr.msk.f32.mxu1 %vm257_vm7, %v5369_v17  ;;  %4331 = vmatprep.mubr.msk.f32.mxu0 %vm257_vm7, %v5418_v42  ;;  %v1075_v62 = vsel %vm209_vm6, %v1074_v27, %v1073_v56  ;;  %v791_v63 = vsel %vm197_vm2, %v790_v45, %v789_v57  ;;  %v978_v1 = vld [vmem:[%s7081_s0 + $0xb3] sm:$0x1]  ;;  %v979_v2 = vld [vmem:[%s7081_s0 + $0xbb] sm:$0x1] }
  0x31   :  { %v1048_v3 = vrot.slane %v973_v54, 7  ;;  %v1050_v4 = vrot.slane %v974_v55, 6  ;;  %4392 = vmatprep.subr.mxu1 %v1075_v62  ;;  %v793_v6 = vsel %vm200_vm3, %v792_v46, %v791_v63  ;;  %v1052_v7 = vrot.slane %v975_v59, 5  ;;  %v702_v10 = vld [vmem:[%s7081_s0 + $0x42] sm:$0x1]  ;;  %v5476_v11 = vld [vmem:[%s7082_s1 + $0x48] sm:$0xff] }
  0x32   :  { %v1054_v8 = vrot.slane %v976_v60, 4  ;;  %v1056_v9 = vrot.slane %v977_v61, 3  ;;  %4393 = vmatpush3.msra.mxu1 %v1075_v62  ;;  %v795_v12 = vsel %vm203_vm4, %v794_v47, %v793_v6  ;;  %v1058_v14 = vrot.slane %v978_v1, 2  ;;  %v703_v16 = vld [vmem:[%s7081_s0 + $0x4a] sm:$0x1]  ;;  %v5517_v33 = vld [vmem:[%s7082_s1 + $0x50] sm:$0xff] }
  0x33   :  { %v1049_v13 = vsel %vm191_vm0, %v1048_v3, %v972_v48  ;;  %v1060_v15 = vrot.slane %v979_v2, 1  ;;  %v704_v18 = vld [vmem:[%s7081_s0 + $0x52] sm:$0x1]  ;;  %4355 = vmatmul.mubr.msk.f32.gmra.mxu1 %vm257_vm7, %v5378_v23  ;;  %4332 = vmatmul.mubr.msk.f32.gmra.mxu0 %vm257_vm7, %v5427_v49  ;;  %v797_v19 = vsel %vm206_vm5, %v796_v52, %v795_v12  ;;  %v705_v21 = vld [vmem:[%s7081_s0 + $0x5a] sm:$0x1]  ;;  %v772_v29 = vrot.slane %v703_v16, 7 }
  0x34   :  { %v1051_v20 = vsel %vm194_vm1, %v1050_v4, %v1049_v13  ;;  %v706_v22 = vld [vmem:[%s7081_s0 + $0x62] sm:$0x1]  ;;  %v707_v24 = vld [vmem:[%s7081_s0 + $0x6a] sm:$0x1]  ;;  %4357 = vmatprep.mubr.msk.f32.mxu1 %vm257_vm7, %v5418_v42  ;;  %4334 = vmatprep.mubr.msk.f32.mxu0 %vm257_vm7, %v5467_v5  ;;  %v799_v25 = vsel %vm209_vm6, %v798_v53, %v797_v19  ;;  %v708_v27 = vld [vmem:[%s7081_s0 + $0x72] sm:$0x1] }
  0x35   :  { %v1053_v26 = vsel %vm197_vm2, %v1052_v7, %v1051_v20  ;;  %v709_v28 = vld [vmem:[%s7081_s0 + $0x7a] sm:$0x1]  ;;  %v774_v30 = vrot.slane %v704_v18, 6  ;;  %4368 = vmatprep.subr.mxu0 %v799_v25  ;;  %v776_v34 = vrot.slane %v705_v21, 5  ;;  %v778_v35 = vrot.slane %v706_v22, 4 }
  0x36   :  { %v1055_v32 = vsel %vm200_vm3, %v1054_v8, %v1053_v26  ;;  %v780_v36 = vrot.slane %v707_v24, 3  ;;  %v964_v37 = vld [vmem:[%s7081_s0 + $0x43] sm:$0x1]  ;;  %4369 = vmatpush3.msra.mxu0 %v799_v25  ;;  %v5526_v39 = vld [vmem:[%s7082_s1 + $0x58] sm:$0xff]  ;;  %v773_v40 = vsel %vm191_vm0, %v772_v29, %v702_v10  ;;  %v782_v41 = vrot.slane %v708_v27, 2 }
  0x37   :  { %v1057_v38 = vsel %vm203_vm4, %v1056_v9, %v1055_v32  ;;  %v784_v44 = vrot.slane %v709_v28, 1  ;;  %v965_v45 = vld [vmem:[%s7081_s0 + $0x4b] sm:$0x1]  ;;  %v966_v46 = vld [vmem:[%s7081_s0 + $0x53] sm:$0x1]  ;;  %4358 = vmatmul.mubr.msk.f32.gmra.mxu1 %vm257_vm7, %v5427_v49  ;;  %4335 = vmatmul.mubr.msk.f32.gmra.mxu0 %vm257_vm7, %v5476_v11  ;;  %v775_v48 = vsel %vm194_vm1, %v774_v30, %v773_v40  ;;  %vm419_vm8 = vcmask 64512  }
  0x38   :  { %v1059_v47 = vsel %vm206_vm5, %v1058_v14, %v1057_v38  ;;  %v967_v50 = vld [vmem:[%s7081_s0 + $0x5b] sm:$0x1]  ;;  %v968_v51 = vld [vmem:[%s7081_s0 + $0x63] sm:$0x1]  ;;  %v969_v52 = vld [vmem:[%s7081_s0 + $0x6b] sm:$0x1]  ;;  %4360 = vmatprep.mubr.msk.f32.mxu1 %vm257_vm7, %v5467_v5  ;;  %4337 = vmatprep.mubr.msk.f32.mxu0 %vm257_vm7, %v5517_v33  ;;  %v777_v54 = vsel %vm197_vm2, %v776_v34, %v775_v48 }
  0x39   :  { %v1061_v53 = vsel %vm209_vm6, %v1060_v15, %v1059_v47  ;;  %v970_v55 = vld [vmem:[%s7081_s0 + $0x73] sm:$0x1]  ;;  %v971_v56 = vld [vmem:[%s7081_s0 + $0x7b] sm:$0x1]  ;;  %v1034_v57 = vrot.slane %v965_v45, 7  ;;  %v1036_v59 = vrot.slane %v966_v46, 6  ;;  %v779_v60 = vsel %vm200_vm3, %v778_v35, %v777_v54 }
  0x3a   :  { %4394 = vmatprep.subr.mxu1 %v1061_v53  ;;  %v1038_v61 = vrot.slane %v967_v50, 5  ;;  %v1040_v62 = vrot.slane %v968_v51, 4  ;;  %v1042_v63 = vrot.slane %v969_v52, 3  ;;  %v694_v1 = vld [vmem:[%s7081_s0 + $0x2] sm:$0x1]  ;;  %v781_v2 = vsel %vm203_vm4, %v780_v36, %v779_v60 }
  0x3b   :  { %4395 = vmatpush3.msra.mxu1 %v1061_v53  ;;  %v1035_v3 = vsel %vm191_vm0, %v1034_v57, %v964_v37  ;;  %v1044_v4 = vrot.slane %v970_v55, 2  ;;  %v1046_v6 = vrot.slane %v971_v56, 1  ;;  %v695_v7 = vld [vmem:[%s7081_s0 + $0xa] sm:$0x1]  ;;  %v696_v8 = vld [vmem:[%s7081_s0 + $0x12] sm:$0x1]  ;;  %4338 = vmatmul.mubr.msk.f32.gmra.mxu0 %vm257_vm7, %v5526_v39  ;;  %v783_v9 = vsel %vm206_vm5, %v782_v41, %v781_v2 }
  0x3c   :  { %4361 = vmatmul.mubr.msk.f32.gmra.mxu1 %vm257_vm7, %v5476_v11  ;;  %v1037_v10 = vsel %vm194_vm1, %v1036_v59, %v1035_v3  ;;  %v697_v12 = vld [vmem:[%s7081_s0 + $0x1a] sm:$0x1]  ;;  %v698_v13 = vld [vmem:[%s7081_s0 + $0x22] sm:$0x1]  ;;  %v699_v14 = vld [vmem:[%s7081_s0 + $0x2a] sm:$0x1]  ;;  %v785_v15 = vsel %vm209_vm6, %v784_v44, %v783_v9  ;;  %4374 = vmatprep.mubr.msk.f32.mxu0 %vm257_vm7, %v5186_v31 }
  0x3d   :  { %4363 = vmatprep.mubr.msk.f32.mxu1 %vm257_vm7, %v5517_v33  ;;  %v1039_v16 = vsel %vm197_vm2, %v1038_v61, %v1037_v10  ;;  %v700_v18 = vld [vmem:[%s7081_s0 + $0x32] sm:$0x1]  ;;  %v701_v19 = vld [vmem:[%s7081_s0 + $0x3a] sm:$0x1]  ;;  %v758_v20 = vrot.slane %v695_v7, 7  ;;  %v760_v21 = vrot.slane %v696_v8, 6  ;;  %4370 = vmatprep.subr.mxu0 %v785_v15 }
  0x3e   :  { %v1041_v22 = vsel %vm200_vm3, %v1040_v62, %v1039_v16  ;;  %v762_v24 = vrot.slane %v697_v12, 5  ;;  %v764_v25 = vrot.slane %v698_v13, 4  ;;  %v766_v26 = vrot.slane %v699_v14, 3  ;;  %v956_v27 = vld [vmem:[%s7081_s0 + $0x3] sm:$0x1]  ;;  %4371 = vmatpush3.msra.mxu0 %v785_v15 }
  0x3f   :  { %v1043_v28 = vsel %vm203_vm4, %v1042_v63, %v1041_v22  ;;  %v759_v29 = vsel %vm191_vm0, %v758_v20, %v694_v1  ;;  %v768_v30 = vrot.slane %v700_v18, 2  ;;  %v770_v32 = vrot.slane %v701_v19, 1  ;;  %v957_v34 = vld [vmem:[%s7081_s0 + $0xb] sm:$0x1]  ;;  %v958_v35 = vld [vmem:[%s7081_s0 + $0x13] sm:$0x1] }
  0x40   :  { %4364 = vmatmul.mubr.msk.f32.gmra.mxu1 %vm257_vm7, %v5526_v39  ;;  %v1045_v36 = vsel %vm206_vm5, %v1044_v4, %v1043_v28  ;;  %v761_v37 = vsel %vm194_vm1, %v760_v21, %v759_v29  ;;  %v959_v38 = vld [vmem:[%s7081_s0 + $0x1b] sm:$0x1]  ;;  %v960_v40 = vld [vmem:[%s7081_s0 + $0x23] sm:$0x1]  ;;  %v961_v41 = vld [vmem:[%s7081_s0 + $0x2b] sm:$0x1] }
  0x41   :  { %v1047_v44 = vsel %vm209_vm6, %v1046_v6, %v1045_v36  ;;  %v763_v45 = vsel %vm197_vm2, %v762_v24, %v761_v37  ;;  %v962_v46 = vld [vmem:[%s7081_s0 + $0x33] sm:$0x1]  ;;  %v963_v47 = vld [vmem:[%s7081_s0 + $0x3b] sm:$0x1]  ;;  %v1020_v48 = vrot.slane %v957_v34, 7  ;;  %v1022_v50 = vrot.slane %v958_v35, 6  ;;  %4400 = vmatprep.mubr.msk.f32.mxu1 %vm257_vm7, %v5186_v31 }
  0x42   :  { %4396 = vmatprep.subr.mxu1 %v1047_v44  ;;  %v765_v51 = vsel %vm200_vm3, %v764_v25, %v763_v45  ;;  %v1024_v52 = vrot.slane %v959_v38, 5  ;;  %v1026_v53 = vrot.slane %v960_v40, 4  ;;  %v1028_v54 = vrot.slane %v961_v41, 3  ;;  %v1242_v55 = vld [vmem:[%s7081_s0 + $0xc4] sm:$0x1] }
  0x43   :  { %4397 = vmatpush3.msra.mxu1 %v1047_v44  ;;  %v767_v56 = vsel %vm203_vm4, %v766_v26, %v765_v51  ;;  %v1021_v57 = vsel %vm191_vm0, %v1020_v48, %v956_v27  ;;  %v1030_v59 = vrot.slane %v962_v46, 2  ;;  %v1032_v60 = vrot.slane %v963_v47, 1  ;;  %v1243_v61 = vld [vmem:[%s7081_s0 + $0xcc] sm:$0x1]  ;;  %v1244_v62 = vld [vmem:[%s7081_s0 + $0xd4] sm:$0x1] }
  0x44   :  { %v769_v63 = vsel %vm206_vm5, %v768_v30, %v767_v56  ;;  %v1023_v1 = vsel %vm194_vm1, %v1022_v50, %v1021_v57  ;;  %v1245_v2 = vld [vmem:[%s7081_s0 + $0xdc] sm:$0x1]  ;;  %v1246_v3 = vld [vmem:[%s7081_s0 + $0xe4] sm:$0x1]  ;;  %v1247_v4 = vld [vmem:[%s7081_s0 + $0xec] sm:$0x1] }
  0x45   :  { %v771_v6 = vsel %vm209_vm6, %v770_v32, %v769_v63  ;;  %v1025_v7 = vsel %vm197_vm2, %v1024_v52, %v1023_v1  ;;  %v1248_v8 = vld [vmem:[%s7081_s0 + $0xf4] sm:$0x1]  ;;  %v1249_v9 = vld [vmem:[%s7081_s0 + $0xfc] sm:$0x1]  ;;  %v1324_v10 = vrot.slane %v1243_v61, 7  ;;  %v1326_v12 = vrot.slane %v1244_v62, 6 }
  0x46   :  { %4372 = vmatprep.subr.mxu0 %v771_v6  ;;  %v1027_v13 = vsel %vm200_vm3, %v1026_v53, %v1025_v7  ;;  %v1328_v14 = vrot.slane %v1245_v2, 5  ;;  %v1330_v15 = vrot.slane %v1246_v3, 4  ;;  %v1332_v16 = vrot.slane %v1247_v4, 3  ;;  %v1504_v18 = vld [vmem:[%s7081_s0 + $0xc5] sm:$0x1] }
  0x47   :  { %v1029_v19 = vsel %vm203_vm4, %v1028_v54, %v1027_v13  ;;  %4373 = vmatpush3.msra.mxu0 %v771_v6  ;;  %v1325_v20 = vsel %vm191_vm0, %v1324_v10, %v1242_v55  ;;  %v1334_v21 = vrot.slane %v1248_v8, 2  ;;  %v1336_v22 = vrot.slane %v1249_v9, 1  ;;  %v1505_v24 = vld [vmem:[%s7081_s0 + $0xcd] sm:$0x1]  ;;  %v1506_v25 = vld [vmem:[%s7081_s0 + $0xd5] sm:$0x1] }
  0x48   :  { %v1031_v26 = vsel %vm206_vm5, %v1030_v59, %v1029_v19  ;;  %4375 = vmatmul.mubr.msk.f32.vlgmr.msra.gmra.mxu0 %vm257_vm7, %v5294_v43  ;;  %v1327_v27 = vsel %vm194_vm1, %v1326_v12, %v1325_v20  ;;  %v1507_v28 = vld [vmem:[%s7081_s0 + $0xdd] sm:$0x1]  ;;  %v1508_v29 = vld [vmem:[%s7081_s0 + $0xe5] sm:$0x1]  ;;  %v1509_v30 = vld [vmem:[%s7081_s0 + $0xed] sm:$0x1] }
  0x49   :  { %v1033_v32 = vsel %vm209_vm6, %v1032_v60, %v1031_v26  ;;  %4377 = vmatprep.mubr.msk.f32.mxu0 %vm257_vm7, %v5325_v58  ;;  %v1329_v34 = vsel %vm197_vm2, %v1328_v14, %v1327_v27  ;;  %v1510_v35 = vld [vmem:[%s7081_s0 + $0xf5] sm:$0x1]  ;;  %v1511_v36 = vld [vmem:[%s7081_s0 + $0xfd] sm:$0x1]  ;;  %v1586_v37 = vrot.slane %v1505_v24, 7  ;;  %v1588_v38 = vrot.slane %v1506_v25, 6 }
  0x4a   :  { %4398 = vmatprep.subr.mxu1 %v1033_v32  ;;  %v1331_v40 = vsel %vm200_vm3, %v1330_v15, %v1329_v34  ;;  %v1590_v41 = vrot.slane %v1507_v28, 5  ;;  %v1592_v44 = vrot.slane %v1508_v29, 4  ;;  %v1594_v45 = vrot.slane %v1509_v30, 3  ;;  %v1234_v46 = vld [vmem:[%s7081_s0 + $0x84] sm:$0x1] }
  0x4b   :  { %4399 = vmatpush3.msra.mxu1 %v1033_v32  ;;  %v1333_v47 = vsel %vm203_vm4, %v1332_v16, %v1331_v40  ;;  %v1587_v48 = vsel %vm191_vm0, %v1586_v37, %v1504_v18  ;;  %v1596_v50 = vrot.slane %v1510_v35, 2  ;;  %v1598_v51 = vrot.slane %v1511_v36, 1  ;;  %v1235_v52 = vld [vmem:[%s7081_s0 + $0x8c] sm:$0x1]  ;;  %v1236_v53 = vld [vmem:[%s7081_s0 + $0x94] sm:$0x1] }
  0x4c   :  { %4401 = vmatmul.mubr.msk.f32.vlgmr.msra.gmra.mxu1 %vm257_vm7, %v5294_v43  ;;  %4378 = vmatmul.mubr.msk.f32.gmra.mxu0 %vm257_vm7, %v5334_v0  ;;  %v1335_v54 = vsel %vm206_vm5, %v1334_v21, %v1333_v47  ;;  %v1589_v55 = vsel %vm194_vm1, %v1588_v38, %v1587_v48  ;;  %v1237_v56 = vld [vmem:[%s7081_s0 + $0x9c] sm:$0x1]  ;;  %v1238_v57 = vld [vmem:[%s7081_s0 + $0xa4] sm:$0x1]  ;;  %v1239_v59 = vld [vmem:[%s7081_s0 + $0xac] sm:$0x1] }
  0x4d   :  { %4403 = vmatprep.mubr.msk.f32.mxu1 %vm257_vm7, %v5325_v58  ;;  %4380 = vmatprep.mubr.msk.f32.mxu0 %vm257_vm7, %v5369_v17  ;;  %v1337_v60 = vsel %vm209_vm6, %v1336_v22, %v1335_v54  ;;  %v1591_v61 = vsel %vm197_vm2, %v1590_v41, %v1589_v55  ;;  %v1240_v62 = vld [vmem:[%s7081_s0 + $0xb4] sm:$0x1]  ;;  %v1241_v63 = vld [vmem:[%s7081_s0 + $0xbc] sm:$0x1]  ;;  %v1310_v1 = vrot.slane %v1235_v52, 7  ;;  %v1312_v2 = vrot.slane %v1236_v53, 6 }
  0x4e   :  { %4418 = vmatprep.subr.mxu0 %v1337_v60  ;;  %v1593_v3 = vsel %vm200_vm3, %v1592_v44, %v1591_v61  ;;  %v1314_v4 = vrot.slane %v1237_v56, 5  ;;  %v1316_v6 = vrot.slane %v1238_v57, 4  ;;  %v1318_v7 = vrot.slane %v1239_v59, 3  ;;  %v1496_v8 = vld [vmem:[%s7081_s0 + $0x85] sm:$0x1] }
  0x4f   :  { %v1595_v9 = vsel %vm203_vm4, %v1594_v45, %v1593_v3  ;;  %4419 = vmatpush3.msra.mxu0 %v1337_v60  ;;  %v1311_v10 = vsel %vm191_vm0, %v1310_v1, %v1234_v46  ;;  %v1320_v12 = vrot.slane %v1240_v62, 2  ;;  %v1322_v13 = vrot.slane %v1241_v63, 1  ;;  %v1497_v14 = vld [vmem:[%s7081_s0 + $0x8d] sm:$0x1]  ;;  %v1498_v15 = vld [vmem:[%s7081_s0 + $0x95] sm:$0x1] }
  0x50   :  { %4404 = vmatmul.mubr.msk.f32.gmra.mxu1 %vm257_vm7, %v5334_v0  ;;  %4381 = vmatmul.mubr.msk.f32.gmra.mxu0 %vm257_vm7, %v5378_v23  ;;  %v1597_v16 = vsel %vm206_vm5, %v1596_v50, %v1595_v9  ;;  %v1313_v18 = vsel %vm194_vm1, %v1312_v2, %v1311_v10  ;;  %v1499_v19 = vld [vmem:[%s7081_s0 + $0x9d] sm:$0x1]  ;;  %v1500_v20 = vld [vmem:[%s7081_s0 + $0xa5] sm:$0x1]  ;;  %v1501_v21 = vld [vmem:[%s7081_s0 + $0xad] sm:$0x1] }
  0x51   :  { %4406 = vmatprep.mubr.msk.f32.mxu1 %vm257_vm7, %v5369_v17  ;;  %4383 = vmatprep.mubr.msk.f32.mxu0 %vm257_vm7, %v5418_v42  ;;  %v1599_v22 = vsel %vm209_vm6, %v1598_v51, %v1597_v16  ;;  %v1315_v24 = vsel %vm197_vm2, %v1314_v4, %v1313_v18  ;;  %v1502_v25 = vld [vmem:[%s7081_s0 + $0xb5] sm:$0x1]  ;;  %v1503_v26 = vld [vmem:[%s7081_s0 + $0xbd] sm:$0x1]  ;;  %v1572_v27 = vrot.slane %v1497_v14, 7  ;;  %v1574_v28 = vrot.slane %v1498_v15, 6 }
  0x52   :  { %4444 = vmatprep.subr.mxu1 %v1599_v22  ;;  %v1317_v29 = vsel %vm200_vm3, %v1316_v6, %v1315_v24  ;;  %v1576_v30 = vrot.slane %v1499_v19, 5  ;;  %v1578_v32 = vrot.slane %v1500_v20, 4  ;;  %v1580_v34 = vrot.slane %v1501_v21, 3  ;;  %v1226_v35 = vld [vmem:[%s7081_s0 + $0x44] sm:$0x1] }
  0x53   :  { %4445 = vmatpush3.msra.mxu1 %v1599_v22  ;;  %v1319_v36 = vsel %vm203_vm4, %v1318_v7, %v1317_v29  ;;  %v1573_v37 = vsel %vm191_vm0, %v1572_v27, %v1496_v8  ;;  %v1582_v38 = vrot.slane %v1502_v25, 2  ;;  %v1584_v40 = vrot.slane %v1503_v26, 1  ;;  %v1227_v41 = vld [vmem:[%s7081_s0 + $0x4c] sm:$0x1]  ;;  %v1228_v44 = vld [vmem:[%s7081_s0 + $0x54] sm:$0x1] }
  0x54   :  { %4407 = vmatmul.mubr.msk.f32.gmra.mxu1 %vm257_vm7, %v5378_v23  ;;  %4384 = vmatmul.mubr.msk.f32.gmra.mxu0 %vm257_vm7, %v5427_v49  ;;  %v1321_v45 = vsel %vm206_vm5, %v1320_v12, %v1319_v36  ;;  %v1575_v46 = vsel %vm194_vm1, %v1574_v28, %v1573_v37  ;;  %v1229_v47 = vld [vmem:[%s7081_s0 + $0x5c] sm:$0x1]  ;;  %v1230_v48 = vld [vmem:[%s7081_s0 + $0x64] sm:$0x1]  ;;  %v1231_v50 = vld [vmem:[%s7081_s0 + $0x6c] sm:$0x1] }
  0x55   :  { %4409 = vmatprep.mubr.msk.f32.mxu1 %vm257_vm7, %v5418_v42  ;;  %4386 = vmatprep.mubr.msk.f32.mxu0 %vm257_vm7, %v5467_v5  ;;  %v1323_v51 = vsel %vm209_vm6, %v1322_v13, %v1321_v45  ;;  %v1577_v52 = vsel %vm197_vm2, %v1576_v30, %v1575_v46  ;;  %v1232_v53 = vld [vmem:[%s7081_s0 + $0x74] sm:$0x1]  ;;  %v1233_v54 = vld [vmem:[%s7081_s0 + $0x7c] sm:$0x1]  ;;  %v1296_v55 = vrot.slane %v1227_v41, 7  ;;  %v1298_v56 = vrot.slane %v1228_v44, 6 }
  0x56   :  { %4420 = vmatprep.subr.mxu0 %v1323_v51  ;;  %v1579_v57 = vsel %vm200_vm3, %v1578_v32, %v1577_v52  ;;  %v1300_v59 = vrot.slane %v1229_v47, 5  ;;  %v1302_v60 = vrot.slane %v1230_v48, 4  ;;  %v1304_v61 = vrot.slane %v1231_v50, 3  ;;  %v1488_v62 = vld [vmem:[%s7081_s0 + $0x45] sm:$0x1] }
  0x57   :  { %v1581_v63 = vsel %vm203_vm4, %v1580_v34, %v1579_v57  ;;  %4421 = vmatpush3.msra.mxu0 %v1323_v51  ;;  %v1297_v1 = vsel %vm191_vm0, %v1296_v55, %v1226_v35  ;;  %v1306_v2 = vrot.slane %v1232_v53, 2  ;;  %v1308_v3 = vrot.slane %v1233_v54, 1  ;;  %v1489_v4 = vld [vmem:[%s7081_s0 + $0x4d] sm:$0x1]  ;;  %v1490_v6 = vld [vmem:[%s7081_s0 + $0x55] sm:$0x1] }
  0x58   :  { %4410 = vmatmul.mubr.msk.f32.gmra.mxu1 %vm257_vm7, %v5427_v49  ;;  %4387 = vmatmul.mubr.msk.f32.gmra.mxu0 %vm257_vm7, %v5476_v11  ;;  %v1583_v7 = vsel %vm206_vm5, %v1582_v38, %v1581_v63  ;;  %v1299_v8 = vsel %vm194_vm1, %v1298_v56, %v1297_v1  ;;  %v1491_v9 = vld [vmem:[%s7081_s0 + $0x5d] sm:$0x1]  ;;  %v1492_v10 = vld [vmem:[%s7081_s0 + $0x65] sm:$0x1]  ;;  %v1493_v12 = vld [vmem:[%s7081_s0 + $0x6d] sm:$0x1] }
  0x59   :  { %4412 = vmatprep.mubr.msk.f32.mxu1 %vm257_vm7, %v5467_v5  ;;  %v1585_v13 = vsel %vm209_vm6, %v1584_v40, %v1583_v7  ;;  %4389 = vmatprep.mubr.msk.f32.mxu0 %vm257_vm7, %v5517_v33  ;;  %v1301_v14 = vsel %vm197_vm2, %v1300_v59, %v1299_v8  ;;  %v1494_v15 = vld [vmem:[%s7081_s0 + $0x75] sm:$0x1]  ;;  %v1495_v16 = vld [vmem:[%s7081_s0 + $0x7d] sm:$0x1]  ;;  %v1558_v18 = vrot.slane %v1489_v4, 7  ;;  %v1560_v19 = vrot.slane %v1490_v6, 6 }
  0x5a   :  { %4446 = vmatprep.subr.mxu1 %v1585_v13  ;;  %v1303_v20 = vsel %vm200_vm3, %v1302_v60, %v1301_v14  ;;  %v1562_v21 = vrot.slane %v1491_v9, 5  ;;  %v1564_v22 = vrot.slane %v1492_v10, 4  ;;  %v1566_v24 = vrot.slane %v1493_v12, 3  ;;  %v1218_v25 = vld [vmem:[%s7081_s0 + $0x4] sm:$0x1]  ;;  %v53_v10 = vld [vmem:[%s7083_s3 + $0x18] sm:$0xff] }
  0x5b   :  { %4447 = vmatpush3.msra.mxu1 %v1585_v13  ;;  %v1305_v26 = vsel %vm203_vm4, %v1304_v61, %v1303_v20  ;;  %v1559_v27 = vsel %vm191_vm0, %v1558_v18, %v1488_v62  ;;  %v1568_v28 = vrot.slane %v1494_v15, 2  ;;  %v1570_v29 = vrot.slane %v1495_v16, 1  ;;  %v1219_v30 = vld [vmem:[%s7081_s0 + $0xc] sm:$0x1]  ;;  %v1220_v32 = vld [vmem:[%s7081_s0 + $0x14] sm:$0x1] }
  0x5c   :  { %4413 = vmatmul.mubr.msk.f32.gmra.mxu1 %vm257_vm7, %v5476_v11  ;;  %4390 = vmatmul.mubr.msk.f32.gmra.mxu0 %vm257_vm7, %v5526_v39  ;;  %v1307_v34 = vsel %vm206_vm5, %v1306_v2, %v1305_v26  ;;  %v1561_v35 = vsel %vm194_vm1, %v1560_v19, %v1559_v27  ;;  %v1221_v36 = vld [vmem:[%s7081_s0 + $0x1c] sm:$0x1]  ;;  %v1222_v37 = vld [vmem:[%s7081_s0 + $0x24] sm:$0x1]  ;;  %v1223_v38 = vld [vmem:[%s7081_s0 + $0x2c] sm:$0x1] }
  0x5d   :  { %4415 = vmatprep.mubr.msk.f32.mxu1 %vm257_vm7, %v5517_v33  ;;  %v1309_v40 = vsel %vm209_vm6, %v1308_v3, %v1307_v34  ;;  %v1563_v41 = vsel %vm197_vm2, %v1562_v21, %v1561_v35  ;;  %v1224_v44 = vld [vmem:[%s7081_s0 + $0x34] sm:$0x1]  ;;  %v1225_v45 = vld [vmem:[%s7081_s0 + $0x3c] sm:$0x1]  ;;  %v1282_v46 = vrot.slane %v1219_v30, 7  ;;  %v1284_v47 = vrot.slane %v1220_v32, 6  ;;  %4426 = vmatprep.mubr.msk.f32.mxu0 %vm257_vm7, %v5186_v31 }
  0x5e   :  { %4422 = vmatprep.subr.mxu0 %v1309_v40  ;;  %v1565_v48 = vsel %vm200_vm3, %v1564_v22, %v1563_v41  ;;  %v1286_v50 = vrot.slane %v1221_v36, 5  ;;  %v1288_v51 = vrot.slane %v1222_v37, 4  ;;  %v1290_v52 = vrot.slane %v1223_v38, 3  ;;  %v1480_v53 = vld [vmem:[%s7081_s0 + $0x5] sm:$0x1]  ;;  %v51_v18 = vld [vmem:[%s7083_s3 + $0x8] sm:$0xff] }
  0x5f   :  { %v1567_v54 = vsel %vm203_vm4, %v1566_v24, %v1565_v48  ;;  %4423 = vmatpush3.msra.mxu0 %v1309_v40  ;;  %v1283_v55 = vsel %vm191_vm0, %v1282_v46, %v1218_v25  ;;  %v1292_v56 = vrot.slane %v1224_v44, 2  ;;  %v1294_v57 = vrot.slane %v1225_v45, 1  ;;  %v1481_v31 = vld [vmem:[%s7081_s0 + $0xd] sm:$0x1]  ;;  %v1482_v59 = vld [vmem:[%s7081_s0 + $0x15] sm:$0x1] }
  0x60   :  { %4416 = vmatmul.mubr.msk.f32.gmra.mxu1 %vm257_vm7, %v5526_v39  ;;  %v1569_v60 = vsel %vm206_vm5, %v1568_v28, %v1567_v54  ;;  %v1285_v61 = vsel %vm194_vm1, %v1284_v47, %v1283_v55  ;;  %v1483_v62 = vld [vmem:[%s7081_s0 + $0x1d] sm:$0x1]  ;;  %v1484_v63 = vld [vmem:[%s7081_s0 + $0x25] sm:$0x1]  ;;  %v1485_v1 = vld [vmem:[%s7081_s0 + $0x2d] sm:$0x1] }
  0x61   :  { %v1571_v2 = vsel %vm209_vm6, %v1570_v29, %v1569_v60  ;;  %v1287_v3 = vsel %vm197_vm2, %v1286_v50, %v1285_v61  ;;  %v1486_v4 = vld [vmem:[%s7081_s0 + $0x35] sm:$0x1]  ;;  %v1487_v6 = vld [vmem:[%s7081_s0 + $0x3d] sm:$0x1]  ;;  %v1544_v7 = vrot.slane %v1481_v31, 7  ;;  %v1546_v8 = vrot.slane %v1482_v59, 6 }
  0x62   :  { %v5933_v9 = vld [vmem:[%s7082_s1] sm:$0xff]  ;;  %4448 = vmatprep.subr.mxu1 %v1571_v2  ;;  %v1289_v12 = vsel %vm200_vm3, %v1288_v51, %v1287_v3  ;;  %v1548_v13 = vrot.slane %v1483_v62, 5  ;;  %v1550_v14 = vrot.slane %v1484_v63, 4  ;;  %v1552_v15 = vrot.slane %v1485_v1, 3  ;;  %v1767_v24 = vld [vmem:[%s7081_s0 + $0xce] sm:$0x1] }
  0x63   :  { %4452 = vmatprep.mubr.msk.f32.mxu1 %vm257_vm7, %v5933_v9  ;;  %v1766_v16 = vld [vmem:[%s7081_s0 + $0xc6] sm:$0x1]  ;;  %4449 = vmatpush3.msra.mxu1 %v1571_v2  ;;  %v1291_v19 = vsel %vm203_vm4, %v1290_v52, %v1289_v12  ;;  %v1545_v20 = vsel %vm191_vm0, %v1544_v7, %v1480_v53  ;;  %v1554_v21 = vrot.slane %v1486_v4, 2  ;;  %v1556_v22 = vrot.slane %v1487_v6, 1  ;;  %v1768_v25 = vld [vmem:[%s7081_s0 + $0xd6] sm:$0x1] }
  0x64   :  { %v1293_v26 = vsel %vm206_vm5, %v1292_v56, %v1291_v19  ;;  %v1547_v27 = vsel %vm194_vm1, %v1546_v8, %v1545_v20  ;;  %v1769_v28 = vld [vmem:[%s7081_s0 + $0xde] sm:$0x1]  ;;  %v1770_v29 = vld [vmem:[%s7081_s0 + $0xe6] sm:$0x1]  ;;  %v1848_v30 = vrot.slane %v1767_v24, 7  ;;  %v4998_v35 = vmov 0  }
  0x65   :  { %v1295_v32 = vsel %vm209_vm6, %v1294_v57, %v1293_v26  ;;  %v1549_v34 = vsel %vm197_vm2, %v1548_v13, %v1547_v27  ;;  %4679 = vset.pattern.permute.xlu0 %v4998_v35  ;;  %v1771_v36 = vld [vmem:[%s7081_s0 + $0xee] sm:$0x1]  ;;  %v1772_v37 = vld [vmem:[%s7081_s0 + $0xf6] sm:$0x1]  ;;  %v1773_v38 = vld [vmem:[%s7081_s0 + $0xfe] sm:$0x1]  ;;  %4680 = vset.pattern.permute.xlu1 %v4998_v35 }
  0x66   :  { %v52_v40 = vld [vmem:[%s7083_s3 + $0x10] sm:$0xff]  ;;  %4424 = vmatprep.subr.mxu0 %v1295_v32  ;;  %v1551_v41 = vsel %vm200_vm3, %v1550_v14, %v1549_v34  ;;  %v1849_v44 = vsel %vm191_vm0, %v1848_v30, %v1766_v16  ;;  %v1850_v45 = vrot.slane %v1768_v25, 6  ;;  %v1852_v46 = vrot.slane %v1769_v28, 5  ;;  %v2028_v47 = vld [vmem:[%s7081_s0 + $0xc7] sm:$0x1]  ;;  %115 = vperm.xlu0 %4679, %v53_v10   ;;  %v57_v4 = vld [vmem:[%s7083_s3 + $0x38] sm:$0xff] }
  0x67   :  { %v2029_v48 = vld [vmem:[%s7081_s0 + $0xcf] sm:$0x1]  ;;  %v1553_v50 = vsel %vm203_vm4, %v1552_v15, %v1551_v41  ;;  %4425 = vmatpush3.msra.mxu0 %v1295_v32  ;;  %v1854_v51 = vrot.slane %v1770_v29, 4  ;;  %v1856_v52 = vrot.slane %v1771_v36, 3  ;;  %v1858_v53 = vrot.slane %v1772_v37, 2  ;;  %105 = vperm.xlu1 %4680, %v51_v18   ;;  %v50_v55 = vld [vmem:[%s7083_s3] sm:$0xff] }
  0x68   :  { %v2030_v54 = vld [vmem:[%s7081_s0 + $0xd7] sm:$0x1]  ;;  %v1555_v56 = vsel %vm206_vm5, %v1554_v21, %v1553_v50  ;;  %4427 = vmatmul.mubr.msk.f32.vlgmr.msra.gmra.mxu0 %vm257_vm7, %v5294_v43  ;;  %v1851_v57 = vsel %vm194_vm1, %v1850_v45, %v1849_v44  ;;  %v1860_v31 = vrot.slane %v1773_v38, 1  ;;  %v2031_v59 = vld [vmem:[%s7081_s0 + $0xdf] sm:$0x1]  ;;  %v2122_v61 = vrot.slane %v2029_v48, 7 }
  0x69   :  { %v2032_v60 = vld [vmem:[%s7081_s0 + $0xe7] sm:$0x1]  ;;  %v1557_v62 = vsel %vm209_vm6, %v1556_v22, %v1555_v56  ;;  %4429 = vmatprep.mubr.msk.f32.mxu0 %vm257_vm7, %v5325_v58  ;;  %v1853_v63 = vsel %vm197_vm2, %v1852_v46, %v1851_v57  ;;  %v2033_v1 = vld [vmem:[%s7081_s0 + $0xef] sm:$0x1]  ;;  %v2034_v2 = vld [vmem:[%s7081_s0 + $0xf7] sm:$0x1] }
  0x6a   :  { %v6015_v3 = vld [vmem:[%s7081_s0 + $0xff] sm:$0x1]  ;;  %4450 = vmatprep.subr.mxu1 %v1557_v62  ;;  %v1855_v6 = vsel %vm200_vm3, %v1854_v51, %v1853_v63  ;;  %v2123_v7 = vsel %vm191_vm0, %v2122_v61, %v2028_v47  ;;  %v2124_v8 = vrot.slane %v2030_v54, 6  ;;  %v2126_v10 = vrot.slane %v2031_v59, 5  ;;  %v1758_v12 = vld [vmem:[%s7081_s0 + $0x86] sm:$0x1]  ;;  %110 = vperm.xlu0 %4679, %v52_v40  }
  0x6b   :  { %v1759_v13 = vld [vmem:[%s7081_s0 + $0x8e] sm:$0x1]  ;;  %4451 = vmatpush3.msra.mxu1 %v1557_v62  ;;  %v1857_v14 = vsel %vm203_vm4, %v1856_v52, %v1855_v6  ;;  %v2128_v15 = vrot.slane %v2032_v60, 4  ;;  %v2130_v16 = vrot.slane %v2033_v1, 3  ;;  %v2132_v18 = vrot.slane %v2034_v2, 2  ;;  %100 = vperm.xlu1 %4680, %v50_v55   ;;  %v56_v20 = vld [vmem:[%s7083_s3 + $0x30] sm:$0xff] }
  0x6c   :  { %v1760_v19 = vld [vmem:[%s7081_s0 + $0x96] sm:$0x1]  ;;  %4453 = vmatmul.mubr.msk.f32.vlgmr.msra.gmra.mxu1 %vm257_vm7, %v5294_v43  ;;  %4430 = vmatmul.mubr.msk.f32.gmra.mxu0 %vm257_vm7, %v5334_v0  ;;  %v1859_v21 = vsel %vm206_vm5, %v1858_v53, %v1857_v14  ;;  %v2125_v22 = vsel %vm194_vm1, %v2124_v8, %v2123_v7  ;;  %v2134_v24 = vrot.slane %v6015_v3, 1  ;;  %v1761_v25 = vld [vmem:[%s7081_s0 + $0x9e] sm:$0x1]  ;;  %v1834_v27 = vrot.slane %v1759_v13, 7 }
  0x6d   :  { %v1762_v26 = vld [vmem:[%s7081_s0 + $0xa6] sm:$0x1]  ;;  %4455 = vmatprep.mubr.msk.f32.mxu1 %vm257_vm7, %v5325_v58  ;;  %4432 = vmatprep.mubr.msk.f32.mxu0 %vm257_vm7, %v5369_v17  ;;  %v1861_v43 = vsel %vm209_vm6, %v1860_v31, %v1859_v21  ;;  %v2127_v0 = vsel %vm197_vm2, %v2126_v10, %v2125_v22  ;;  %v1763_v28 = vld [vmem:[%s7081_s0 + $0xae] sm:$0x1]  ;;  %v1764_v29 = vld [vmem:[%s7081_s0 + $0xb6] sm:$0x1] }
  0x6e   :  { %v6063_v30 = vld [vmem:[%s7081_s0 + $0xbe] sm:$0x1]  ;;  %v55_v58 = vld [vmem:[%s7083_s3 + $0x28] sm:$0xff]  ;;  %4470 = vmatprep.subr.mxu0 %v1861_v43  ;;  %v2129_v32 = vsel %vm200_vm3, %v2128_v15, %v2127_v0  ;;  %v1835_v34 = vsel %vm191_vm0, %v1834_v27, %v1758_v12  ;;  %v1836_v35 = vrot.slane %v1760_v19, 6  ;;  %v1838_v36 = vrot.slane %v1761_v25, 5  ;;  %135 = vperm.xlu0 %4679, %v57_v4   ;;  %v54_v47 = vld [vmem:[%s7083_s3 + $0x20] sm:$0xff] }
  0x6f   :  { %v2020_v37 = vld [vmem:[%s7081_s0 + $0x87] sm:$0x1]  ;;  %v2021_v38 = vld [vmem:[%s7081_s0 + $0x8f] sm:$0x1]  ;;  %v2131_v40 = vsel %vm203_vm4, %v2130_v16, %v2129_v32  ;;  %4471 = vmatpush3.msra.mxu0 %v1861_v43  ;;  %v1840_v41 = vrot.slane %v1762_v26, 4  ;;  %v1842_v44 = vrot.slane %v1763_v28, 3  ;;  %130 = vperm.xlu1 %4680, %v56_v20  }
  0x70   :  { %v1844_v45 = vrot.slane %v1764_v29, 2  ;;  %v2022_v46 = vld [vmem:[%s7081_s0 + $0x97] sm:$0x1]  ;;  %v6086_v48 = vld [vmem:[%s7082_s1 + $0x18] sm:$0xff]  ;;  %4433 = vmatmul.mubr.msk.f32.gmra.mxu0 %vm257_vm7, %v5378_v23  ;;  %v2133_v50 = vsel %vm206_vm5, %v2132_v18, %v2131_v40  ;;  %v1837_v51 = vsel %vm194_vm1, %v1836_v35, %v1835_v34  ;;  %v1846_v52 = vrot.slane %v6063_v30, 1  ;;  %v6141_v12 = vld [vmem:[%s7082_s1 + $0x28] sm:$0xff] }
  0x71   :  { %4456 = vmatmul.mubr.msk.f32.gmra.mxu1 %vm257_vm7, %v6086_v48  ;;  %v2023_v53 = vld [vmem:[%s7081_s0 + $0x9f] sm:$0x1]  ;;  %v2024_v54 = vld [vmem:[%s7081_s0 + $0xa7] sm:$0x1]  ;;  %v2108_v55 = vrot.slane %v2021_v38, 7  ;;  %4435 = vmatprep.mubr.msk.f32.mxu0 %vm257_vm7, %v5418_v42  ;;  %v6106_v23 = vsel %vm209_vm6, %v2134_v24, %v2133_v50  ;;  %v1839_v56 = vsel %vm197_vm2, %v1838_v36, %v1837_v51  ;;  %v2110_v62 = vrot.slane %v2022_v46, 6 }
  0x72   :  { %4458 = vmatprep.mubr.msk.f32.mxu1 %vm257_vm7, %v5369_v17  ;;  %v2025_v57 = vld [vmem:[%s7081_s0 + $0xaf] sm:$0x1]  ;;  %v2026_v31 = vld [vmem:[%s7081_s0 + $0xb7] sm:$0x1]  ;;  %v2027_v17 = vld [vmem:[%s7081_s0 + $0xbf] sm:$0x1]  ;;  %4496 = vmatprep.subr.mxu1 %v6106_v23  ;;  %v1841_v60 = vsel %vm200_vm3, %v1840_v41, %v1839_v56 }
  0x73   :  { %v61_v59 = vld [vmem:[%s7083_s3 + $0x58] sm:$0xff]  ;;  %v2109_v61 = vsel %vm191_vm0, %v2108_v55, %v2020_v37  ;;  %v2112_v63 = vrot.slane %v2023_v53, 5  ;;  %v1750_v1 = vld [vmem:[%s7081_s0 + $0x46] sm:$0x1]  ;;  %v1751_v2 = vld [vmem:[%s7081_s0 + $0x4e] sm:$0x1]  ;;  %125 = vperm.xlu0 %4679, %v55_v58   ;;  %4497 = vmatpush3.msra.mxu1 %v6106_v23  ;;  %v1843_v3 = vsel %vm203_vm4, %v1842_v44, %v1841_v60 }
  0x74   :  { %v2114_v4 = vrot.slane %v2024_v54, 4  ;;  %v2116_v6 = vrot.slane %v2025_v57, 3  ;;  %v2118_v7 = vrot.slane %v2026_v31, 2  ;;  %v1752_v8 = vld [vmem:[%s7081_s0 + $0x56] sm:$0x1]  ;;  %120 = vperm.xlu1 %4680, %v54_v47   ;;  %4436 = vmatmul.mubr.msk.f32.gmra.mxu0 %vm257_vm7, %v5427_v49  ;;  %v1845_v13 = vsel %vm206_vm5, %v1844_v45, %v1843_v3  ;;  %v59_v34 = vld [vmem:[%s7083_s3 + $0x48] sm:$0xff] }
  0x75   :  { %v60_v10 = vld [vmem:[%s7083_s3 + $0x50] sm:$0xff]  ;;  %4459 = vmatmul.mubr.msk.f32.gmra.mxu1 %vm257_vm7, %v6141_v12  ;;  %v2111_v14 = vsel %vm194_vm1, %v2110_v62, %v2109_v61  ;;  %v2120_v15 = vrot.slane %v2027_v17, 1  ;;  %v1753_v16 = vld [vmem:[%s7081_s0 + $0x5e] sm:$0x1]  ;;  %v1754_v18 = vld [vmem:[%s7081_s0 + $0x66] sm:$0x1]  ;;  %4438 = vmatprep.mubr.msk.f32.mxu0 %vm257_vm7, %v5467_v5  ;;  %v1847_v49 = vsel %vm209_vm6, %v1846_v52, %v1845_v13 }
  0x76   :  { %v1820_v19 = vrot.slane %v1751_v2, 7  ;;  %4461 = vmatprep.mubr.msk.f32.mxu1 %vm257_vm7, %v5418_v42  ;;  %v2113_v20 = vsel %vm197_vm2, %v2112_v63, %v2111_v14  ;;  %v1755_v21 = vld [vmem:[%s7081_s0 + $0x6e] sm:$0x1]  ;;  %v1756_v22 = vld [vmem:[%s7081_s0 + $0x76] sm:$0x1]  ;;  %4472 = vmatprep.subr.mxu0 %v1847_v49  ;;  %v1822_v26 = vrot.slane %v1752_v8, 6 }
  0x77   :  { %v1757_v24 = vld [vmem:[%s7081_s0 + $0x7e] sm:$0x1]  ;;  %v2115_v42 = vsel %vm200_vm3, %v2114_v4, %v2113_v20  ;;  %v1824_v27 = vrot.slane %v1753_v16, 5  ;;  %v2012_v43 = vld [vmem:[%s7081_s0 + $0x47] sm:$0x1]  ;;  %155 = vperm.xlu0 %4679, %v61_v59   ;;  %4473 = vmatpush3.msra.mxu0 %v1847_v49  ;;  %v1826_v29 = vrot.slane %v1754_v18, 4 }
  0x78   :  { %v1821_v25 = vsel %vm191_vm0, %v1820_v19, %v1750_v1  ;;  %v2013_v0 = vld [vmem:[%s7081_s0 + $0x4f] sm:$0x1]  ;;  %v2117_v28 = vsel %vm203_vm4, %v2116_v6, %v2115_v42  ;;  %v1828_v30 = vrot.slane %v1755_v21, 3  ;;  %v1830_v58 = vrot.slane %v1756_v22, 2  ;;  %v2014_v32 = vld [vmem:[%s7081_s0 + $0x57] sm:$0x1]  ;;  %150 = vperm.xlu1 %4680, %v60_v10   ;;  %4439 = vmatmul.mubr.msk.f32.gmra.mxu0 %vm257_vm7, %v5476_v11 }
  0x79   :  { %v6188_v35 = vld [vmem:[%s7082_s1 + $0x38] sm:$0xff]  ;;  %v2119_v36 = vsel %vm206_vm5, %v2118_v7, %v2117_v28  ;;  %v1823_v37 = vsel %vm194_vm1, %v1822_v26, %v1821_v25  ;;  %v1832_v38 = vrot.slane %v1757_v24, 1  ;;  %v2016_v41 = vld [vmem:[%s7081_s0 + $0x67] sm:$0x1]  ;;  %v2094_v44 = vrot.slane %v2013_v0, 7  ;;  %4441 = vmatprep.mubr.msk.f32.mxu0 %vm257_vm7, %v5517_v33  ;;  %v6239_v60 = vld [vmem:[%s7082_s1 + $0x48] sm:$0xff] }
  0x7a   :  { %4462 = vmatmul.mubr.msk.f32.gmra.mxu1 %vm257_vm7, %v6188_v35  ;;  %v2015_v40 = vld [vmem:[%s7081_s0 + $0x5f] sm:$0x1]  ;;  %v6205_v45 = vsel %vm209_vm6, %v2120_v15, %v2119_v36  ;;  %v1825_v11 = vsel %vm197_vm2, %v1824_v27, %v1823_v37  ;;  %v2017_v46 = vld [vmem:[%s7081_s0 + $0x6f] sm:$0x1]  ;;  %v2018_v47 = vld [vmem:[%s7081_s0 + $0x77] sm:$0x1] }
  0x7b   :  { %4464 = vmatprep.mubr.msk.f32.mxu1 %vm257_vm7, %v5467_v5  ;;  %v2019_v5 = vld [vmem:[%s7081_s0 + $0x7f] sm:$0x1]  ;;  %4498 = vmatprep.subr.mxu1 %v6205_v45  ;;  %v1827_v50 = vsel %vm200_vm3, %v1826_v29, %v1825_v11  ;;  %v2095_v51 = vsel %vm191_vm0, %v2094_v44, %v2012_v43  ;;  %v2096_v52 = vrot.slane %v2014_v32, 6  ;;  %v2098_v53 = vrot.slane %v2015_v40, 5  ;;  %v1742_v54 = vld [vmem:[%s7081_s0 + $0x6] sm:$0x1] }
  0x7c   :  { %v1743_v55 = vld [vmem:[%s7081_s0 + $0xe] sm:$0x1]  ;;  %145 = vperm.xlu0 %4679, %v59_v34   ;;  %4499 = vmatpush3.msra.mxu1 %v6205_v45  ;;  %v1829_v56 = vsel %vm203_vm4, %v1828_v30, %v1827_v50  ;;  %v2100_v57 = vrot.slane %v2016_v41, 4  ;;  %v2102_v31 = vrot.slane %v2017_v46, 3  ;;  %v1744_v17 = vld [vmem:[%s7081_s0 + $0x16] sm:$0x1] }
  0x7d   :  { %v58_v59 = vld [vmem:[%s7083_s3 + $0x40] sm:$0xff]  ;;  %4442 = vmatmul.mubr.msk.f32.gmra.mxu0 %vm257_vm7, %v5526_v39  ;;  %v1831_v61 = vsel %vm206_vm5, %v1830_v58, %v1829_v56  ;;  %v2097_v62 = vsel %vm194_vm1, %v2096_v52, %v2095_v51  ;;  %v2104_v63 = vrot.slane %v2018_v47, 2  ;;  %v1745_v1 = vld [vmem:[%s7081_s0 + $0x1e] sm:$0x1]  ;;  %v1806_v3 = vrot.slane %v1743_v55, 7  ;;  %v64_v46 = vld [vmem:[%s7085_s4 + $0x10] sm:$0xff] }
  0x7e   :  { %4465 = vmatmul.mubr.msk.f32.gmra.mxu1 %vm257_vm7, %v6239_v60  ;;  %v1746_v2 = vld [vmem:[%s7081_s0 + $0x26] sm:$0x1]  ;;  %v1833_v4 = vsel %vm209_vm6, %v1832_v38, %v1831_v61  ;;  %v2099_v39 = vsel %vm197_vm2, %v2098_v53, %v2097_v62  ;;  %v2106_v6 = vrot.slane %v2019_v5, 1  ;;  %v1747_v7 = vld [vmem:[%s7081_s0 + $0x2e] sm:$0x1]  ;;  %4478 = vmatprep.mubr.msk.f32.mxu0 %vm257_vm7, %v5933_v9  ;;  %v1808_v15 = vrot.slane %v1744_v17, 6 }
  0x7f   :  { %4467 = vmatprep.mubr.msk.f32.mxu1 %vm257_vm7, %v5517_v33  ;;  %v1748_v8 = vld [vmem:[%s7081_s0 + $0x36] sm:$0x1]  ;;  %v6268_v33 = vld [vmem:[%s7084_s2] sm:$0xff]  ;;  %4474 = vmatprep.subr.mxu0 %v1833_v4  ;;  %v2101_v10 = vsel %vm200_vm3, %v2100_v57, %v2099_v39  ;;  %v1749_v13 = vld [vmem:[%s7081_s0 + $0x3e] sm:$0x1]  ;;  %v1807_v14 = vsel %vm191_vm0, %v1806_v3, %v1742_v54  ;;  %v1810_v16 = vrot.slane %v1745_v1, 5 }
  0x80   :  { %v2005_v9 = vld [vmem:[%s7081_s0 + $0xf] sm:$0x1]  ;;  %140 = vperm.xlu1 %4680, %v58_v59   ;;  %v2103_v18 = vsel %vm203_vm4, %v2102_v31, %v2101_v10  ;;  %4475 = vmatpush3.msra.mxu0 %v1833_v4  ;;  %v1812_v19 = vrot.slane %v1746_v2, 4  ;;  %v1814_v49 = vrot.slane %v1747_v7, 3  ;;  %v2004_v20 = vld [vmem:[%s7081_s0 + $0x7] sm:$0x1]  ;;  %v1809_v42 = vsel %vm194_vm1, %v1808_v15, %v1807_v14 }
  0x81   :  { %v2006_v21 = vld [vmem:[%s7081_s0 + $0x17] sm:$0x1]  ;;  %v6288_v22 = vld [vmem:[%s7082_s1 + $0x58] sm:$0xff]  ;;  %v2105_v24 = vsel %vm206_vm5, %v2104_v63, %v2103_v18  ;;  %v1816_v25 = vrot.slane %v1748_v8, 2  ;;  %v2008_v27 = vld [vmem:[%s7081_s0 + $0x27] sm:$0x1]  ;;  %v1811_v28 = vsel %vm197_vm2, %v1810_v16, %v1809_v42 }
  0x82   :  { %4468 = vmatmul.mubr.msk.f32.gmra.mxu1 %vm257_vm7, %v6288_v22  ;;  %v2007_v26 = vld [vmem:[%s7081_s0 + $0x1f] sm:$0x1]  ;;  %v2080_v43 = vrot.slane %v2005_v9, 7  ;;  %v6301_v0 = vsel %vm209_vm6, %v2106_v6, %v2105_v24  ;;  %v1818_v29 = vrot.slane %v1749_v13, 1  ;;  %v2009_v30 = vld [vmem:[%s7081_s0 + $0x2f] sm:$0x1]  ;;  %v1813_v32 = vsel %vm200_vm3, %v1812_v19, %v1811_v28 }
  0x83   :  { %v2010_v58 = vld [vmem:[%s7081_s0 + $0x37] sm:$0x1]  ;;  %4504 = vmatprep.mubr.msk.f32.mxu1 %vm257_vm7, %v6268_v33  ;;  %4500 = vmatprep.subr.mxu1 %v6301_v0  ;;  %v2011_v34 = vld [vmem:[%s7081_s0 + $0x3f] sm:$0x1]  ;;  %v2082_v37 = vrot.slane %v2006_v21, 6  ;;  %v2084_v38 = vrot.slane %v2007_v26, 5  ;;  %v1815_v40 = vsel %vm203_vm4, %v1814_v49, %v1813_v32 }
  0x84   :  { %v2081_v36 = vsel %vm191_vm0, %v2080_v43, %v2004_v20  ;;  %4501 = vmatpush3.msra.mxu1 %v6301_v0  ;;  %v2086_v41 = vrot.slane %v2008_v27, 4  ;;  %v2088_v44 = vrot.slane %v2009_v30, 3  ;;  %v65_v11 = vld [vmem:[%s7085_s4 + $0x18] sm:$0xff]  ;;  %v1817_v47 = vsel %vm206_vm5, %v1816_v25, %v1815_v40  ;;  %2369 = vperm.xlu1 %4680, %v64_v46   ;;  %v63_v54 = vld [vmem:[%s7085_s4 + $0x8] sm:$0xff]  ;;  %v62_v56 = vld [vmem:[%s7085_s4] sm:$0xff] }
  0x85   :  { %v2083_v5 = vsel %vm194_vm1, %v2082_v37, %v2081_v36  ;;  %v2090_v50 = vrot.slane %v2010_v58, 2  ;;  %2374 = vperm.xlu0 %4679, %v65_v11   ;;  %v1819_v51 = vsel %vm209_vm6, %v1818_v29, %v1817_v47  ;;  %v2092_v53 = vrot.slane %v2011_v34, 1  ;;  %v4969_v17 = vld [vmem:[%s7082_s1 + $0x8] sm:$0xff]  ;;  %v4970_v62 = vld [vmem:[%s7082_s1 + $0x10] sm:$0xff]  ;;  %v3802_v1 = vld [vmem:[%s7086_s5] sm:$0xff] }
  0x86   :  { %v2085_v52 = vsel %vm197_vm2, %v2084_v38, %v2083_v5  ;;  %4476 = vmatprep.subr.mxu0 %v1819_v51  ;;  %v6349_v61 = vld [vmem:[%s7084_s2 + $0x8] sm:$0xff]  ;;  %v6359_v63 = vld [vmem:[%s7084_s2 + $0x10] sm:$0xff]  ;;  %v6377_v3 = vld [vmem:[%s7084_s2 + $0x18] sm:$0xff] }
  0x87   :  { %v2087_v55 = vsel %vm200_vm3, %v2086_v41, %v2085_v52  ;;  %4477 = vmatpush3.msra.mxu0 %v1819_v51  ;;  %v3803_v2 = vld [vmem:[%s7086_s5 + $0x8] sm:$0xff]  ;;  %v4971_v4 = vld [vmem:[%s7082_s1 + $0x20] sm:$0xff]  ;;  %v3805_v6 = vld [vmem:[%s7086_s5 + $0x18] sm:$0xff] }
  0x88   :  { %v2089_v57 = vsel %vm203_vm4, %v2088_v44, %v2087_v55  ;;  %4479 = vmatmul.mubr.msk.f32.vlgmr.msra.gmra.mxu0 %vm257_vm7, %v4969_v17  ;;  %2359 = vperm.xlu1 %4680, %v62_v56   ;;  %v6386_v39 = vld [vmem:[%s7084_s2 + $0x20] sm:$0xff]  ;;  %v6403_v7 = vld [vmem:[%s7084_s2 + $0x28] sm:$0xff]  ;;  %v4972_v8 = vld [vmem:[%s7082_s1 + $0x30] sm:$0xff] }
  0x89   :  { %v2091_v31 = vsel %vm206_vm5, %v2090_v50, %v2089_v57  ;;  %2364 = vperm.xlu0 %4679, %v63_v54   ;;  %4481 = vmatprep.mubr.msk.f32.mxu0 %vm257_vm7, %v4970_v62  ;;  %v6412_v10 = vld [vmem:[%s7084_s2 + $0x30] sm:$0xff]  ;;  %v3831_v13 = vld [vmem:[%s7087_s6 + $0x8] sm:$0xff]  ;;  %v6429_v14 = vld [vmem:[%s7084_s2 + $0x38] sm:$0xff] }
  0x8a   :  { %v6344_v59 = vsel %vm209_vm6, %v2092_v53, %v2091_v31  ;;  %v4973_v15 = vld [vmem:[%s7082_s1 + $0x40] sm:$0xff]  ;;  %v3833_v9 = vld [vmem:[%s7087_s6 + $0x18] sm:$0xff]  ;;  %v6455_v18 = vld [vmem:[%s7084_s2 + $0x48] sm:$0xff] }
  0x8b   :  { %4502 = vmatprep.subr.mxu1 %v6344_v59  ;;  %v6438_v16 = vld [vmem:[%s7084_s2 + $0x40] sm:$0xff]  ;;  %v4974_v19 = vld [vmem:[%s7082_s1 + $0x50] sm:$0xff] }
  0x8c   :  { %4503 = vmatpush3.msra.mxu1 %v6344_v59  ;;  %4482 = vmatmul.mubr.msk.f32.gmra.mxu0 %vm257_vm7, %v6086_v48  ;;  %v3804_v48 = vld [vmem:[%s7086_s5 + $0x10] sm:$0xff] }
  0x8d   :  { %4505 = vmatmul.mubr.msk.f32.vlgmr.msra.gmra.mxu1 %vm257_vm7, %v6349_v61  ;;  %4484 = vmatprep.mubr.msk.f32.mxu0 %vm257_vm7, %v4971_v4  ;;  %v6464_v49 = vld [vmem:[%s7084_s2 + $0x50] sm:$0xff] }
  0x8e   :  { %4507 = vmatprep.mubr.msk.f32.mxu1 %vm257_vm7, %v6359_v63  ;;  %3808 = vperm.xlu0 %4679, %v3802_v1  }
  0x8f   :  { %3813 = vperm.xlu1 %4680, %v3803_v2  }
  0x90   :  { %4485 = vmatmul.mubr.msk.f32.gmra.mxu0 %vm257_vm7, %v6141_v12  ;;  %v3830_v12 = vld [vmem:[%s7087_s6] sm:$0xff] }
  0x91   :  { %4508 = vmatmul.mubr.msk.f32.gmra.mxu1 %vm257_vm7, %v6377_v3  ;;  %4487 = vmatprep.mubr.msk.f32.mxu0 %vm257_vm7, %v4972_v8 }
  0x92   :  { %4510 = vmatprep.mubr.msk.f32.mxu1 %vm257_vm7, %v6386_v39  ;;  %3818 = vperm.xlu0 %4679, %v3804_v48  }
  0x93   :  { %3823 = vperm.xlu1 %4680, %v3805_v6  }
  0x94   :  { %4488 = vmatmul.mubr.msk.f32.gmra.mxu0 %vm257_vm7, %v6188_v35  ;;  %v3832_v35 = vld [vmem:[%s7087_s6 + $0x10] sm:$0xff] }
  0x95   :  { %4511 = vmatmul.mubr.msk.f32.gmra.mxu1 %vm257_vm7, %v6403_v7  ;;  %4490 = vmatprep.mubr.msk.f32.mxu0 %vm257_vm7, %v4973_v15 }
  0x96   :  { %4513 = vmatprep.mubr.msk.f32.mxu1 %vm257_vm7, %v6412_v10  ;;  %3836 = vperm.xlu0 %4679, %v3830_v12  }
  0x97   :  { %3841 = vperm.xlu1 %4680, %v3831_v13  }
  0x98   :  { %4491 = vmatmul.mubr.msk.f32.gmra.mxu0 %vm257_vm7, %v6239_v60  ;;  %v6475_v60 = vld [vmem:[%s7084_s2 + $0x58] sm:$0xff] }
  0x99   :  { %4514 = vmatmul.mubr.msk.f32.gmra.mxu1 %vm257_vm7, %v6429_v14  ;;  %4493 = vmatprep.mubr.msk.f32.mxu0 %vm257_vm7, %v4974_v19 }
  0x9a   :  { %4516 = vmatprep.mubr.msk.f32.mxu1 %vm257_vm7, %v6438_v16  ;;  %3846 = vperm.xlu0 %4679, %v3832_v35  }
  0x9b   :  { %3851 = vperm.xlu1 %4680, %v3833_v9  }
  0x9c   :  { %4494 = vmatmul.mubr.msk.f32.gmra.mxu0 %vm257_vm7, %v6288_v22 }
  0x9d   :  { %4517 = vmatmul.mubr.msk.f32.gmra.mxu1 %vm257_vm7, %v6455_v18  ;;  %4530 = vmatprep.mubr.msk.f32.mxu0 %vm257_vm7, %v6268_v33 }
  0x9e   :  { %4519 = vmatprep.mubr.msk.f32.mxu1 %vm257_vm7, %v6464_v49 }
  0xa1   :  { %4520 = vmatmul.mubr.msk.f32.gmra.mxu1 %vm257_vm7, %v6475_v60 }
  0xa2   :  { %4556 = vmatprep.mubr.msk.f32.mxu1 %vm257_vm7, %v6268_v33 }
  0xe1   :  { %v6483_v20 = vpop.permute.xlu0 %115 }
  0xe2   :  { %v6485_v21 = vpop.permute.xlu1 %105 }
  0xe5   :  { %v6487_v22 = vpop.permute.xlu0 %110 }
  0xe6   :  { %v6489_v24 = vpop.permute.xlu1 %100 }
  0xe7   :  { %v4324_v42 = vpop.f32.mrf.mxu0 }
  0xe8   :  { %v366_v25 = vadd.f32 %v4324_v42, %v6485_v21 }
  0xe9   :  { %v6492_v26 = vpop.permute.xlu0 %135  ;;  %v360_v27 = vpop.f32.mrf.mxu0 }
  0xea   :  { %v6494_v43 = vpop.permute.xlu1 %130  ;;  %421 = vst.msk [vmem:[#allocation2 + $0x8] sm:$0xff] %vm419_vm8, %v366_v25  ;;  %v361_v33 = vadd.f32 %v360_v27, %v6489_v24 }
  0xeb   :  { %v4350_v28 = vpop.f32.mrf.mxu1  ;;  %v4327_v29 = vpop.f32.mrf.mxu0 }
  0xec   :  { %v628_v30 = vadd.f32 %v4350_v28, %v6485_v21  ;;  %420 = vst.msk [vmem:[#allocation2] sm:$0xff] %vm419_vm8, %v361_v33  ;;  %v376_v58 = vadd.f32 %v4327_v29, %v6483_v20 }
  0xed   :  { %v622_v34 = vpop.f32.mrf.mxu1  ;;  %v370_v36 = vpop.f32.mrf.mxu0 }
  0xee   :  { %v6501_v32 = vpop.permute.xlu0 %125  ;;  %683 = vst.msk [vmem:[#allocation2 + $0x68] sm:$0xff] %vm419_vm8, %v628_v30  ;;  %v623_v37 = vadd.f32 %v622_v34, %v6489_v24  ;;  %423 = vst.msk [vmem:[#allocation2 + $0x18] sm:$0xff] %vm419_vm8, %v376_v58  ;;  %v371_v38 = vadd.f32 %v370_v36, %v6487_v22 }
  0xef   :  { %v6507_v40 = vpop.permute.xlu1 %120  ;;  %v4353_v41 = vpop.f32.mrf.mxu1 }
  0xf0   :  { %v4330_v44 = vpop.f32.mrf.mxu0  ;;  %682 = vst.msk [vmem:[#allocation2 + $0x60] sm:$0xff] %vm419_vm8, %v623_v37  ;;  %v638_v11 = vadd.f32 %v4353_v41, %v6483_v20  ;;  %422 = vst.msk [vmem:[#allocation2 + $0x10] sm:$0xff] %vm419_vm8, %v371_v38 }
  0xf1   :  { %v386_v46 = vadd.f32 %v4330_v44, %v6501_v32  ;;  %v632_v5 = vpop.f32.mrf.mxu1 }
  0xf2   :  { %v6513_v47 = vpop.permute.xlu0 %155  ;;  %v380_v50 = vpop.f32.mrf.mxu0  ;;  %685 = vst.msk [vmem:[#allocation2 + $0x78] sm:$0xff] %vm419_vm8, %v638_v11  ;;  %v633_v51 = vadd.f32 %v632_v5, %v6487_v22 }
  0xf3   :  { %425 = vst.msk [vmem:[#allocation2 + $0x28] sm:$0xff] %vm419_vm8, %v386_v46  ;;  %v381_v52 = vadd.f32 %v380_v50, %v6507_v40  ;;  %v6519_v53 = vpop.permute.xlu1 %150  ;;  %v4356_v54 = vpop.f32.mrf.mxu1 }
  0xf4   :  { %v4333_v55 = vpop.f32.mrf.mxu0  ;;  %684 = vst.msk [vmem:[#allocation2 + $0x70] sm:$0xff] %vm419_vm8, %v633_v51  ;;  %v648_v56 = vadd.f32 %v4356_v54, %v6501_v32 }
  0xf5   :  { %424 = vst.msk [vmem:[#allocation2 + $0x20] sm:$0xff] %vm419_vm8, %v381_v52  ;;  %v396_v57 = vadd.f32 %v4333_v55, %v6492_v26  ;;  %v642_v31 = vpop.f32.mrf.mxu1 }
  0xf6   :  { %v390_v17 = vpop.f32.mrf.mxu0  ;;  %687 = vst.msk [vmem:[#allocation2 + $0x88] sm:$0xff] %vm419_vm8, %v648_v56  ;;  %v643_v62 = vadd.f32 %v642_v31, %v6507_v40 }
  0xf7   :  { %427 = vst.msk [vmem:[#allocation2 + $0x38] sm:$0xff] %vm419_vm8, %v396_v57  ;;  %v391_v1 = vadd.f32 %v390_v17, %v6494_v43  ;;  %v6529_v2 = vpop.permute.xlu0 %145  ;;  %v4359_v4 = vpop.f32.mrf.mxu1 }
  0xf8   :  { %v4336_v48 = vpop.f32.mrf.mxu0  ;;  %686 = vst.msk [vmem:[#allocation2 + $0x80] sm:$0xff] %vm419_vm8, %v643_v62  ;;  %v658_v6 = vadd.f32 %v4359_v4, %v6492_v26 }
  0xf9   :  { %426 = vst.msk [vmem:[#allocation2 + $0x30] sm:$0xff] %vm419_vm8, %v391_v1  ;;  %v406_v8 = vadd.f32 %v4336_v48, %v6529_v2  ;;  %v652_v13 = vpop.f32.mrf.mxu1 }
  0xfa   :  { %v400_v15 = vpop.f32.mrf.mxu0  ;;  %689 = vst.msk [vmem:[#allocation2 + $0x98] sm:$0xff] %vm419_vm8, %v658_v6  ;;  %v653_v35 = vadd.f32 %v652_v13, %v6494_v43 }
  0xfb   :  { %v6535_v12 = vpop.permute.xlu1 %140  ;;  %429 = vst.msk [vmem:[#allocation2 + $0x48] sm:$0xff] %vm419_vm8, %v406_v8 }
  0xfc   :  { %v401_v9 = vadd.f32 %v400_v15, %v6535_v12  ;;  %v4362_v19 = vpop.f32.mrf.mxu1  ;;  %v4339_v42 = vpop.f32.mrf.mxu0  ;;  %688 = vst.msk [vmem:[#allocation2 + $0x90] sm:$0xff] %vm419_vm8, %v653_v35 }
  0xfd   :  { %v668_v25 = vadd.f32 %v4362_v19, %v6529_v2  ;;  %v416_v27 = vadd.f32 %v4339_v42, %v6513_v47 }
  0xfe   :  { %428 = vst.msk [vmem:[#allocation2 + $0x40] sm:$0xff] %vm419_vm8, %v401_v9  ;;  %v662_v33 = vpop.f32.mrf.mxu1  ;;  %v410_v28 = vpop.f32.mrf.mxu0 }
  0xff   :  { %691 = vst.msk [vmem:[#allocation2 + $0xa8] sm:$0xff] %vm419_vm8, %v668_v25  ;;  %v663_v29 = vadd.f32 %v662_v33, %v6535_v12  ;;  %431 = vst.msk [vmem:[#allocation2 + $0x58] sm:$0xff] %vm419_vm8, %v416_v27  ;;  %v411_v30 = vadd.f32 %v410_v28, %v6519_v53 }
 0x100   :  { %v4365_v58 = vpop.f32.mrf.mxu1 }
 0x101   :  { %690 = vst.msk [vmem:[#allocation2 + $0xa0] sm:$0xff] %vm419_vm8, %v663_v29  ;;  %v678_v34 = vadd.f32 %v4365_v58, %v6513_v47  ;;  %430 = vst.msk [vmem:[#allocation2 + $0x50] sm:$0xff] %vm419_vm8, %v411_v30 }
 0x102   :  { %v672_v36 = vpop.f32.mrf.mxu1 }
 0x103   :  { %693 = vst.msk [vmem:[#allocation2 + $0xb8] sm:$0xff] %vm419_vm8, %v678_v34  ;;  %v673_v37 = vadd.f32 %v672_v36, %v6519_v53 }
 0x105   :  { %692 = vst.msk [vmem:[#allocation2 + $0xb0] sm:$0xff] %vm419_vm8, %v673_v37 }
 0x108   :  { %v4376_v38 = vpop.f32.mrf.mxu0 }
 0x109   :  { %v890_v41 = vadd.f32 %v4376_v38, %v6485_v21 }
 0x10a   :  { %v884_v44 = vpop.f32.mrf.mxu0 }
 0x10b   :  { %945 = vst.msk [vmem:[#allocation2 + $0xc8] sm:$0xff] %vm419_vm8, %v890_v41  ;;  %v885_v11 = vadd.f32 %v884_v44, %v6489_v24 }
 0x10c   :  { %v4402_v46 = vpop.f32.mrf.mxu1  ;;  %v4379_v5 = vpop.f32.mrf.mxu0 }
 0x10d   :  { %v1152_v50 = vadd.f32 %v4402_v46, %v6485_v21  ;;  %944 = vst.msk [vmem:[#allocation2 + $0xc0] sm:$0xff] %vm419_vm8, %v885_v11  ;;  %v900_v51 = vadd.f32 %v4379_v5, %v6483_v20 }
 0x10e   :  { %v1146_v52 = vpop.f32.mrf.mxu1  ;;  %v894_v54 = vpop.f32.mrf.mxu0 }
 0x10f   :  { %1207 = vst.msk [vmem:[#allocation2 + $0x128] sm:$0xff] %vm419_vm8, %v1152_v50  ;;  %v1147_v55 = vadd.f32 %v1146_v52, %v6489_v24  ;;  %947 = vst.msk [vmem:[#allocation2 + $0xd8] sm:$0xff] %vm419_vm8, %v900_v51  ;;  %v895_v56 = vadd.f32 %v894_v54, %v6487_v22 }
 0x110   :  { %v4405_v57 = vpop.f32.mrf.mxu1  ;;  %v4382_v31 = vpop.f32.mrf.mxu0 }
 0x111   :  { %1206 = vst.msk [vmem:[#allocation2 + $0x120] sm:$0xff] %vm419_vm8, %v1147_v55  ;;  %v1162_v17 = vadd.f32 %v4405_v57, %v6483_v20  ;;  %946 = vst.msk [vmem:[#allocation2 + $0xd0] sm:$0xff] %vm419_vm8, %v895_v56  ;;  %v910_v62 = vadd.f32 %v4382_v31, %v6501_v32 }
 0x112   :  { %v1156_v1 = vpop.f32.mrf.mxu1  ;;  %v904_v4 = vpop.f32.mrf.mxu0 }
 0x113   :  { %1209 = vst.msk [vmem:[#allocation2 + $0x138] sm:$0xff] %vm419_vm8, %v1162_v17  ;;  %v1157_v48 = vadd.f32 %v1156_v1, %v6487_v22  ;;  %949 = vst.msk [vmem:[#allocation2 + $0xe8] sm:$0xff] %vm419_vm8, %v910_v62  ;;  %v905_v6 = vadd.f32 %v904_v4, %v6507_v40 }
 0x114   :  { %v4408_v8 = vpop.f32.mrf.mxu1  ;;  %v4385_v13 = vpop.f32.mrf.mxu0 }
 0x115   :  { %1208 = vst.msk [vmem:[#allocation2 + $0x130] sm:$0xff] %vm419_vm8, %v1157_v48  ;;  %v1172_v15 = vadd.f32 %v4408_v8, %v6501_v32  ;;  %948 = vst.msk [vmem:[#allocation2 + $0xe0] sm:$0xff] %vm419_vm8, %v905_v6  ;;  %v920_v35 = vadd.f32 %v4385_v13, %v6492_v26 }
 0x116   :  { %v1166_v9 = vpop.f32.mrf.mxu1  ;;  %v914_v19 = vpop.f32.mrf.mxu0 }
 0x117   :  { %1211 = vst.msk [vmem:[#allocation2 + $0x148] sm:$0xff] %vm419_vm8, %v1172_v15  ;;  %v1167_v42 = vadd.f32 %v1166_v9, %v6507_v40  ;;  %951 = vst.msk [vmem:[#allocation2 + $0xf8] sm:$0xff] %vm419_vm8, %v920_v35  ;;  %v915_v25 = vadd.f32 %v914_v19, %v6494_v43 }
 0x118   :  { %v4411_v27 = vpop.f32.mrf.mxu1  ;;  %v4388_v33 = vpop.f32.mrf.mxu0 }
 0x119   :  { %1210 = vst.msk [vmem:[#allocation2 + $0x140] sm:$0xff] %vm419_vm8, %v1167_v42  ;;  %v1182_v28 = vadd.f32 %v4411_v27, %v6492_v26  ;;  %950 = vst.msk [vmem:[#allocation2 + $0xf0] sm:$0xff] %vm419_vm8, %v915_v25  ;;  %v930_v29 = vadd.f32 %v4388_v33, %v6529_v2 }
 0x11a   :  { %v1176_v30 = vpop.f32.mrf.mxu1  ;;  %v924_v58 = vpop.f32.mrf.mxu0 }
 0x11b   :  { %1213 = vst.msk [vmem:[#allocation2 + $0x158] sm:$0xff] %vm419_vm8, %v1182_v28  ;;  %v1177_v34 = vadd.f32 %v1176_v30, %v6494_v43  ;;  %953 = vst.msk [vmem:[#allocation2 + $0x108] sm:$0xff] %vm419_vm8, %v930_v29  ;;  %v925_v36 = vadd.f32 %v924_v58, %v6535_v12 }
 0x11c   :  { %v4414_v37 = vpop.f32.mrf.mxu1  ;;  %v4391_v38 = vpop.f32.mrf.mxu0 }
 0x11d   :  { %1212 = vst.msk [vmem:[#allocation2 + $0x150] sm:$0xff] %vm419_vm8, %v1177_v34  ;;  %v1192_v41 = vadd.f32 %v4414_v37, %v6529_v2  ;;  %952 = vst.msk [vmem:[#allocation2 + $0x100] sm:$0xff] %vm419_vm8, %v925_v36  ;;  %v940_v44 = vadd.f32 %v4391_v38, %v6513_v47 }
 0x11e   :  { %v1186_v11 = vpop.f32.mrf.mxu1  ;;  %v934_v46 = vpop.f32.mrf.mxu0 }
 0x11f   :  { %1215 = vst.msk [vmem:[#allocation2 + $0x168] sm:$0xff] %vm419_vm8, %v1192_v41  ;;  %v1187_v5 = vadd.f32 %v1186_v11, %v6535_v12  ;;  %955 = vst.msk [vmem:[#allocation2 + $0x118] sm:$0xff] %vm419_vm8, %v940_v44  ;;  %v935_v50 = vadd.f32 %v934_v46, %v6519_v53 }
 0x120   :  { %v4417_v51 = vpop.f32.mrf.mxu1 }
 0x121   :  { %1214 = vst.msk [vmem:[#allocation2 + $0x160] sm:$0xff] %vm419_vm8, %v1187_v5  ;;  %v1202_v52 = vadd.f32 %v4417_v51, %v6513_v47  ;;  %954 = vst.msk [vmem:[#allocation2 + $0x110] sm:$0xff] %vm419_vm8, %v935_v50 }
 0x122   :  { %v1196_v54 = vpop.f32.mrf.mxu1 }
 0x123   :  { %1217 = vst.msk [vmem:[#allocation2 + $0x178] sm:$0xff] %vm419_vm8, %v1202_v52  ;;  %v1197_v55 = vadd.f32 %v1196_v54, %v6519_v53 }
 0x125   :  { %1216 = vst.msk [vmem:[#allocation2 + $0x170] sm:$0xff] %vm419_vm8, %v1197_v55 }
 0x128   :  { %v4428_v56 = vpop.f32.mrf.mxu0 }
 0x129   :  { %v1414_v57 = vadd.f32 %v4428_v56, %v6485_v21 }
 0x12a   :  { %v1408_v31 = vpop.f32.mrf.mxu0 }
 0x12b   :  { %1469 = vst.msk [vmem:[#allocation2 + $0x188] sm:$0xff] %vm419_vm8, %v1414_v57  ;;  %v1409_v17 = vadd.f32 %v1408_v31, %v6489_v24 }
 0x12c   :  { %v4454_v62 = vpop.f32.mrf.mxu1  ;;  %v4431_v1 = vpop.f32.mrf.mxu0 }
 0x12d   :  { %v1676_v4 = vadd.f32 %v4454_v62, %v6485_v21  ;;  %1468 = vst.msk [vmem:[#allocation2 + $0x180] sm:$0xff] %vm419_vm8, %v1409_v17  ;;  %v1424_v48 = vadd.f32 %v4431_v1, %v6483_v20 }
 0x12e   :  { %v1670_v6 = vpop.f32.mrf.mxu1  ;;  %v1418_v8 = vpop.f32.mrf.mxu0 }
 0x12f   :  { %1731 = vst.msk [vmem:[#allocation2 + $0x1e8] sm:$0xff] %vm419_vm8, %v1676_v4  ;;  %v1671_v13 = vadd.f32 %v1670_v6, %v6489_v24  ;;  %1471 = vst.msk [vmem:[#allocation2 + $0x198] sm:$0xff] %vm419_vm8, %v1424_v48  ;;  %v1419_v15 = vadd.f32 %v1418_v8, %v6487_v22 }
 0x130   :  { %v4434_v9 = vpop.f32.mrf.mxu0 }
 0x131   :  { %v4457_v35 = vpop.f32.mrf.mxu1  ;;  %1730 = vst.msk [vmem:[#allocation2 + $0x1e0] sm:$0xff] %vm419_vm8, %v1671_v13  ;;  %1470 = vst.msk [vmem:[#allocation2 + $0x190] sm:$0xff] %vm419_vm8, %v1419_v15  ;;  %v1434_v42 = vadd.f32 %v4434_v9, %v6501_v32  ;;  %v2037_v9 = vld [vmem:[#allocation2 + $0x8] sm:$0xff] }
 0x132   :  { %v1686_v19 = vadd.f32 %v4457_v35, %v6483_v20  ;;  %v1428_v27 = vpop.f32.mrf.mxu0 }
 0x133   :  { %v1680_v25 = vpop.f32.mrf.mxu1  ;;  %1473 = vst.msk [vmem:[#allocation2 + $0x1a8] sm:$0xff] %vm419_vm8, %v1434_v42  ;;  %v1429_v28 = vadd.f32 %v1428_v27, %v6507_v40 }
 0x134   :  { %1733 = vst.msk [vmem:[#allocation2 + $0x1f8] sm:$0xff] %vm419_vm8, %v1686_v19  ;;  %v1681_v33 = vadd.f32 %v1680_v25, %v6487_v22  ;;  %v4437_v30 = vpop.f32.mrf.mxu0 }
 0x135   :  { %v4460_v29 = vpop.f32.mrf.mxu1  ;;  %1472 = vst.msk [vmem:[#allocation2 + $0x1a0] sm:$0xff] %vm419_vm8, %v1429_v28  ;;  %v1444_v34 = vadd.f32 %v4437_v30, %v6492_v26 }
 0x136   :  { %1732 = vst.msk [vmem:[#allocation2 + $0x1f0] sm:$0xff] %vm419_vm8, %v1681_v33  ;;  %v1696_v58 = vadd.f32 %v4460_v29, %v6501_v32  ;;  %v1438_v37 = vpop.f32.mrf.mxu0  ;;  %v2036_v29 = vld [vmem:[#allocation2] sm:$0xff] }
 0x137   :  { %v1690_v36 = vpop.f32.mrf.mxu1  ;;  %1475 = vst.msk [vmem:[#allocation2 + $0x1b8] sm:$0xff] %vm419_vm8, %v1444_v34  ;;  %v1439_v41 = vadd.f32 %v1438_v37, %v6494_v43  ;;  %v2039_v37 = vld [vmem:[#allocation2 + $0x18] sm:$0xff] }
 0x138   :  { %1735 = vst.msk [vmem:[#allocation2 + $0x208] sm:$0xff] %vm419_vm8, %v1696_v58  ;;  %v1691_v38 = vadd.f32 %v1690_v36, %v6507_v40  ;;  %v4440_v11 = vpop.f32.mrf.mxu0 }
 0x139   :  { %1474 = vst.msk [vmem:[#allocation2 + $0x1b0] sm:$0xff] %vm419_vm8, %v1439_v41  ;;  %v1454_v5 = vadd.f32 %v4440_v11, %v6529_v2 }
 0x13a   :  { %v4463_v44 = vpop.f32.mrf.mxu1  ;;  %1734 = vst.msk [vmem:[#allocation2 + $0x200] sm:$0xff] %vm419_vm8, %v1691_v38  ;;  %v1448_v51 = vpop.f32.mrf.mxu0 }
 0x13b   :  { %v1706_v46 = vadd.f32 %v4463_v44, %v6492_v26  ;;  %1477 = vst.msk [vmem:[#allocation2 + $0x1c8] sm:$0xff] %vm419_vm8, %v1454_v5  ;;  %v1449_v54 = vadd.f32 %v1448_v51, %v6535_v12 }
 0x13c   :  { %v1700_v50 = vpop.f32.mrf.mxu1 }
 0x13d   :  { %1737 = vst.msk [vmem:[#allocation2 + $0x218] sm:$0xff] %vm419_vm8, %v1706_v46  ;;  %v1701_v52 = vadd.f32 %v1700_v50, %v6494_v43  ;;  %v4443_v56 = vpop.f32.mrf.mxu0  ;;  %1476 = vst.msk [vmem:[#allocation2 + $0x1c0] sm:$0xff] %vm419_vm8, %v1449_v54 }
 0x13e   :  { %v4466_v55 = vpop.f32.mrf.mxu1  ;;  %v1464_v31 = vadd.f32 %v4443_v56, %v6513_v47 }
 0x13f   :  { %1736 = vst.msk [vmem:[#allocation2 + $0x210] sm:$0xff] %vm419_vm8, %v1701_v52  ;;  %v1716_v57 = vadd.f32 %v4466_v55, %v6529_v2  ;;  %v1458_v62 = vpop.f32.mrf.mxu0  ;;  %v2041_v52 = vld [vmem:[#allocation2 + $0x28] sm:$0xff] }
 0x140   :  { %v1710_v17 = vpop.f32.mrf.mxu1  ;;  %1479 = vst.msk [vmem:[#allocation2 + $0x1d8] sm:$0xff] %vm419_vm8, %v1464_v31  ;;  %v1459_v4 = vadd.f32 %v1458_v62, %v6519_v53  ;;  %v2040_v31 = vld [vmem:[#allocation2 + $0x20] sm:$0xff] }
 0x141   :  { %1739 = vst.msk [vmem:[#allocation2 + $0x228] sm:$0xff] %vm419_vm8, %v1716_v57  ;;  %v1711_v1 = vadd.f32 %v1710_v17, %v6535_v12 }
 0x142   :  { %v4469_v48 = vpop.f32.mrf.mxu1  ;;  %1478 = vst.msk [vmem:[#allocation2 + $0x1d0] sm:$0xff] %vm419_vm8, %v1459_v4 }
 0x143   :  { %1738 = vst.msk [vmem:[#allocation2 + $0x220] sm:$0xff] %vm419_vm8, %v1711_v1  ;;  %v1726_v6 = vadd.f32 %v4469_v48, %v6513_v47 }
 0x144   :  { %v1720_v8 = vpop.f32.mrf.mxu1 }
 0x145   :  { %1741 = vst.msk [vmem:[#allocation2 + $0x238] sm:$0xff] %vm419_vm8, %v1726_v6  ;;  %v1721_v13 = vadd.f32 %v1720_v8, %v6519_v53 }
 0x147   :  { %1740 = vst.msk [vmem:[#allocation2 + $0x230] sm:$0xff] %vm419_vm8, %v1721_v13 }
 0x148   :  { %v4480_v15 = vpop.f32.mrf.mxu0 }
 0x149   :  { %v1938_v35 = vadd.f32 %v4480_v15, %v6485_v21 }
 0x14a   :  { %v1932_v19 = vpop.f32.mrf.mxu0 }
 0x14b   :  { %1993 = vst.msk [vmem:[#allocation2 + $0x248] sm:$0xff] %vm419_vm8, %v1938_v35  ;;  %v1933_v42 = vadd.f32 %v1932_v19, %v6489_v24 }
 0x14c   :  { %v4483_v27 = vpop.f32.mrf.mxu0 }
 0x14d   :  { %v4506_v25 = vpop.f32.mrf.mxu1  ;;  %1992 = vst.msk [vmem:[#allocation2 + $0x240] sm:$0xff] %vm419_vm8, %v1933_v42  ;;  %v1948_v28 = vadd.f32 %v4483_v27, %v6483_v20  ;;  %v2038_v20 = vld [vmem:[#allocation2 + $0x10] sm:$0xff] }
 0x14e   :  { %v2302_v33 = vadd.f32 %v4506_v25, %v2037_v9  ;;  %v1942_v58 = vpop.f32.mrf.mxu0 }
 0x14f   :  { %v2242_v30 = vpop.f32.mrf.mxu1  ;;  %1995 = vst.msk [vmem:[#allocation2 + $0x258] sm:$0xff] %vm419_vm8, %v1948_v28  ;;  %v1943_v21 = vadd.f32 %v1942_v58, %v6487_v22 }
 0x150   :  { %v3963_v34 = vmul.f32 -1.442695, %v2302_v33  ;;  %v2301_v36 = vadd.f32 %v2242_v30, %v2036_v29  ;;  %v4486_v41 = vpop.f32.mrf.mxu0 }
 0x151   :  { %v4509_v38 = vpop.f32.mrf.mxu1  ;;  %1994 = vst.msk [vmem:[#allocation2 + $0x250] sm:$0xff] %vm419_vm8, %v1943_v21  ;;  %v1958_v11 = vadd.f32 %v4486_v41, %v6501_v32  ;;  %v6675_v41 = vpop.permute.xlu0 %2374 }
 0x152   :  { %4681 = vpow2.f32 %v3963_v34  ;;  %v3962_v24 = vmul.f32 -1.442695, %v2301_v36  ;;  %v2304_v44 = vadd.f32 %v4509_v38, %v2039_v37  ;;  %v1952_v5 = vpop.f32.mrf.mxu0 }
 0x153   :  { %v2252_v46 = vpop.f32.mrf.mxu1  ;;  %1997 = vst.msk [vmem:[#allocation2 + $0x268] sm:$0xff] %vm419_vm8, %v1958_v11  ;;  %v1953_v22 = vadd.f32 %v1952_v5, %v6507_v40  ;;  %v2043_v40 = vld [vmem:[#allocation2 + $0x38] sm:$0xff] }
 0x154   :  { %4683 = vpow2.f32 %v3962_v24  ;;  %v3965_v50 = vmul.f32 -1.442695, %v2304_v44  ;;  %v2303_v51 = vadd.f32 %v2252_v46, %v2038_v20  ;;  %v4489_v55 = vpop.f32.mrf.mxu0  ;;  %v6677_v24 = vpop.permute.xlu1 %2369 }
 0x155   :  { %v4512_v54 = vpop.f32.mrf.mxu1  ;;  %1996 = vst.msk [vmem:[#allocation2 + $0x260] sm:$0xff] %vm419_vm8, %v1953_v22  ;;  %v1968_v32 = vadd.f32 %v4489_v55, %v6492_v26  ;;  %v2042_v26 = vld [vmem:[#allocation2 + $0x30] sm:$0xff]  ;;  %v6679_v46 = vpop.permute.xlu0 %2364 }
 0x156   :  { %4685 = vpow2.f32 %v3965_v50  ;;  %v3964_v56 = vmul.f32 -1.442695, %v2303_v51  ;;  %v2330_v57 = vadd.f32 %v4512_v54, %v2041_v52  ;;  %v1962_v62 = vpop.f32.mrf.mxu0 }
 0x157   :  { %v2262_v17 = vpop.f32.mrf.mxu1  ;;  %1999 = vst.msk [vmem:[#allocation2 + $0x278] sm:$0xff] %vm419_vm8, %v1968_v32  ;;  %v1963_v4 = vadd.f32 %v1962_v62, %v6494_v43 }
 0x158   :  { %4687 = vpow2.f32 %v3964_v56  ;;  %v2329_v1 = vadd.f32 %v2262_v17, %v2040_v31  ;;  %v4492_v6 = vpop.f32.mrf.mxu0  ;;  %v3967_v8 = vmul.f32 -1.442695, %v2330_v57  ;;  %v6682_v52 = vpop.permute.xlu1 %2359 }
 0x159   :  { %v4515_v48 = vpop.f32.mrf.mxu1  ;;  %1998 = vst.msk [vmem:[#allocation2 + $0x270] sm:$0xff] %vm419_vm8, %v1963_v4  ;;  %v1978_v15 = vadd.f32 %v4492_v6, %v6529_v2 }
 0x15a   :  { %v2332_v13 = vadd.f32 %v4515_v48, %v2043_v40  ;;  %v3966_v35 = vmul.f32 -1.442695, %v2329_v1  ;;  %v1972_v19 = vpop.f32.mrf.mxu0  ;;  %4689 = vpow2.f32 %v3967_v8  ;;  %v2045_v1 = vld [vmem:[#allocation2 + $0x48] sm:$0xff]  ;;  %v2044_v8 = vld [vmem:[#allocation2 + $0x40] sm:$0xff] }
 0x15b   :  { %v2272_v9 = vpop.f32.mrf.mxu1  ;;  %2001 = vst.msk [vmem:[#allocation2 + $0x288] sm:$0xff] %vm419_vm8, %v1978_v15  ;;  %v1973_v27 = vadd.f32 %v1972_v19, %v6535_v12 }
 0x15c   :  { %v3969_v42 = vmul.f32 -1.442695, %v2332_v13  ;;  %v2331_v25 = vadd.f32 %v2272_v9, %v2042_v26  ;;  %v4495_v43 = vpop.f32.mrf.mxu0  ;;  %4691 = vpow2.f32 %v3966_v35  ;;  %v2047_v9 = vld [vmem:[#allocation2 + $0x58] sm:$0xff] }
 0x15d   :  { %2000 = vst.msk [vmem:[#allocation2 + $0x280] sm:$0xff] %vm419_vm8, %v1973_v27  ;;  %v1988_v28 = vadd.f32 %v4495_v43, %v6513_v47  ;;  %v4518_v47 = vpop.f32.mrf.mxu1 }
 0x15e   :  { %v3968_v33 = vmul.f32 -1.442695, %v2331_v25  ;;  %v1982_v2 = vpop.f32.mrf.mxu0  ;;  %4693 = vpow2.f32 %v3969_v42  ;;  %v2378_v51 = vadd.f32 %v4518_v47, %v6679_v46  ;;  %v2046_v25 = vld [vmem:[#allocation2 + $0x50] sm:$0xff] }
 0x15f   :  { %v4682_v29 = vpop.eup %4681  ;;  %2003 = vst.msk [vmem:[#allocation2 + $0x298] sm:$0xff] %vm419_vm8, %v1988_v28  ;;  %v1983_v58 = vadd.f32 %v1982_v2, %v6519_v53  ;;  %v2282_v44 = vpop.f32.mrf.mxu1 }
 0x160   :  { %v2318_v30 = vadd.f32 1.0, %v4682_v29  ;;  %4695 = vpow2.f32 %v3968_v33  ;;  %v2377_v57 = vadd.f32 %v6682_v52, %v2282_v44 }
 0x161   :  { %v4684_v34 = vpop.eup %4683  ;;  %2002 = vst.msk [vmem:[#allocation2 + $0x290] sm:$0xff] %vm419_vm8, %v1983_v58  ;;  %v4521_v5 = vpop.f32.mrf.mxu1 }
 0x162   :  { %4697 = vrcp.f32 %v2318_v30  ;;  %v2317_v12 = vadd.f32 1.0, %v4684_v34  ;;  %v2380_v40 = vadd.f32 %v4521_v5, %v6675_v41 }
 0x163   :  { %v4686_v36 = vpop.eup %4685  ;;  %v2292_v17 = vpop.f32.mrf.mxu1 }
 0x164   :  { %4699 = vrcp.f32 %v2317_v12  ;;  %v2320_v21 = vadd.f32 1.0, %v4686_v36  ;;  %v2379_v15 = vadd.f32 %v6677_v24, %v2292_v17 }
 0x165   :  { %v4688_v37 = vpop.eup %4687 }
 0x166   :  { %4701 = vrcp.f32 %v2320_v21  ;;  %v2319_v38 = vadd.f32 1.0, %v4688_v37 }
 0x167   :  { %v4690_v53 = vpop.eup %4689 }
 0x168   :  { %4703 = vrcp.f32 %v2319_v38  ;;  %v2346_v54 = vadd.f32 1.0, %v4690_v53 }
 0x169   :  { %v4692_v11 = vpop.eup %4691 }
 0x16a   :  { %v2345_v31 = vadd.f32 1.0, %v4692_v11  ;;  %4705 = vrcp.f32 %v2346_v54 }
 0x16b   :  { %v4694_v20 = vpop.eup %4693 }
 0x16c   :  { %v2348_v55 = vadd.f32 1.0, %v4694_v20 }
 0x16d   :  { %v4696_v50 = vpop.eup %4695 }
 0x16e   :  { %v2347_v62 = vadd.f32 1.0, %v4696_v50  ;;  %4707 = vrcp.f32 %v2348_v55 }
 0x16f   :  { %v4698_v22 = vpop.eup %4697  ;;  %4709 = vrcp.f32 %v2345_v31 }
 0x170   :  { %v2382_v56 = vmul.f32 %v4698_v22, %v2378_v51  ;;  %4711 = vrcp.f32 %v2347_v62  ;;  %v2413_v62 = vld [vmem:[#allocation2 + $0x80] sm:$0xff] }
 0x171   :  { %v4700_v32 = vpop.eup %4699 }
 0x172   :  { %v2381_v4 = vmul.f32 %v4700_v32, %v2377_v57  ;;  %v2386_v6 = vadd.f32 %v2382_v56, %v2045_v1  ;;  %v2414_v57 = vld [vmem:[#allocation2 + $0x88] sm:$0xff] }
 0x173   :  { %v4702_v48 = vpop.eup %4701 }
 0x174   :  { %v2384_v13 = vmul.f32 %v4702_v48, %v2380_v40  ;;  %v2385_v26 = vadd.f32 %v2381_v4, %v2044_v8  ;;  %4713 = vtanh.f32 %v2386_v6  ;;  %v2416_v40 = vld [vmem:[#allocation2 + $0x98] sm:$0xff] }
 0x175   :  { %v4704_v35 = vpop.eup %4703 }
 0x176   :  { %v2388_v19 = vadd.f32 %v2384_v13, %v2047_v9  ;;  %v2383_v42 = vmul.f32 %v4704_v35, %v2379_v15  ;;  %v2415_v15 = vld [vmem:[#allocation2 + $0x90] sm:$0xff] }
 0x177   :  { %v4706_v43 = vpop.eup %4705 }
 0x178   :  { %4715 = vtanh.f32 %v2388_v19  ;;  %v2387_v27 = vadd.f32 %v2383_v42, %v2046_v25  ;;  %v2394_v37 = vsub.f32 1.0, %v4706_v43  ;;  %v2402_v50 = vmul.f32 %v4706_v43, %v6301_v0  ;;  %v6732_v0 = vld [vmem:[%s7084_s2] sm:$0xff] }
 0x179   :  { %4717 = vtanh.f32 %v2385_v26 }
 0x17a   :  { %4719 = vtanh.f32 %v2387_v27 }
 0x17b   :  { %v4708_v33 = vpop.eup %4707 }
 0x17c   :  { %v4710_v28 = vpop.eup %4709  ;;  %v2396_v30 = vsub.f32 1.0, %v4708_v33  ;;  %v2404_v36 = vmul.f32 %v4708_v33, %v6106_v23 }
 0x17d   :  { %v4712_v29 = vpop.eup %4711  ;;  %v2393_v38 = vsub.f32 1.0, %v4710_v28  ;;  %v2401_v22 = vmul.f32 %v4710_v28, %v6344_v59  ;;  %v2410_v59 = vld [vmem:[#allocation2 + $0x68] sm:$0xff] }
 0x17e   :  { %v2395_v21 = vsub.f32 1.0, %v4712_v29  ;;  %v2403_v11 = vmul.f32 %v4712_v29, %v6205_v45 }
 0x181   :  { %v4714_v2 = vpop.eup %4713 }
 0x182   :  { %v2398_v20 = vmul.f32 %v4714_v2, %v2394_v37 }
 0x184   :  { %v6697_v23 = vadd.f32 %v2402_v50, %v2398_v20 }
 0x185   :  { %v4716_v58 = vpop.eup %4715 }
 0x186   :  { %v4718_v34 = vpop.eup %4717  ;;  %v2400_v12 = vmul.f32 %v4716_v58, %v2396_v30 }
 0x187   :  { %v4720_v47 = vpop.eup %4719  ;;  %v2397_v51 = vmul.f32 %v4718_v34, %v2393_v38 }
 0x188   :  { %v6688_v44 = vadd.f32 %v2404_v36, %v2400_v12  ;;  %v2399_v53 = vmul.f32 %v4720_v47, %v2395_v21 }
 0x189   :  { %v6702_v45 = vadd.f32 %v2401_v22, %v2397_v51 }
 0x18a   :  { %4522 = vmatprep.subr.mxu0 %v6688_v44  ;;  %v6692_v5 = vadd.f32 %v2403_v11, %v2399_v53 }
 0x18b   :  { %4523 = vmatpush3.msra.mxu0 %v6688_v44 }
 0x18c   :  { %4524 = vmatprep.subr.mxu0 %v6692_v5 }
 0x18d   :  { %4525 = vmatpush3.msra.mxu0 %v6692_v5 }
 0x18e   :  { %4526 = vmatprep.subr.mxu0 %v6697_v23 }
 0x18f   :  { %4527 = vmatpush3.msra.mxu0 %v6697_v23 }
 0x190   :  { %4528 = vmatprep.subr.mxu0 %v6702_v45 }
 0x191   :  { %4529 = vmatpush3.msra.mxu0 %v6702_v45 }
 0x192   :  { %4531 = vmatmul.mubr.msk.f32.vlgmr.msra.gmra.mxu0 %vm257_vm7, %v6349_v61 }
 0x193   :  { %4533 = vmatprep.mubr.msk.f32.mxu0 %vm257_vm7, %v6359_v63 }
 0x196   :  { %4534 = vmatmul.mubr.msk.f32.gmra.mxu0 %vm257_vm7, %v6377_v3  ;;  %v2409_v3 = vld [vmem:[#allocation2 + $0x60] sm:$0xff] }
 0x197   :  { %4536 = vmatprep.mubr.msk.f32.mxu0 %vm257_vm7, %v6386_v39 }
 0x19a   :  { %4537 = vmatmul.mubr.msk.f32.gmra.mxu0 %vm257_vm7, %v6403_v7 }
 0x19b   :  { %4539 = vmatprep.mubr.msk.f32.mxu0 %vm257_vm7, %v6412_v10 }
 0x19e   :  { %4540 = vmatmul.mubr.msk.f32.gmra.mxu0 %vm257_vm7, %v6429_v14  ;;  %v2412_v14 = vld [vmem:[#allocation2 + $0x78] sm:$0xff] }
 0x19f   :  { %4542 = vmatprep.mubr.msk.f32.mxu0 %vm257_vm7, %v6438_v16 }
 0x1a2   :  { %4543 = vmatmul.mubr.msk.f32.gmra.mxu0 %vm257_vm7, %v6455_v18 }
 0x1a3   :  { %4545 = vmatprep.mubr.msk.f32.mxu0 %vm257_vm7, %v6464_v49 }
 0x1a6   :  { %4546 = vmatmul.mubr.msk.f32.gmra.mxu0 %vm257_vm7, %v6475_v60  ;;  %v2411_v60 = vld [vmem:[#allocation2 + $0x70] sm:$0xff] }
 0x1a7   :  { %4582 = vmatprep.mubr.msk.f32.mxu0 %vm257_vm7, %v6732_v0 }
 0x252   :  { %v4532_v61 = vpop.f32.mrf.mxu0 }
 0x253   :  { %v2547_v63 = vadd.f32 %v4532_v61, %v2410_v59 }
 0x254   :  { %v2487_v39 = vpop.f32.mrf.mxu0 }
 0x255   :  { %v3983_v7 = vmul.f32 -1.442695, %v2547_v63  ;;  %v2546_v10 = vadd.f32 %v2487_v39, %v2409_v3  ;;  %v2418_v63 = vld [vmem:[#allocation2 + $0xa8] sm:$0xff] }
 0x256   :  { %v4535_v16 = vpop.f32.mrf.mxu0 }
 0x257   :  { %4721 = vpow2.f32 %v3983_v7  ;;  %v3982_v18 = vmul.f32 -1.442695, %v2546_v10  ;;  %v2549_v49 = vadd.f32 %v4535_v16, %v2412_v14  ;;  %v2417_v14 = vld [vmem:[#allocation2 + $0xa0] sm:$0xff] }
 0x258   :  { %v2497_v54 = vpop.f32.mrf.mxu0 }
 0x259   :  { %4723 = vpow2.f32 %v3982_v18  ;;  %v3985_v55 = vmul.f32 -1.442695, %v2549_v49  ;;  %v2548_v56 = vadd.f32 %v2497_v54, %v2411_v60  ;;  %v2420_v54 = vld [vmem:[#allocation2 + $0xb8] sm:$0xff] }
 0x25a   :  { %v4538_v32 = vpop.f32.mrf.mxu0 }
 0x25b   :  { %4725 = vpow2.f32 %v3985_v55  ;;  %v3984_v31 = vmul.f32 -1.442695, %v2548_v56  ;;  %v2575_v17 = vadd.f32 %v4538_v32, %v2414_v57  ;;  %v2419_v57 = vld [vmem:[#allocation2 + $0xb0] sm:$0xff] }
 0x25c   :  { %v2507_v1 = vpop.f32.mrf.mxu0 }
 0x25d   :  { %4727 = vpow2.f32 %v3984_v31  ;;  %v2574_v4 = vadd.f32 %v2507_v1, %v2413_v62  ;;  %v3987_v6 = vmul.f32 -1.442695, %v2575_v17 }
 0x25e   :  { %v4541_v48 = vpop.f32.mrf.mxu0 }
 0x25f   :  { %v2577_v8 = vadd.f32 %v4541_v48, %v2416_v40  ;;  %v3986_v13 = vmul.f32 -1.442695, %v2574_v4  ;;  %4729 = vpow2.f32 %v3987_v6 }
 0x260   :  { %v2517_v35 = vpop.f32.mrf.mxu0 }
 0x261   :  { %v3989_v26 = vmul.f32 -1.442695, %v2577_v8  ;;  %v2576_v9 = vadd.f32 %v2517_v35, %v2415_v15  ;;  %4731 = vpow2.f32 %v3986_v13 }
 0x262   :  { %v4544_v2 = vpop.f32.mrf.mxu0 }
 0x263   :  { %v3988_v19 = vmul.f32 -1.442695, %v2576_v9  ;;  %4733 = vpow2.f32 %v3989_v26  ;;  %v2603_v47 = vadd.f32 %v4544_v2, %v6679_v46  ;;  %v6777_v2 = vld [vmem:[%s7084_s2 + $0x18] sm:$0xff] }
 0x264   :  { %v4722_v42 = vpop.eup %4721  ;;  %v2527_v58 = vpop.f32.mrf.mxu0 }
 0x265   :  { %v2563_v25 = vadd.f32 1.0, %v4722_v42  ;;  %4735 = vpow2.f32 %v3988_v19  ;;  %v2602_v50 = vadd.f32 %v2527_v58, %v6682_v52  ;;  %v6791_v58 = vld [vmem:[%s7084_s2 + $0x28] sm:$0xff] }
 0x266   :  { %v4724_v27 = vpop.eup %4723  ;;  %v4547_v21 = vpop.f32.mrf.mxu0 }
 0x267   :  { %4737 = vrcp.f32 %v2563_v25  ;;  %v2562_v43 = vadd.f32 1.0, %v4724_v27  ;;  %v2605_v39 = vadd.f32 %v4547_v21, %v6675_v41  ;;  %v6819_v21 = vld [vmem:[%s7084_s2 + $0x48] sm:$0xff] }
 0x268   :  { %v4726_v33 = vpop.eup %4725  ;;  %v2537_v59 = vpop.f32.mrf.mxu0 }
 0x269   :  { %4739 = vrcp.f32 %v2562_v43  ;;  %v2565_v28 = vadd.f32 1.0, %v4726_v33  ;;  %v2604_v18 = vadd.f32 %v2537_v59, %v6677_v24  ;;  %v2637_v59 = vld [vmem:[#allocation2 + $0xd8] sm:$0xff] }
 0x26a   :  { %v4728_v29 = vpop.eup %4727 }
 0x26b   :  { %4741 = vrcp.f32 %v2565_v28  ;;  %v2564_v30 = vadd.f32 1.0, %v4728_v29 }
 0x26c   :  { %v4730_v34 = vpop.eup %4729 }
 0x26d   :  { %4743 = vrcp.f32 %v2564_v30  ;;  %v2591_v53 = vadd.f32 1.0, %v4730_v34  ;;  %v6784_v30 = vld [vmem:[%s7084_s2 + $0x20] sm:$0xff]  ;;  %v6798_v34 = vld [vmem:[%s7084_s2 + $0x30] sm:$0xff] }
 0x26e   :  { %v4732_v12 = vpop.eup %4731 }
 0x26f   :  { %v2590_v22 = vadd.f32 1.0, %v4732_v12  ;;  %4745 = vrcp.f32 %v2591_v53  ;;  %v6805_v12 = vld [vmem:[%s7084_s2 + $0x38] sm:$0xff] }
 0x270   :  { %v4734_v36 = vpop.eup %4733 }
 0x271   :  { %v2593_v11 = vadd.f32 1.0, %v4734_v36  ;;  %v6812_v36 = vld [vmem:[%s7084_s2 + $0x40] sm:$0xff] }
 0x272   :  { %v4736_v37 = vpop.eup %4735 }
 0x273   :  { %v2592_v61 = vadd.f32 1.0, %v4736_v37  ;;  %4747 = vrcp.f32 %v2593_v11  ;;  %v6826_v37 = vld [vmem:[%s7084_s2 + $0x50] sm:$0xff] }
 0x274   :  { %v4738_v38 = vpop.eup %4737  ;;  %4749 = vrcp.f32 %v2590_v22 }
 0x275   :  { %v2607_v20 = vmul.f32 %v4738_v38, %v2603_v47  ;;  %4751 = vrcp.f32 %v2592_v61  ;;  %v6833_v47 = vld [vmem:[%s7084_s2 + $0x58] sm:$0xff]  ;;  %v2635_v38 = vld [vmem:[#allocation2 + $0xc8] sm:$0xff] }
 0x276   :  { %v4740_v51 = vpop.eup %4739 }
 0x277   :  { %v2606_v3 = vmul.f32 %v4740_v51, %v2602_v50  ;;  %v2611_v10 = vadd.f32 %v2607_v20, %v2418_v63  ;;  %v2634_v20 = vld [vmem:[#allocation2 + $0xc0] sm:$0xff] }
 0x278   :  { %v4742_v7 = vpop.eup %4741 }
 0x279   :  { %v2609_v16 = vmul.f32 %v4742_v7, %v2605_v39  ;;  %v2610_v60 = vadd.f32 %v2606_v3, %v2417_v14  ;;  %4753 = vtanh.f32 %v2611_v10  ;;  %v2636_v39 = vld [vmem:[#allocation2 + $0xd0] sm:$0xff] }
 0x27a   :  { %v4744_v49 = vpop.eup %4743 }
 0x27b   :  { %v2613_v55 = vadd.f32 %v2609_v16, %v2420_v54  ;;  %v2608_v56 = vmul.f32 %v4744_v49, %v2604_v18  ;;  %v2639_v16 = vld [vmem:[#allocation2 + $0xe8] sm:$0xff]  ;;  %v2638_v54 = vld [vmem:[#allocation2 + $0xe0] sm:$0xff] }
 0x27c   :  { %v4746_v31 = vpop.eup %4745 }
 0x27d   :  { %4755 = vtanh.f32 %v2613_v55  ;;  %v2612_v32 = vadd.f32 %v2608_v56, %v2419_v57  ;;  %v2619_v35 = vsub.f32 1.0, %v4746_v31  ;;  %v2627_v33 = vmul.f32 %v4746_v31, %v6697_v23  ;;  %v6763_v23 = vld [vmem:[%s7084_s2 + $0x8] sm:$0xff]  ;;  %v2641_v57 = vld [vmem:[#allocation2 + $0xf8] sm:$0xff] }
 0x27e   :  { %4757 = vtanh.f32 %v2610_v60 }
 0x27f   :  { %4759 = vtanh.f32 %v2612_v32 }
 0x280   :  { %v4748_v17 = vpop.eup %4747 }
 0x281   :  { %v4750_v62 = vpop.eup %4749  ;;  %v2621_v40 = vsub.f32 1.0, %v4748_v17  ;;  %v2629_v13 = vmul.f32 %v4748_v17, %v6688_v44 }
 0x282   :  { %v4752_v1 = vpop.eup %4751  ;;  %v2618_v9 = vsub.f32 1.0, %v4750_v62  ;;  %v2626_v29 = vmul.f32 %v4750_v62, %v6702_v45  ;;  %v6770_v45 = vld [vmem:[%s7084_s2 + $0x10] sm:$0xff] }
 0x283   :  { %v2620_v15 = vsub.f32 1.0, %v4752_v1  ;;  %v2628_v25 = vmul.f32 %v4752_v1, %v6692_v5  ;;  %v2640_v1 = vld [vmem:[#allocation2 + $0xf0] sm:$0xff] }
 0x286   :  { %v4754_v4 = vpop.eup %4753 }
 0x287   :  { %v2623_v27 = vmul.f32 %v4754_v4, %v2619_v35 }
 0x289   :  { %v6750_v44 = vadd.f32 %v2627_v33, %v2623_v27 }
 0x28a   :  { %v4756_v48 = vpop.eup %4755 }
 0x28b   :  { %v4758_v6 = vpop.eup %4757  ;;  %v2625_v8 = vmul.f32 %v4756_v48, %v2621_v40 }
 0x28c   :  { %v4760_v26 = vpop.eup %4759  ;;  %v2622_v28 = vmul.f32 %v4758_v6, %v2618_v9 }
 0x28d   :  { %v6741_v19 = vadd.f32 %v2629_v13, %v2625_v8  ;;  %v2624_v42 = vmul.f32 %v4760_v26, %v2620_v15 }
 0x28e   :  { %v6755_v5 = vadd.f32 %v2626_v29, %v2622_v28 }
 0x28f   :  { %4548 = vmatprep.subr.mxu1 %v6741_v19  ;;  %v6745_v43 = vadd.f32 %v2628_v25, %v2624_v42 }
 0x290   :  { %4549 = vmatpush3.msra.mxu1 %v6741_v19 }
 0x291   :  { %4550 = vmatprep.subr.mxu1 %v6745_v43 }
 0x292   :  { %4551 = vmatpush3.msra.mxu1 %v6745_v43 }
 0x293   :  { %4552 = vmatprep.subr.mxu1 %v6750_v44 }
 0x294   :  { %4553 = vmatpush3.msra.mxu1 %v6750_v44 }
 0x295   :  { %4554 = vmatprep.subr.mxu1 %v6755_v5 }
 0x296   :  { %4555 = vmatpush3.msra.mxu1 %v6755_v5 }
 0x297   :  { %4557 = vmatmul.mubr.msk.f32.vlgmr.msra.gmra.mxu1 %vm257_vm7, %v6763_v23 }
 0x298   :  { %4559 = vmatprep.mubr.msk.f32.mxu1 %vm257_vm7, %v6770_v45 }
 0x29b   :  { %4560 = vmatmul.mubr.msk.f32.gmra.mxu1 %vm257_vm7, %v6777_v2 }
 0x29c   :  { %4562 = vmatprep.mubr.msk.f32.mxu1 %vm257_vm7, %v6784_v30 }
 0x29f   :  { %4563 = vmatmul.mubr.msk.f32.gmra.mxu1 %vm257_vm7, %v6791_v58 }
 0x2a0   :  { %4565 = vmatprep.mubr.msk.f32.mxu1 %vm257_vm7, %v6798_v34 }
 0x2a3   :  { %4566 = vmatmul.mubr.msk.f32.gmra.mxu1 %vm257_vm7, %v6805_v12 }
 0x2a4   :  { %4568 = vmatprep.mubr.msk.f32.mxu1 %vm257_vm7, %v6812_v36 }
 0x2a7   :  { %4569 = vmatmul.mubr.msk.f32.gmra.mxu1 %vm257_vm7, %v6819_v21 }
 0x2a8   :  { %4571 = vmatprep.mubr.msk.f32.mxu1 %vm257_vm7, %v6826_v37 }
 0x2ab   :  { %4572 = vmatmul.mubr.msk.f32.gmra.mxu1 %vm257_vm7, %v6833_v47 }
 0x2ac   :  { %4608 = vmatprep.mubr.msk.f32.mxu1 %vm257_vm7, %v6732_v0 }
 0x357   :  { %v4558_v53 = vpop.f32.mrf.mxu1 }
 0x358   :  { %v2772_v11 = vadd.f32 %v4558_v53, %v2635_v38 }
 0x359   :  { %v2712_v50 = vpop.f32.mrf.mxu1 }
 0x35a   :  { %v4003_v51 = vmul.f32 -1.442695, %v2772_v11  ;;  %v2771_v22 = vadd.f32 %v2712_v50, %v2634_v20 }
 0x35b   :  { %v4561_v61 = vpop.f32.mrf.mxu1 }
 0x35c   :  { %4761 = vpow2.f32 %v4003_v51  ;;  %v4002_v63 = vmul.f32 -1.442695, %v2771_v22  ;;  %v2774_v3 = vadd.f32 %v4561_v61, %v2637_v59 }
 0x35d   :  { %v2722_v7 = vpop.f32.mrf.mxu1 }
 0x35e   :  { %4763 = vpow2.f32 %v4002_v63  ;;  %v4005_v10 = vmul.f32 -1.442695, %v2774_v3  ;;  %v2773_v14 = vadd.f32 %v2722_v7, %v2636_v39 }
 0x35f   :  { %v4564_v18 = vpop.f32.mrf.mxu1 }
 0x360   :  { %4765 = vpow2.f32 %v4005_v10  ;;  %v4004_v49 = vmul.f32 -1.442695, %v2773_v14  ;;  %v2800_v60 = vadd.f32 %v4564_v18, %v2639_v16  ;;  %v2643_v10 = vld [vmem:[#allocation2 + $0x108] sm:$0xff] }
 0x361   :  { %v2732_v55 = vpop.f32.mrf.mxu1 }
 0x362   :  { %4767 = vpow2.f32 %v4004_v49  ;;  %v2799_v56 = vadd.f32 %v2732_v55, %v2638_v54  ;;  %v4007_v31 = vmul.f32 -1.442695, %v2800_v60  ;;  %v2642_v60 = vld [vmem:[#allocation2 + $0x100] sm:$0xff] }
 0x363   :  { %v4567_v32 = vpop.f32.mrf.mxu1 }
 0x364   :  { %v2802_v17 = vadd.f32 %v4567_v32, %v2641_v57  ;;  %v4006_v62 = vmul.f32 -1.442695, %v2799_v56  ;;  %4769 = vpow2.f32 %v4007_v31  ;;  %v2645_v32 = vld [vmem:[#allocation2 + $0x118] sm:$0xff] }
 0x365   :  { %v2742_v4 = vpop.f32.mrf.mxu1 }
 0x366   :  { %v4009_v40 = vmul.f32 -1.442695, %v2802_v17  ;;  %v2801_v48 = vadd.f32 %v2742_v4, %v2640_v1  ;;  %4771 = vpow2.f32 %v4006_v62  ;;  %v2644_v62 = vld [vmem:[#allocation2 + $0x110] sm:$0xff] }
 0x367   :  { %v4570_v25 = vpop.f32.mrf.mxu1 }
 0x368   :  { %v4008_v6 = vmul.f32 -1.442695, %v2801_v48  ;;  %4773 = vpow2.f32 %v4009_v40  ;;  %v2828_v20 = vadd.f32 %v4570_v25, %v6679_v46 }
 0x369   :  { %v4762_v8 = vpop.eup %4761  ;;  %v2752_v33 = vpop.f32.mrf.mxu1 }
 0x36a   :  { %v2788_v13 = vadd.f32 1.0, %v4762_v8  ;;  %4775 = vpow2.f32 %v4008_v6  ;;  %v2827_v61 = vadd.f32 %v2752_v33, %v6682_v52 }
 0x36b   :  { %v4764_v15 = vpop.eup %4763  ;;  %v4573_v53 = vpop.f32.mrf.mxu1 }
 0x36c   :  { %4777 = vrcp.f32 %v2788_v13  ;;  %v2787_v35 = vadd.f32 1.0, %v4764_v15  ;;  %v2830_v16 = vadd.f32 %v4573_v53, %v6675_v41 }
 0x36d   :  { %v4766_v26 = vpop.eup %4765  ;;  %v2762_v39 = vpop.f32.mrf.mxu1 }
 0x36e   :  { %4779 = vrcp.f32 %v2787_v35  ;;  %v2790_v9 = vadd.f32 1.0, %v4766_v26  ;;  %v2829_v55 = vadd.f32 %v2762_v39, %v6677_v24  ;;  %v2862_v39 = vld [vmem:[#allocation2 + $0x138] sm:$0xff] }
 0x36f   :  { %v4768_v42 = vpop.eup %4767 }
 0x370   :  { %4781 = vrcp.f32 %v2790_v9  ;;  %v2789_v27 = vadd.f32 1.0, %v4768_v42 }
 0x371   :  { %v4770_v28 = vpop.eup %4769 }
 0x372   :  { %4783 = vrcp.f32 %v2789_v27  ;;  %v2816_v51 = vadd.f32 1.0, %v4770_v28 }
 0x373   :  { %v4772_v29 = vpop.eup %4771 }
 0x374   :  { %v2815_v3 = vadd.f32 1.0, %v4772_v29  ;;  %4785 = vrcp.f32 %v2816_v51 }
 0x375   :  { %v4774_v38 = vpop.eup %4773 }
 0x376   :  { %v2818_v22 = vadd.f32 1.0, %v4774_v38 }
 0x377   :  { %v4776_v11 = vpop.eup %4775 }
 0x378   :  { %v2817_v7 = vadd.f32 1.0, %v4776_v11  ;;  %4787 = vrcp.f32 %v2818_v22 }
 0x379   :  { %v4778_v50 = vpop.eup %4777  ;;  %4789 = vrcp.f32 %v2815_v3 }
 0x37a   :  { %v2832_v59 = vmul.f32 %v4778_v50, %v2828_v20  ;;  %4791 = vrcp.f32 %v2817_v7 }
 0x37b   :  { %v4780_v63 = vpop.eup %4779 }
 0x37c   :  { %v2831_v14 = vmul.f32 %v4780_v63, %v2827_v61  ;;  %v2836_v49 = vadd.f32 %v2832_v59, %v2643_v10  ;;  %v2859_v59 = vld [vmem:[#allocation2 + $0x120] sm:$0xff] }
 0x37d   :  { %v4782_v18 = vpop.eup %4781 }
 0x37e   :  { %v2834_v54 = vmul.f32 %v4782_v18, %v2830_v16  ;;  %v2835_v57 = vadd.f32 %v2831_v14, %v2642_v60  ;;  %4793 = vtanh.f32 %v2836_v49  ;;  %v2861_v16 = vld [vmem:[#allocation2 + $0x130] sm:$0xff] }
 0x37f   :  { %v4784_v56 = vpop.eup %4783 }
 0x380   :  { %v2838_v31 = vadd.f32 %v2834_v54, %v2645_v32  ;;  %v2833_v17 = vmul.f32 %v4784_v56, %v2829_v55  ;;  %v2864_v54 = vld [vmem:[#allocation2 + $0x148] sm:$0xff]  ;;  %v2863_v32 = vld [vmem:[#allocation2 + $0x140] sm:$0xff] }
 0x381   :  { %v4786_v4 = vpop.eup %4785 }
 0x382   :  { %4795 = vtanh.f32 %v2838_v31  ;;  %v2837_v1 = vadd.f32 %v2833_v17, %v2644_v62  ;;  %v2844_v25 = vsub.f32 1.0, %v4786_v4  ;;  %v2852_v20 = vmul.f32 %v4786_v4, %v6750_v44  ;;  %v2860_v44 = vld [vmem:[#allocation2 + $0x128] sm:$0xff]  ;;  %v2866_v62 = vld [vmem:[#allocation2 + $0x158] sm:$0xff] }
 0x383   :  { %4797 = vtanh.f32 %v2835_v57 }
 0x384   :  { %4799 = vtanh.f32 %v2837_v1 }
 0x385   :  { %v4788_v40 = vpop.eup %4787 }
 0x386   :  { %v4790_v48 = vpop.eup %4789  ;;  %v2846_v13 = vsub.f32 1.0, %v4788_v40  ;;  %v2854_v9 = vmul.f32 %v4788_v40, %v6741_v19 }
 0x387   :  { %v4792_v6 = vpop.eup %4791  ;;  %v2843_v33 = vsub.f32 1.0, %v4790_v48  ;;  %v2851_v51 = vmul.f32 %v4790_v48, %v6755_v5 }
 0x388   :  { %v2845_v42 = vsub.f32 1.0, %v4792_v6  ;;  %v2853_v38 = vmul.f32 %v4792_v6, %v6745_v43  ;;  %v2865_v6 = vld [vmem:[#allocation2 + $0x150] sm:$0xff] }
 0x38b   :  { %v4794_v8 = vpop.eup %4793 }
 0x38c   :  { %v2848_v53 = vmul.f32 %v4794_v8, %v2844_v25 }
 0x38e   :  { %v6853_v19 = vadd.f32 %v2852_v20, %v2848_v53 }
 0x38f   :  { %v4796_v15 = vpop.eup %4795 }
 0x390   :  { %v4798_v35 = vpop.eup %4797  ;;  %v2850_v26 = vmul.f32 %v4796_v15, %v2846_v13 }
 0x391   :  { %v4800_v27 = vpop.eup %4799  ;;  %v2847_v50 = vmul.f32 %v4798_v35, %v2843_v33 }
 0x392   :  { %v6844_v28 = vadd.f32 %v2854_v9, %v2850_v26  ;;  %v2849_v29 = vmul.f32 %v4800_v27, %v2845_v42 }
 0x393   :  { %v6858_v43 = vadd.f32 %v2851_v51, %v2847_v50 }
 0x394   :  { %4574 = vmatprep.subr.mxu0 %v6844_v28  ;;  %v6848_v11 = vadd.f32 %v2853_v38, %v2849_v29 }
 0x395   :  { %4575 = vmatpush3.msra.mxu0 %v6844_v28 }
 0x396   :  { %4576 = vmatprep.subr.mxu0 %v6848_v11 }
 0x397   :  { %4577 = vmatpush3.msra.mxu0 %v6848_v11 }
 0x398   :  { %4578 = vmatprep.subr.mxu0 %v6853_v19 }
 0x399   :  { %4579 = vmatpush3.msra.mxu0 %v6853_v19 }
 0x39a   :  { %4580 = vmatprep.subr.mxu0 %v6858_v43 }
 0x39b   :  { %4581 = vmatpush3.msra.mxu0 %v6858_v43 }
 0x39c   :  { %4583 = vmatmul.mubr.msk.f32.vlgmr.msra.gmra.mxu0 %vm257_vm7, %v6763_v23 }
 0x39d   :  { %4585 = vmatprep.mubr.msk.f32.mxu0 %vm257_vm7, %v6770_v45 }
 0x3a0   :  { %4586 = vmatmul.mubr.msk.f32.gmra.mxu0 %vm257_vm7, %v6777_v2 }
 0x3a1   :  { %4588 = vmatprep.mubr.msk.f32.mxu0 %vm257_vm7, %v6784_v30 }
 0x3a4   :  { %4589 = vmatmul.mubr.msk.f32.gmra.mxu0 %vm257_vm7, %v6791_v58 }
 0x3a5   :  { %4591 = vmatprep.mubr.msk.f32.mxu0 %vm257_vm7, %v6798_v34 }
 0x3a8   :  { %4592 = vmatmul.mubr.msk.f32.gmra.mxu0 %vm257_vm7, %v6805_v12 }
 0x3a9   :  { %4594 = vmatprep.mubr.msk.f32.mxu0 %vm257_vm7, %v6812_v36 }
 0x3ac   :  { %4595 = vmatmul.mubr.msk.f32.gmra.mxu0 %vm257_vm7, %v6819_v21 }
 0x3ad   :  { %4597 = vmatprep.mubr.msk.f32.mxu0 %vm257_vm7, %v6826_v37 }
 0x3b0   :  { %4598 = vmatmul.mubr.msk.f32.gmra.mxu0 %vm257_vm7, %v6833_v47 }
 0x3b1   :  { %4634 = vmatprep.mubr.msk.f32.mxu0 %vm257_vm7, %v6732_v0 }
 0x45c   :  { %v4584_v5 = vpop.f32.mrf.mxu0 }
 0x45d   :  { %v2997_v22 = vadd.f32 %v4584_v5, %v2860_v44 }
 0x45e   :  { %v2937_v61 = vpop.f32.mrf.mxu0 }
 0x45f   :  { %v4023_v63 = vmul.f32 -1.442695, %v2997_v22  ;;  %v2996_v3 = vadd.f32 %v2937_v61, %v2859_v59 }
 0x460   :  { %v4587_v7 = vpop.f32.mrf.mxu0 }
 0x461   :  { %4801 = vpow2.f32 %v4023_v63  ;;  %v4022_v10 = vmul.f32 -1.442695, %v2996_v3  ;;  %v2999_v14 = vadd.f32 %v4587_v7, %v2862_v39 }
 0x462   :  { %v2947_v18 = vpop.f32.mrf.mxu0 }
 0x463   :  { %4803 = vpow2.f32 %v4022_v10  ;;  %v4025_v49 = vmul.f32 -1.442695, %v2999_v14  ;;  %v2998_v60 = vadd.f32 %v2947_v18, %v2861_v16 }
 0x464   :  { %v4590_v55 = vpop.f32.mrf.mxu0 }
 0x465   :  { %4805 = vpow2.f32 %v4025_v49  ;;  %v4024_v56 = vmul.f32 -1.442695, %v2998_v60  ;;  %v3025_v57 = vadd.f32 %v4590_v55, %v2864_v54  ;;  %v2868_v49 = vld [vmem:[#allocation2 + $0x168] sm:$0xff] }
 0x466   :  { %v2957_v31 = vpop.f32.mrf.mxu0 }
 0x467   :  { %4807 = vpow2.f32 %v4024_v56  ;;  %v3024_v17 = vadd.f32 %v2957_v31, %v2863_v32  ;;  %v4027_v4 = vmul.f32 -1.442695, %v3025_v57  ;;  %v2867_v57 = vld [vmem:[#allocation2 + $0x160] sm:$0xff] }
 0x468   :  { %v4593_v1 = vpop.f32.mrf.mxu0 }
 0x469   :  { %v3027_v40 = vadd.f32 %v4593_v1, %v2866_v62  ;;  %v4026_v48 = vmul.f32 -1.442695, %v3024_v17  ;;  %4809 = vpow2.f32 %v4027_v4  ;;  %v2870_v1 = vld [vmem:[#allocation2 + $0x178] sm:$0xff] }
 0x46a   :  { %v2967_v8 = vpop.f32.mrf.mxu0 }
 0x46b   :  { %v4029_v13 = vmul.f32 -1.442695, %v3027_v40  ;;  %v3026_v15 = vadd.f32 %v2967_v8, %v2865_v6  ;;  %4811 = vpow2.f32 %v4026_v48  ;;  %v2869_v48 = vld [vmem:[#allocation2 + $0x170] sm:$0xff] }
 0x46c   :  { %v4596_v38 = vpop.f32.mrf.mxu0 }
 0x46d   :  { %v4028_v35 = vmul.f32 -1.442695, %v3026_v15  ;;  %4813 = vpow2.f32 %v4029_v13  ;;  %v3053_v59 = vadd.f32 %v4596_v38, %v6679_v46 }
 0x46e   :  { %v4802_v26 = vpop.eup %4801  ;;  %v2977_v20 = vpop.f32.mrf.mxu0 }
 0x46f   :  { %v3013_v9 = vadd.f32 1.0, %v4802_v26  ;;  %4815 = vpow2.f32 %v4028_v35  ;;  %v3052_v7 = vadd.f32 %v2977_v20, %v6682_v52 }
 0x470   :  { %v4804_v42 = vpop.eup %4803  ;;  %v4599_v5 = vpop.f32.mrf.mxu0 }
 0x471   :  { %4817 = vrcp.f32 %v3013_v9  ;;  %v3012_v25 = vadd.f32 1.0, %v4804_v42  ;;  %v3055_v54 = vadd.f32 %v4599_v5, %v6675_v41 }
 0x472   :  { %v4806_v27 = vpop.eup %4805  ;;  %v2987_v16 = vpop.f32.mrf.mxu0 }
 0x473   :  { %4819 = vrcp.f32 %v3012_v25  ;;  %v3015_v33 = vadd.f32 1.0, %v4806_v27  ;;  %v3054_v31 = vadd.f32 %v2987_v16, %v6677_v24  ;;  %v3087_v16 = vld [vmem:[#allocation2 + $0x198] sm:$0xff] }
 0x474   :  { %v4808_v29 = vpop.eup %4807 }
 0x475   :  { %4821 = vrcp.f32 %v3015_v33  ;;  %v3014_v53 = vadd.f32 1.0, %v4808_v29 }
 0x476   :  { %v4810_v50 = vpop.eup %4809 }
 0x477   :  { %4823 = vrcp.f32 %v3014_v53  ;;  %v3041_v63 = vadd.f32 1.0, %v4810_v50 }
 0x478   :  { %v4812_v51 = vpop.eup %4811 }
 0x479   :  { %v3040_v14 = vadd.f32 1.0, %v4812_v51  ;;  %4825 = vrcp.f32 %v3041_v63 }
 0x47a   :  { %v4814_v44 = vpop.eup %4813 }
 0x47b   :  { %v3043_v3 = vadd.f32 1.0, %v4814_v44 }
 0x47c   :  { %v4816_v22 = vpop.eup %4815 }
 0x47d   :  { %v3042_v18 = vadd.f32 1.0, %v4816_v22  ;;  %4827 = vrcp.f32 %v3043_v3 }
 0x47e   :  { %v4818_v61 = vpop.eup %4817  ;;  %4829 = vrcp.f32 %v3040_v14 }
 0x47f   :  { %v3057_v39 = vmul.f32 %v4818_v61, %v3053_v59  ;;  %4831 = vrcp.f32 %v3042_v18 }
 0x480   :  { %v4820_v10 = vpop.eup %4819 }
 0x481   :  { %v3056_v60 = vmul.f32 %v4820_v10, %v3052_v7  ;;  %v3061_v56 = vadd.f32 %v3057_v39, %v2868_v49  ;;  %v3084_v39 = vld [vmem:[#allocation2 + $0x180] sm:$0xff] }
 0x482   :  { %v4822_v55 = vpop.eup %4821 }
 0x483   :  { %v3059_v32 = vmul.f32 %v4822_v55, %v3055_v54  ;;  %v3060_v62 = vadd.f32 %v3056_v60, %v2867_v57  ;;  %4833 = vtanh.f32 %v3061_v56  ;;  %v3086_v54 = vld [vmem:[#allocation2 + $0x190] sm:$0xff] }
 0x484   :  { %v4824_v17 = vpop.eup %4823 }
 0x485   :  { %v3063_v4 = vadd.f32 %v3059_v32, %v2870_v1  ;;  %v3058_v40 = vmul.f32 %v4824_v17, %v3054_v31  ;;  %v3089_v32 = vld [vmem:[#allocation2 + $0x1a8] sm:$0xff] }
 0x486   :  { %v4826_v8 = vpop.eup %4825 }
 0x487   :  { %4835 = vtanh.f32 %v3063_v4  ;;  %v3062_v6 = vadd.f32 %v3058_v40, %v2869_v48  ;;  %v3069_v38 = vsub.f32 1.0, %v4826_v8  ;;  %v3077_v59 = vmul.f32 %v4826_v8, %v6853_v19  ;;  %v3085_v19 = vld [vmem:[#allocation2 + $0x188] sm:$0xff]  ;;  %v3091_v40 = vld [vmem:[#allocation2 + $0x1b8] sm:$0xff] }
 0x488   :  { %4837 = vtanh.f32 %v3060_v62  ;;  %v3088_v62 = vld [vmem:[#allocation2 + $0x1a0] sm:$0xff] }
 0x489   :  { %4839 = vtanh.f32 %v3062_v6 }
 0x48a   :  { %v4828_v13 = vpop.eup %4827 }
 0x48b   :  { %v4830_v15 = vpop.eup %4829  ;;  %v3071_v9 = vsub.f32 1.0, %v4828_v13  ;;  %v3079_v33 = vmul.f32 %v4828_v13, %v6844_v28 }
 0x48c   :  { %v4832_v35 = vpop.eup %4831  ;;  %v3068_v20 = vsub.f32 1.0, %v4830_v15  ;;  %v3076_v63 = vmul.f32 %v4830_v15, %v6858_v43  ;;  %v3090_v15 = vld [vmem:[#allocation2 + $0x1b0] sm:$0xff] }
 0x48d   :  { %v3070_v29 = vsub.f32 1.0, %v4832_v35  ;;  %v3078_v44 = vmul.f32 %v4832_v35, %v6848_v11 }
 0x490   :  { %v4834_v26 = vpop.eup %4833 }
 0x491   :  { %v3073_v5 = vmul.f32 %v4834_v26, %v3069_v38 }
 0x493   :  { %v6901_v28 = vadd.f32 %v3077_v59, %v3073_v5 }
 0x494   :  { %v4836_v42 = vpop.eup %4835 }
 0x495   :  { %v4838_v25 = vpop.eup %4837  ;;  %v3075_v27 = vmul.f32 %v4836_v42, %v3071_v9 }
 0x496   :  { %v4840_v53 = vpop.eup %4839  ;;  %v3072_v61 = vmul.f32 %v4838_v25, %v3068_v20 }
 0x497   :  { %v6892_v50 = vadd.f32 %v3079_v33, %v3075_v27  ;;  %v3074_v51 = vmul.f32 %v4840_v53, %v3070_v29 }
 0x498   :  { %v6906_v11 = vadd.f32 %v3076_v63, %v3072_v61 }
 0x499   :  { %4600 = vmatprep.subr.mxu1 %v6892_v50  ;;  %v6896_v22 = vadd.f32 %v3078_v44, %v3074_v51 }
 0x49a   :  { %4601 = vmatpush3.msra.mxu1 %v6892_v50 }
 0x49b   :  { %4602 = vmatprep.subr.mxu1 %v6896_v22 }
 0x49c   :  { %4603 = vmatpush3.msra.mxu1 %v6896_v22 }
 0x49d   :  { %4604 = vmatprep.subr.mxu1 %v6901_v28 }
 0x49e   :  { %4605 = vmatpush3.msra.mxu1 %v6901_v28 }
 0x49f   :  { %4606 = vmatprep.subr.mxu1 %v6906_v11 }
 0x4a0   :  { %4607 = vmatpush3.msra.mxu1 %v6906_v11 }
 0x4a1   :  { %4609 = vmatmul.mubr.msk.f32.vlgmr.msra.gmra.mxu1 %vm257_vm7, %v6763_v23 }
 0x4a2   :  { %4611 = vmatprep.mubr.msk.f32.mxu1 %vm257_vm7, %v6770_v45 }
 0x4a5   :  { %4612 = vmatmul.mubr.msk.f32.gmra.mxu1 %vm257_vm7, %v6777_v2 }
 0x4a6   :  { %4614 = vmatprep.mubr.msk.f32.mxu1 %vm257_vm7, %v6784_v30 }
 0x4a9   :  { %4615 = vmatmul.mubr.msk.f32.gmra.mxu1 %vm257_vm7, %v6791_v58 }
 0x4aa   :  { %4617 = vmatprep.mubr.msk.f32.mxu1 %vm257_vm7, %v6798_v34 }
 0x4ad   :  { %4618 = vmatmul.mubr.msk.f32.gmra.mxu1 %vm257_vm7, %v6805_v12 }
 0x4ae   :  { %4620 = vmatprep.mubr.msk.f32.mxu1 %vm257_vm7, %v6812_v36 }
 0x4b1   :  { %4621 = vmatmul.mubr.msk.f32.gmra.mxu1 %vm257_vm7, %v6819_v21 }
 0x4b2   :  { %4623 = vmatprep.mubr.msk.f32.mxu1 %vm257_vm7, %v6826_v37 }
 0x4b5   :  { %4624 = vmatmul.mubr.msk.f32.gmra.mxu1 %vm257_vm7, %v6833_v47 }
 0x4b6   :  { %4660 = vmatprep.mubr.msk.f32.mxu1 %vm257_vm7, %v6732_v0 }
 0x561   :  { %v4610_v43 = vpop.f32.mrf.mxu1 }
 0x562   :  { %v3222_v3 = vadd.f32 %v4610_v43, %v3085_v19 }
 0x563   :  { %v3162_v7 = vpop.f32.mrf.mxu1 }
 0x564   :  { %v4043_v10 = vmul.f32 -1.442695, %v3222_v3  ;;  %v3221_v14 = vadd.f32 %v3162_v7, %v3084_v39 }
 0x565   :  { %v4613_v18 = vpop.f32.mrf.mxu1 }
 0x566   :  { %4841 = vpow2.f32 %v4043_v10  ;;  %v4042_v49 = vmul.f32 -1.442695, %v3221_v14  ;;  %v3224_v60 = vadd.f32 %v4613_v18, %v3087_v16 }
 0x567   :  { %v3172_v55 = vpop.f32.mrf.mxu1 }
 0x568   :  { %4843 = vpow2.f32 %v4042_v49  ;;  %v4045_v56 = vmul.f32 -1.442695, %v3224_v60  ;;  %v3223_v57 = vadd.f32 %v3172_v55, %v3086_v54  ;;  %v3093_v55 = vld [vmem:[#allocation2 + $0x1c8] sm:$0xff] }
 0x569   :  { %v4616_v31 = vpop.f32.mrf.mxu1 }
 0x56a   :  { %4845 = vpow2.f32 %v4045_v56  ;;  %v4044_v0 = vmul.f32 -1.442695, %v3223_v57  ;;  %v3250_v17 = vadd.f32 %v4616_v31, %v3089_v32 }
 0x56b   :  { %v3182_v1 = vpop.f32.mrf.mxu1 }
 0x56c   :  { %4847 = vpow2.f32 %v4044_v0  ;;  %v3249_v4 = vadd.f32 %v3182_v1, %v3088_v62  ;;  %v4047_v6 = vmul.f32 -1.442695, %v3250_v17  ;;  %v3092_v0 = vld [vmem:[#allocation2 + $0x1c0] sm:$0xff] }
 0x56d   :  { %v4619_v48 = vpop.f32.mrf.mxu1 }
 0x56e   :  { %v3252_v8 = vadd.f32 %v4619_v48, %v3091_v40  ;;  %v4046_v13 = vmul.f32 -1.442695, %v3249_v4  ;;  %4849 = vpow2.f32 %v4047_v6  ;;  %v3095_v40 = vld [vmem:[#allocation2 + $0x1d8] sm:$0xff] }
 0x56f   :  { %v3192_v35 = vpop.f32.mrf.mxu1 }
 0x570   :  { %v4049_v26 = vmul.f32 -1.442695, %v3252_v8  ;;  %v3251_v9 = vadd.f32 %v3192_v35, %v3090_v15  ;;  %4851 = vpow2.f32 %v4046_v13  ;;  %v3094_v8 = vld [vmem:[#allocation2 + $0x1d0] sm:$0xff] }
 0x571   :  { %v4622_v51 = vpop.f32.mrf.mxu1 }
 0x572   :  { %v4048_v42 = vmul.f32 -1.442695, %v3251_v9  ;;  %4853 = vpow2.f32 %v4049_v26  ;;  %v3278_v3 = vadd.f32 %v4622_v51, %v6679_v46 }
 0x573   :  { %v4842_v25 = vpop.eup %4841  ;;  %v3202_v5 = vpop.f32.mrf.mxu1 }
 0x574   :  { %v3238_v27 = vadd.f32 1.0, %v4842_v25  ;;  %4855 = vpow2.f32 %v4048_v42  ;;  %v3277_v16 = vadd.f32 %v3202_v5, %v6682_v52 }
 0x575   :  { %v4844_v33 = vpop.eup %4843  ;;  %v4625_v19 = vpop.f32.mrf.mxu1 }
 0x576   :  { %4857 = vrcp.f32 %v3238_v27  ;;  %v3237_v29 = vadd.f32 1.0, %v4844_v33  ;;  %v3280_v57 = vadd.f32 %v4625_v19, %v6675_v41 }
 0x577   :  { %v4846_v38 = vpop.eup %4845  ;;  %v3212_v60 = vpop.f32.mrf.mxu1 }
 0x578   :  { %4859 = vrcp.f32 %v3237_v29  ;;  %v3240_v53 = vadd.f32 1.0, %v4846_v38  ;;  %v3279_v62 = vadd.f32 %v3212_v60, %v6677_v24  ;;  %v3313_v60 = vld [vmem:[#allocation2 + $0x200] sm:$0xff] }
 0x579   :  { %v4848_v20 = vpop.eup %4847 }
 0x57a   :  { %4861 = vrcp.f32 %v3240_v53  ;;  %v3239_v44 = vadd.f32 1.0, %v4848_v20 }
 0x57b   :  { %v4850_v59 = vpop.eup %4849 }
 0x57c   :  { %4863 = vrcp.f32 %v3239_v44  ;;  %v3266_v7 = vadd.f32 1.0, %v4850_v59 }
 0x57d   :  { %v4852_v61 = vpop.eup %4851 }
 0x57e   :  { %v3265_v49 = vadd.f32 1.0, %v4852_v61  ;;  %4865 = vrcp.f32 %v3266_v7 }
 0x57f   :  { %v4854_v63 = vpop.eup %4853 }
 0x580   :  { %v3268_v10 = vadd.f32 1.0, %v4854_v63 }
 0x581   :  { %v4856_v43 = vpop.eup %4855 }
 0x582   :  { %v3267_v54 = vadd.f32 1.0, %v4856_v43  ;;  %4867 = vrcp.f32 %v3268_v10  ;;  %v3311_v10 = vld [vmem:[#allocation2 + $0x1f0] sm:$0xff] }
 0x583   :  { %v4858_v39 = vpop.eup %4857  ;;  %4869 = vrcp.f32 %v3265_v49 }
 0x584   :  { %v3282_v14 = vmul.f32 %v4858_v39, %v3278_v3  ;;  %4871 = vrcp.f32 %v3267_v54 }
 0x585   :  { %v4860_v18 = vpop.eup %4859 }
 0x586   :  { %v3281_v56 = vmul.f32 %v4860_v18, %v3277_v16  ;;  %v3286_v31 = vadd.f32 %v3282_v14, %v3093_v55  ;;  %v3314_v16 = vld [vmem:[#allocation2 + $0x208] sm:$0xff] }
 0x587   :  { %v4862_v32 = vpop.eup %4861 }
 0x588   :  { %v3284_v17 = vmul.f32 %v4862_v32, %v3280_v57  ;;  %v3285_v4 = vadd.f32 %v3281_v56, %v3092_v0  ;;  %4873 = vtanh.f32 %v3286_v31  ;;  %v3316_v56 = vld [vmem:[#allocation2 + $0x218] sm:$0xff] }
 0x589   :  { %v4864_v1 = vpop.eup %4863 }
 0x58a   :  { %v3288_v48 = vadd.f32 %v3284_v17, %v3095_v40  ;;  %v3283_v6 = vmul.f32 %v4864_v1, %v3279_v62  ;;  %v3315_v17 = vld [vmem:[#allocation2 + $0x210] sm:$0xff] }
 0x58b   :  { %v4866_v15 = vpop.eup %4865 }
 0x58c   :  { %4875 = vtanh.f32 %v3288_v48  ;;  %v3287_v13 = vadd.f32 %v3283_v6, %v3094_v8  ;;  %v3294_v20 = vsub.f32 1.0, %v4866_v15  ;;  %v3302_v43 = vmul.f32 %v4866_v15, %v6901_v28 }
 0x58d   :  { %4877 = vtanh.f32 %v3285_v4 }
 0x58e   :  { %4879 = vtanh.f32 %v3287_v13 }
 0x58f   :  { %v4868_v35 = vpop.eup %4867 }
 0x590   :  { %v4870_v26 = vpop.eup %4869  ;;  %v3296_v25 = vsub.f32 1.0, %v4868_v35  ;;  %v3304_v38 = vmul.f32 %v4868_v35, %v6892_v50 }
 0x591   :  { %v4872_v9 = vpop.eup %4871  ;;  %v3293_v44 = vsub.f32 1.0, %v4870_v26  ;;  %v3301_v39 = vmul.f32 %v4870_v26, %v6906_v11 }
 0x592   :  { %v3295_v53 = vsub.f32 1.0, %v4872_v9  ;;  %v3303_v61 = vmul.f32 %v4872_v9, %v6896_v22 }
 0x595   :  { %v4874_v42 = vpop.eup %4873 }
 0x596   :  { %v3298_v63 = vmul.f32 %v4874_v42, %v3294_v20 }
 0x598   :  { %v6949_v50 = vadd.f32 %v3302_v43, %v3298_v63 }
 0x599   :  { %v4876_v27 = vpop.eup %4875 }
 0x59a   :  { %v4878_v33 = vpop.eup %4877  ;;  %v3300_v29 = vmul.f32 %v4876_v27, %v3296_v25 }
 0x59b   :  { %v4880_v51 = vpop.eup %4879  ;;  %v3297_v3 = vmul.f32 %v4878_v33, %v3293_v44 }
 0x59c   :  { %v6940_v5 = vadd.f32 %v3304_v38, %v3300_v29  ;;  %v3299_v59 = vmul.f32 %v4880_v51, %v3295_v53 }
 0x59d   :  { %v6954_v22 = vadd.f32 %v3301_v39, %v3297_v3 }
 0x59e   :  { %4626 = vmatprep.subr.mxu0 %v6940_v5  ;;  %v6944_v19 = vadd.f32 %v3303_v61, %v3299_v59 }
 0x59f   :  { %4627 = vmatpush3.msra.mxu0 %v6940_v5 }
 0x5a0   :  { %4628 = vmatprep.subr.mxu0 %v6944_v19 }
 0x5a1   :  { %4629 = vmatpush3.msra.mxu0 %v6944_v19 }
 0x5a2   :  { %4630 = vmatprep.subr.mxu0 %v6949_v50 }
 0x5a3   :  { %4631 = vmatpush3.msra.mxu0 %v6949_v50 }
 0x5a4   :  { %4632 = vmatprep.subr.mxu0 %v6954_v22 }
 0x5a5   :  { %4633 = vmatpush3.msra.mxu0 %v6954_v22 }
 0x5a6   :  { %4635 = vmatmul.mubr.msk.f32.vlgmr.msra.gmra.mxu0 %vm257_vm7, %v6763_v23  ;;  %v3310_v23 = vld [vmem:[#allocation2 + $0x1e8] sm:$0xff] }
 0x5a7   :  { %4637 = vmatprep.mubr.msk.f32.mxu0 %vm257_vm7, %v6770_v45 }
 0x5aa   :  { %4638 = vmatmul.mubr.msk.f32.gmra.mxu0 %vm257_vm7, %v6777_v2 }
 0x5ab   :  { %4640 = vmatprep.mubr.msk.f32.mxu0 %vm257_vm7, %v6784_v30  ;;  %v3309_v30 = vld [vmem:[#allocation2 + $0x1e0] sm:$0xff] }
 0x5ae   :  { %4641 = vmatmul.mubr.msk.f32.gmra.mxu0 %vm257_vm7, %v6791_v58 }
 0x5af   :  { %4643 = vmatprep.mubr.msk.f32.mxu0 %vm257_vm7, %v6798_v34 }
 0x5b2   :  { %4644 = vmatmul.mubr.msk.f32.gmra.mxu0 %vm257_vm7, %v6805_v12  ;;  %v3312_v12 = vld [vmem:[#allocation2 + $0x1f8] sm:$0xff] }
 0x5b3   :  { %4646 = vmatprep.mubr.msk.f32.mxu0 %vm257_vm7, %v6812_v36 }
 0x5b6   :  { %4647 = vmatmul.mubr.msk.f32.gmra.mxu0 %vm257_vm7, %v6819_v21 }
 0x5b7   :  { %4649 = vmatprep.mubr.msk.f32.mxu0 %vm257_vm7, %v6826_v37 }
 0x5ba   :  { %4650 = vmatmul.mubr.msk.f32.gmra.mxu0 %vm257_vm7, %v6833_v47 }
 0x666   :  { %v4636_v45 = vpop.f32.mrf.mxu0 }
 0x667   :  { %v3447_v2 = vadd.f32 %v4636_v45, %v3310_v23  ;;  %v3318_v45 = vld [vmem:[#allocation2 + $0x228] sm:$0xff] }
 0x668   :  { %v3387_v58 = vpop.f32.mrf.mxu0 }
 0x669   :  { %v4063_v34 = vmul.f32 -1.442695, %v3447_v2  ;;  %v3446_v28 = vadd.f32 %v3387_v58, %v3309_v30 }
 0x66a   :  { %v4639_v11 = vpop.f32.mrf.mxu0 }
 0x66b   :  { %4881 = vpow2.f32 %v4063_v34  ;;  %v4062_v36 = vmul.f32 -1.442695, %v3446_v28  ;;  %v3449_v7 = vadd.f32 %v4639_v11, %v3312_v12  ;;  %v3317_v28 = vld [vmem:[#allocation2 + $0x220] sm:$0xff] }
 0x66c   :  { %v3397_v21 = vpop.f32.mrf.mxu0 }
 0x66d   :  { %4883 = vpow2.f32 %v4062_v36  ;;  %v4065_v14 = vmul.f32 -1.442695, %v3449_v7  ;;  %v3448_v37 = vadd.f32 %v3397_v21, %v3311_v10  ;;  %v3320_v10 = vld [vmem:[#allocation2 + $0x238] sm:$0xff] }
 0x66e   :  { %v4642_v18 = vpop.f32.mrf.mxu0 }
 0x66f   :  { %4885 = vpow2.f32 %v4065_v14  ;;  %v4064_v47 = vmul.f32 -1.442695, %v3448_v37  ;;  %v3475_v49 = vadd.f32 %v4642_v18, %v3314_v16  ;;  %v3319_v37 = vld [vmem:[#allocation2 + $0x230] sm:$0xff] }
 0x670   :  { %v3407_v54 = vpop.f32.mrf.mxu0 }
 0x671   :  { %4887 = vpow2.f32 %v4064_v47  ;;  %v3474_v55 = vadd.f32 %v3407_v54, %v3313_v60  ;;  %v4067_v32 = vmul.f32 -1.442695, %v3475_v49 }
 0x672   :  { %v4645_v57 = vpop.f32.mrf.mxu0 }
 0x673   :  { %v3477_v31 = vadd.f32 %v4645_v57, %v3316_v56  ;;  %v4066_v0 = vmul.f32 -1.442695, %v3474_v55  ;;  %4889 = vpow2.f32 %v4067_v32 }
 0x674   :  { %v3417_v62 = vpop.f32.mrf.mxu0 }
 0x675   :  { %v4069_v1 = vmul.f32 -1.442695, %v3477_v31  ;;  %v3476_v4 = vadd.f32 %v3417_v62, %v3315_v17  ;;  %4891 = vpow2.f32 %v4066_v0 }
 0x676   :  { %v4648_v9 = vpop.f32.mrf.mxu0 }
 0x677   :  { %v4068_v40 = vmul.f32 -1.442695, %v3476_v4  ;;  %4893 = vpow2.f32 %v4069_v1  ;;  %v3503_v20 = vadd.f32 %v4648_v9, %v6679_v46  ;;  %v4990_v9 = vld [vmem:[%s7084_s2 + $0x20] sm:$0xff] }
 0x678   :  { %v4882_v48 = vpop.eup %4881  ;;  %v3427_v25 = vpop.f32.mrf.mxu0 }
 0x679   :  { %v3463_v6 = vadd.f32 1.0, %v4882_v48  ;;  %4895 = vpow2.f32 %v4068_v40  ;;  %v3502_v63 = vadd.f32 %v3427_v25, %v6682_v52  ;;  %v4992_v25 = vld [vmem:[%s7084_s2 + $0x30] sm:$0xff] }
 0x67a   :  { %v4884_v8 = vpop.eup %4883  ;;  %v4651_v38 = vpop.f32.mrf.mxu0 }
 0x67b   :  { %4897 = vrcp.f32 %v3463_v6  ;;  %v3462_v13 = vadd.f32 1.0, %v4884_v8  ;;  %v3505_v30 = vadd.f32 %v4651_v38, %v6675_v41  ;;  %v4996_v38 = vld [vmem:[%s7084_s2 + $0x50] sm:$0xff] }
 0x67c   :  { %v4886_v15 = vpop.eup %4885  ;;  %v3437_v39 = vpop.f32.mrf.mxu0 }
 0x67d   :  { %4899 = vrcp.f32 %v3462_v13  ;;  %v3465_v35 = vadd.f32 1.0, %v4886_v15  ;;  %v3504_v11 = vadd.f32 %v3437_v39, %v6677_v24 }
 0x67e   :  { %v4888_v26 = vpop.eup %4887 }
 0x67f   :  { %4901 = vrcp.f32 %v3465_v35  ;;  %v3464_v42 = vadd.f32 1.0, %v4888_v26  ;;  %v4989_v26 = vld [vmem:[%s7084_s2 + $0x18] sm:$0xff] }
 0x680   :  { %v4890_v27 = vpop.eup %4889 }
 0x681   :  { %4903 = vrcp.f32 %v3464_v42  ;;  %v3491_v44 = vadd.f32 1.0, %v4890_v27  ;;  %v4991_v42 = vld [vmem:[%s7084_s2 + $0x28] sm:$0xff]  ;;  %v4993_v27 = vld [vmem:[%s7084_s2 + $0x38] sm:$0xff] }
 0x682   :  { %v4892_v33 = vpop.eup %4891 }
 0x683   :  { %v3490_v3 = vadd.f32 1.0, %v4892_v33  ;;  %4905 = vrcp.f32 %v3491_v44  ;;  %v4994_v33 = vld [vmem:[%s7084_s2 + $0x40] sm:$0xff] }
 0x684   :  { %v4894_v29 = vpop.eup %4893 }
 0x685   :  { %v3493_v59 = vadd.f32 1.0, %v4894_v29  ;;  %v4995_v29 = vld [vmem:[%s7084_s2 + $0x48] sm:$0xff] }
 0x686   :  { %v4896_v53 = vpop.eup %4895 }
 0x687   :  { %v3492_v23 = vadd.f32 1.0, %v4896_v53  ;;  %4907 = vrcp.f32 %v3493_v59  ;;  %v4997_v53 = vld [vmem:[%s7084_s2 + $0x58] sm:$0xff]  ;;  %v3534_v59 = vld [vmem:[#allocation2 + $0x240] sm:$0xff] }
 0x688   :  { %v4898_v51 = vpop.eup %4897  ;;  %4909 = vrcp.f32 %v3490_v3  ;;  %v3537_v3 = vld [vmem:[#allocation2 + $0x258] sm:$0xff] }
 0x689   :  { %v3507_v61 = vmul.f32 %v4898_v51, %v3503_v20  ;;  %4911 = vrcp.f32 %v3492_v23  ;;  %v3535_v20 = vld [vmem:[#allocation2 + $0x248] sm:$0xff] }
 0x68a   :  { %v4900_v43 = vpop.eup %4899 }
 0x68b   :  { %v3506_v2 = vmul.f32 %v4900_v43, %v3502_v63  ;;  %v3511_v34 = vadd.f32 %v3507_v61, %v3318_v45 }
 0x68c   :  { %v4902_v58 = vpop.eup %4901 }
 0x68d   :  { %v3509_v12 = vmul.f32 %v4902_v58, %v3505_v30  ;;  %v3510_v7 = vadd.f32 %v3506_v2, %v3317_v28  ;;  %4913 = vtanh.f32 %v3511_v34  ;;  %v3536_v2 = vld [vmem:[#allocation2 + $0x250] sm:$0xff]  ;;  %v3539_v28 = vld [vmem:[#allocation2 + $0x268] sm:$0xff] }
 0x68e   :  { %v4904_v36 = vpop.eup %4903 }
 0x68f   :  { %v3513_v21 = vadd.f32 %v3509_v12, %v3320_v10  ;;  %v3508_v14 = vmul.f32 %v4904_v36, %v3504_v11 }
 0x690   :  { %v4906_v18 = vpop.eup %4905 }
 0x691   :  { %4915 = vtanh.f32 %v3513_v21  ;;  %v3512_v16 = vadd.f32 %v3508_v14, %v3319_v37  ;;  %v3519_v17 = vsub.f32 1.0, %v4906_v18  ;;  %v3527_v13 = vmul.f32 %v4906_v18, %v6949_v50  ;;  %v4987_v50 = vld [vmem:[%s7084_s2 + $0x8] sm:$0xff]  ;;  %v3541_v37 = vld [vmem:[#allocation2 + $0x278] sm:$0xff] }
 0x692   :  { %4917 = vtanh.f32 %v3510_v7  ;;  %v3538_v7 = vld [vmem:[#allocation2 + $0x260] sm:$0xff] }
 0x693   :  { %4919 = vtanh.f32 %v3512_v16 }
 0x694   :  { %v4908_v47 = vpop.eup %4907 }
 0x695   :  { %v4910_v49 = vpop.eup %4909  ;;  %v3521_v55 = vsub.f32 1.0, %v4908_v47  ;;  %v3529_v31 = vmul.f32 %v4908_v47, %v6940_v5 }
 0x696   :  { %v4912_v60 = vpop.eup %4911  ;;  %v3518_v1 = vsub.f32 1.0, %v4910_v49  ;;  %v3526_v35 = vmul.f32 %v4910_v49, %v6954_v22  ;;  %v4988_v22 = vld [vmem:[%s7084_s2 + $0x10] sm:$0xff] }
 0x697   :  { %v3520_v0 = vsub.f32 1.0, %v4912_v60  ;;  %v3528_v48 = vmul.f32 %v4912_v60, %v6944_v19  ;;  %v3540_v49 = vld [vmem:[#allocation2 + $0x270] sm:$0xff] }
 0x69a   :  { %v4914_v54 = vpop.eup %4913 }
 0x69b   :  { %v3523_v6 = vmul.f32 %v4914_v54, %v3519_v17 }
 0x69d   :  { %v6995_v5 = vadd.f32 %v3527_v13, %v3523_v6 }
 0x69e   :  { %v4916_v56 = vpop.eup %4915 }
 0x69f   :  { %v4918_v57 = vpop.eup %4917  ;;  %v3525_v32 = vmul.f32 %v4916_v56, %v3521_v55 }
 0x6a0   :  { %v4920_v62 = vpop.eup %4919  ;;  %v3522_v15 = vmul.f32 %v4918_v57, %v3518_v1 }
 0x6a1   :  { %v6986_v4 = vadd.f32 %v3529_v31, %v3525_v32  ;;  %v3524_v40 = vmul.f32 %v4920_v62, %v3520_v0 }
 0x6a2   :  { %v7000_v19 = vadd.f32 %v3526_v35, %v3522_v15 }
 0x6a3   :  { %4652 = vmatprep.subr.mxu1 %v6986_v4  ;;  %v6990_v8 = vadd.f32 %v3528_v48, %v3524_v40 }
 0x6a4   :  { %4653 = vmatpush3.msra.mxu1 %v6986_v4 }
 0x6a5   :  { %4654 = vmatprep.subr.mxu1 %v6990_v8 }
 0x6a6   :  { %4655 = vmatpush3.msra.mxu1 %v6990_v8 }
 0x6a7   :  { %4656 = vmatprep.subr.mxu1 %v6995_v5 }
 0x6a8   :  { %4657 = vmatpush3.msra.mxu1 %v6995_v5 }
 0x6a9   :  { %4658 = vmatprep.subr.mxu1 %v7000_v19 }
 0x6aa   :  { %4659 = vmatpush3.msra.mxu1 %v7000_v19 }
 0x6ab   :  { %4661 = vmatmul.mubr.msk.f32.vlgmr.msra.gmra.mxu1 %vm257_vm7, %v4987_v50 }
 0x6ac   :  { %4663 = vmatprep.mubr.msk.f32.mxu1 %vm257_vm7, %v4988_v22 }
 0x6af   :  { %4664 = vmatmul.mubr.msk.f32.gmra.mxu1 %vm257_vm7, %v4989_v26 }
 0x6b0   :  { %4666 = vmatprep.mubr.msk.f32.mxu1 %vm257_vm7, %v4990_v9 }
 0x6b3   :  { %4667 = vmatmul.mubr.msk.f32.gmra.mxu1 %vm257_vm7, %v4991_v42 }
 0x6b4   :  { %4669 = vmatprep.mubr.msk.f32.mxu1 %vm257_vm7, %v4992_v25 }
 0x6b7   :  { %4670 = vmatmul.mubr.msk.f32.gmra.mxu1 %vm257_vm7, %v4993_v27 }
 0x6b8   :  { %4672 = vmatprep.mubr.msk.f32.mxu1 %vm257_vm7, %v4994_v33 }
 0x6bb   :  { %4673 = vmatmul.mubr.msk.f32.gmra.mxu1 %vm257_vm7, %v4995_v29 }
 0x6bc   :  { %4675 = vmatprep.mubr.msk.f32.mxu1 %vm257_vm7, %v4996_v38 }
 0x6bf   :  { %4676 = vmatmul.mubr.msk.f32.gmra.mxu1 %vm257_vm7, %v4997_v53 }
 0x76b   :  { %v4662_v51 = vpop.f32.mrf.mxu1 }
 0x76c   :  { %v3672_v44 = vadd.f32 %v4662_v51, %v3535_v20  ;;  %v3543_v20 = vld [vmem:[#allocation2 + $0x288] sm:$0xff] }
 0x76d   :  { %v3612_v61 = vpop.f32.mrf.mxu1 }
 0x76e   :  { %v4083_v63 = vmul.f32 -1.442695, %v3672_v44  ;;  %v3671_v43 = vadd.f32 %v3612_v61, %v3534_v59 }
 0x76f   :  { %v4665_v39 = vpop.f32.mrf.mxu1 }
 0x770   :  { %4921 = vpow2.f32 %v4083_v63  ;;  %v4082_v23 = vmul.f32 -1.442695, %v3671_v43  ;;  %v3674_v45 = vadd.f32 %v4665_v39, %v3537_v3  ;;  %v3542_v43 = vld [vmem:[#allocation2 + $0x280] sm:$0xff] }
 0x771   :  { %v3622_v30 = vpop.f32.mrf.mxu1 }
 0x772   :  { %4923 = vpow2.f32 %v4082_v23  ;;  %v4085_v58 = vmul.f32 -1.442695, %v3674_v45  ;;  %v3673_v34 = vadd.f32 %v3622_v30, %v3536_v2  ;;  %v3544_v30 = vld [vmem:[#allocation2 + $0x290] sm:$0xff] }
 0x773   :  { %v4668_v12 = vpop.f32.mrf.mxu1 }
 0x774   :  { %4925 = vpow2.f32 %v4085_v58  ;;  %v4084_v11 = vmul.f32 -1.442695, %v3673_v34  ;;  %v3700_v36 = vadd.f32 %v4668_v12, %v3539_v28 }
 0x775   :  { %v3632_v10 = vpop.f32.mrf.mxu1 }
 0x776   :  { %4927 = vpow2.f32 %v4084_v11  ;;  %v4087_v21 = vmul.f32 -1.442695, %v3700_v36  ;;  %v3699_v14 = vadd.f32 %v3632_v10, %v3538_v7 }
 0x777   :  { %v4671_v16 = vpop.f32.mrf.mxu1 }
 0x778   :  { %v4086_v18 = vmul.f32 -1.442695, %v3699_v14  ;;  %v3702_v47 = vadd.f32 %v4671_v16, %v3541_v37  ;;  %4929 = vpow2.f32 %v4087_v21 }
 0x779   :  { %v3642_v60 = vpop.f32.mrf.mxu1 }
 0x77a   :  { %v4089_v54 = vmul.f32 -1.442695, %v3702_v47  ;;  %v3701_v55 = vadd.f32 %v3642_v60, %v3540_v49  ;;  %4931 = vpow2.f32 %v4086_v18 }
 0x77b   :  { %v4674_v40 = vpop.f32.mrf.mxu1 }
 0x77c   :  { %v4088_v56 = vmul.f32 -1.442695, %v3701_v55  ;;  %4933 = vpow2.f32 %v4089_v54  ;;  %v3728_v42 = vadd.f32 %v4674_v40, %v6679_v46 }
 0x77d   :  { %v4922_v57 = vpop.eup %4921  ;;  %v3652_v13 = vpop.f32.mrf.mxu1 }
 0x77e   :  { %v3688_v32 = vadd.f32 1.0, %v4922_v57  ;;  %4935 = vpow2.f32 %v4088_v56  ;;  %v3727_v29 = vadd.f32 %v3652_v13, %v6682_v52  ;;  %v3545_v52 = vld [vmem:[#allocation2 + $0x298] sm:$0xff] }
 0x77f   :  { %v4924_v31 = vpop.eup %4923  ;;  %v4677_v22 = vpop.f32.mrf.mxu1 }
 0x780   :  { %4937 = vrcp.f32 %v3688_v32  ;;  %v3687_v0 = vadd.f32 1.0, %v4924_v31  ;;  %v3730_v61 = vadd.f32 %v4677_v22, %v6675_v41 }
 0x781   :  { %v4926_v17 = vpop.eup %4925  ;;  %v3662_v51 = vpop.f32.mrf.mxu1 }
 0x782   :  { %4939 = vrcp.f32 %v3687_v0  ;;  %v3690_v62 = vadd.f32 1.0, %v4926_v17  ;;  %v3729_v39 = vadd.f32 %v3662_v51, %v6677_v24 }
 0x783   :  { %v4928_v1 = vpop.eup %4927 }
 0x784   :  { %4941 = vrcp.f32 %v3690_v62  ;;  %v3689_v48 = vadd.f32 1.0, %v4928_v1 }
 0x785   :  { %v4930_v6 = vpop.eup %4929 }
 0x786   :  { %4943 = vrcp.f32 %v3689_v48  ;;  %v3716_v50 = vadd.f32 1.0, %v4930_v6 }
 0x787   :  { %v4932_v15 = vpop.eup %4931 }
 0x788   :  { %v3715_v9 = vadd.f32 1.0, %v4932_v15  ;;  %4945 = vrcp.f32 %v3716_v50 }
 0x789   :  { %v4934_v35 = vpop.eup %4933 }
 0x78a   :  { %v3718_v27 = vadd.f32 1.0, %v4934_v35  ;;  %4947 = vrcp.f32 %v3715_v9 }
 0x78b   :  { %v4936_v26 = vpop.eup %4935 }
 0x78c   :  { %v3717_v53 = vadd.f32 1.0, %v4936_v26  ;;  %4949 = vrcp.f32 %v3718_v27 }
 0x78d   :  { %v4938_v25 = vpop.eup %4937 }
 0x78e   :  { %v3732_v33 = vmul.f32 %v4938_v25, %v3728_v42 }
 0x78f   :  { %v4940_v38 = vpop.eup %4939 }
 0x790   :  { %v3736_v44 = vadd.f32 %v3732_v33, %v3543_v20  ;;  %v3731_v59 = vmul.f32 %v4940_v38, %v3727_v29 }
 0x791   :  { %v4942_v63 = vpop.eup %4941 }
 0x792   :  { %4951 = vtanh.f32 %v3736_v44  ;;  %v3735_v46 = vadd.f32 %v3731_v59, %v3542_v43  ;;  %v3734_v3 = vmul.f32 %v4942_v63, %v3730_v61 }
 0x793   :  { %v4944_v23 = vpop.eup %4943  ;;  %4953 = vrcp.f32 %v3717_v53 }
 0x794   :  { %4955 = vtanh.f32 %v3735_v46  ;;  %v3738_v45 = vadd.f32 %v3734_v3, %v3545_v52  ;;  %v3733_v2 = vmul.f32 %v4944_v23, %v3729_v39 }
 0x795   :  { %v4946_v34 = vpop.eup %4945 }
 0x796   :  { %4957 = vtanh.f32 %v3738_v45  ;;  %v3737_v58 = vadd.f32 %v3733_v2, %v3544_v30  ;;  %v3744_v12 = vsub.f32 1.0, %v4946_v34  ;;  %v3752_v24 = vmul.f32 %v4946_v34, %v6995_v5  ;;  %v3809_v2 = vpop.permute.xlu0 %3808  ;;  %v3814_v30 = vpop.permute.xlu1 %3813 }
 0x797   :  { %v4948_v41 = vpop.eup %4947 }
 0x798   :  { %4959 = vtanh.f32 %v3737_v58  ;;  %v3743_v7 = vsub.f32 1.0, %v4948_v41  ;;  %v3751_v14 = vmul.f32 %v4948_v41, %v7000_v19 }
 0x799   :  { %v4950_v28 = vpop.eup %4949 }
 0x79a   :  { %v3746_v37 = vsub.f32 1.0, %v4950_v28  ;;  %v3754_v56 = vmul.f32 %v4950_v28, %v6986_v4  ;;  %v3819_v58 = vpop.permute.xlu0 %3818  ;;  %v3824_v34 = vpop.permute.xlu1 %3823 }
 0x79e   :  { %v3837_v41 = vpop.permute.xlu0 %3836  ;;  %v3842_v28 = vpop.permute.xlu1 %3841 }
 0x79f   :  { %v4952_v11 = vpop.eup %4951 }
 0x7a0   :  { %v4954_v36 = vpop.eup %4953  ;;  %v3748_v10 = vmul.f32 %v4952_v11, %v3744_v12 }
 0x7a1   :  { %v4956_v21 = vpop.eup %4955  ;;  %v3745_v47 = vsub.f32 1.0, %v4954_v36  ;;  %v3753_v57 = vmul.f32 %v4954_v36, %v6990_v8 }
 0x7a2   :  { %v3747_v16 = vmul.f32 %v4956_v21, %v3743_v7  ;;  %v3756_v49 = vadd.f32 %v3752_v24, %v3748_v10 }
 0x7a3   :  { %v4958_v18 = vpop.eup %4957 }
 0x7a4   :  { %v3755_v60 = vadd.f32 %v3751_v14, %v3747_v16  ;;  %v3750_v54 = vmul.f32 %v4958_v18, %v3746_v37  ;;  %v3760_v0 = vsel %vm419_vm8, %v3756_v49, 0.0  ;;  %v3847_v16 = vpop.permute.xlu0 %3846  ;;  %v3852_v18 = vpop.permute.xlu1 %3851 }
 0x7a5   :  { %v4960_v55 = vpop.eup %4959 }
 0x7a6   :  { %v3759_v32 = vsel %vm419_vm8, %v3755_v60, 0.0  ;;  %v3749_v31 = vmul.f32 %v4960_v55, %v3745_v47  ;;  %v3758_v5 = vadd.f32 %v3754_v56, %v3750_v54 }
 0x7a7   :  { %v3761_v19 = vadd.f32 %v3760_v0, %v3759_v32 }
 0x7a8   :  { %v3757_v17 = vadd.f32 %v3753_v57, %v3749_v31  ;;  %v3764_v40 = vsel %vm419_vm8, %v3758_v5, 0.0 }
 0x7aa   :  { %v3762_v62 = vsel %vm419_vm8, %v3757_v17, 0.0 }
 0x7ab   :  { %v3763_v1 = vadd.f32 %v3762_v62, %v3761_v19 }
 0x7ad   :  { %v3765_v48 = vadd.f32 %v3764_v40, %v3763_v1 }
 0x7af   :  { %v3766_v6 = vrot.slane %v3765_v48, 4 }
 0x7b1   :  { %v3767_v13 = vadd.f32 %v3766_v6, %v3765_v48 }
 0x7b3   :  { %v3768_v15 = vrot.slane %v3767_v13, 2 }
 0x7b5   :  { %v3769_v4 = vadd.f32 %v3768_v15, %v3767_v13 }
 0x7b7   :  { %v3770_v35 = vrot.slane %v3769_v4, 1 }
 0x7b9   :  { %v3771_v8 = vadd.f32 %v3770_v35, %v3769_v4 }
 0x7bb   :  { %v3773_v50 = vmul.f32 0.03125, %v3771_v8 }
 0x7bd   :  { %v3774_v22 = vsub.f32 %v3755_v60, %v3773_v50  ;;  %v3775_v26 = vsub.f32 %v3756_v49, %v3773_v50  ;;  %v3776_v9 = vsub.f32 %v3757_v17, %v3773_v50  ;;  %v3777_v42 = vsub.f32 %v3758_v5, %v3773_v50 }
 0x7bf   :  { %v3778_v25 = vmul.f32 %v3774_v22, %v3774_v22  ;;  %v3779_v27 = vmul.f32 %v3775_v26, %v3775_v26  ;;  %v3780_v33 = vmul.f32 %v3776_v9, %v3776_v9  ;;  %v3781_v29 = vmul.f32 %v3777_v42, %v3777_v42 }
 0x7c1   :  { %v3782_v38 = vsel %vm419_vm8, %v3778_v25, 0.0  ;;  %v3783_v53 = vsel %vm419_vm8, %v3779_v27, 0.0  ;;  %v3785_v51 = vsel %vm419_vm8, %v3780_v33, 0.0  ;;  %v3787_v59 = vsel %vm419_vm8, %v3781_v29, 0.0 }
 0x7c2   :  { %v3784_v20 = vadd.f32 %v3783_v53, %v3782_v38 }
 0x7c4   :  { %v3786_v44 = vadd.f32 %v3785_v51, %v3784_v20 }
 0x7c6   :  { %v3788_v61 = vadd.f32 %v3787_v59, %v3786_v44 }
 0x7c8   :  { %v3789_v63 = vrot.slane %v3788_v61, 4 }
 0x7ca   :  { %v3790_v43 = vadd.f32 %v3789_v63, %v3788_v61 }
 0x7cc   :  { %v3791_v46 = vrot.slane %v3790_v43, 2 }
 0x7ce   :  { %v3792_v3 = vadd.f32 %v3791_v46, %v3790_v43 }
 0x7d0   :  { %v3793_v39 = vrot.slane %v3792_v3, 1 }
 0x7d2   :  { %v3794_v23 = vadd.f32 %v3793_v39, %v3792_v3 }
 0x7d4   :  { %v3795_v52 = vmul.f32 0.03125, %v3794_v23 }
 0x7d6   :  { %v3796_v45 = vadd.f32 1e-05, %v3795_v52 }
 0x7d8   :  { %4961 = vrsqrt.f32 %v3796_v45 }
 0x7e5   :  { %v4962_v12 = vpop.eup %4961 }
 0x7e6   :  { %v3798_v11 = vmul.f32 %v4962_v12, %v3774_v22  ;;  %v3799_v36 = vmul.f32 %v4962_v12, %v3775_v26  ;;  %v3800_v7 = vmul.f32 %v4962_v12, %v3776_v9  ;;  %v3801_v10 = vmul.f32 %v4962_v12, %v3777_v42 }
 0x7e8   :  { %v3826_v21 = vmul.f32 %v3809_v2, %v3798_v11  ;;  %v3827_v24 = vmul.f32 %v3814_v30, %v3799_v36  ;;  %v3828_v14 = vmul.f32 %v3819_v58, %v3800_v7  ;;  %v3829_v37 = vmul.f32 %v3824_v34, %v3801_v10 }
 0x7ea   :  { %v3854_v47 = vadd.f32 %v3837_v41, %v3826_v21  ;;  %v3855_v49 = vadd.f32 %v3842_v28, %v3827_v24  ;;  %v3856_v60 = vadd.f32 %v3847_v16, %v3828_v14  ;;  %v3857_v54 = vadd.f32 %v3852_v18, %v3829_v37 }
 0x7ec   :  { %3858 = vst.msk [vmem:[%s7088_s7] sm:$0xff] %vm419_vm8, %v3854_v47  ;;  %3859 = vst.msk [vmem:[%s7088_s7 + $0x8] sm:$0xff] %vm419_vm8, %v3855_v49 }
 0x7ed   :  { %3860 = vst.msk [vmem:[%s7088_s7 + $0x10] sm:$0xff] %vm419_vm8, %v3856_v60  ;;  %3861 = vst.msk [vmem:[%s7088_s7 + $0x18] sm:$0xff] %vm419_vm8, %v3857_v54 }

</bundles_post_ra>
